<compile_context>
chip_gen: v7x
topology: tpu7x:2x2x1
jax: 0.10.0
libtpu: 0.0.40
codegen_flags: <defaults>
</compile_context>

<pallas_src>
import math
from functools import partial

import jax
import jax.numpy as jnp
from jax import lax
from jax.experimental import pallas as pl
from jax.experimental.pallas import tpu as pltpu

# ----------------------------- model config ---------------------------------
B = 2
S_SRC = 8
S_TGT = 8
D_MODEL = 32
N_HEADS = 4
D_HEAD = D_MODEL // N_HEADS
D_FF = 64
N_LAYERS = 2
SRC_VOCAB = 16
TGT_VOCAB = 16
LN_EPS = 1e-6
MAX_LEN = 64
NEG_BIG = 1e9

# ---------------- static slab index layout (shared by packer & kernel) -------
# Attention-module slots in the wqkv / bqkv / wo slabs:
def ATTN_ENC(l): return l
def ATTN_DEC_SELF(l): return N_LAYERS + 2 * l
def ATTN_DEC_CROSS(l): return N_LAYERS + 2 * l + 1
N_ATTN = 3 * N_LAYERS                      # 6

# Feed-forward module slots in the w1 / w2 / vec64 slabs:
def FF_ENC(l): return l
def FF_DEC(l): return N_LAYERS + l
N_FF = 2 * N_LAYERS                        # 4

# Rows of the (N_VEC32, 1, D_MODEL) vector slab (all 32-wide bias / LN vectors):
def BO_ROW(m): return m                    # attention output-proj bias
def B2_ROW(f): return N_ATTN + f           # FF second bias
_LN_BASE = N_ATTN + N_FF
def ENC_LN_ROW(l, i): return _LN_BASE + 4 * l + i          # i: ln1_g, ln1_b, ln2_g, ln2_b
ENC_FLN_G = _LN_BASE + 4 * N_LAYERS
ENC_FLN_B = ENC_FLN_G + 1
_DEC_LN_BASE = ENC_FLN_B + 1
def DEC_LN_ROW(l, i): return _DEC_LN_BASE + 6 * l + i      # i: ln1_g .. ln3_b
DEC_FLN_G = _DEC_LN_BASE + 6 * N_LAYERS
DEC_FLN_B = DEC_FLN_G + 1
N_VEC32 = DEC_FLN_B + 1                    # 34


# ----------------------------- fused Pallas kernel ---------------------------
def _encdec_kernel(
    emb_ref,            # (n_src + n_tgt, D)   [src rows first, then tgt rows]
    mask_ref,           # (3, N, N) additive block-diagonal masks (enc, dec_self, dec_cross)
    wqkv_ref,           # (N_ATTN, D, 3D)
    bqkv_ref,           # (N_ATTN, 1, 3D)
    wo_ref,             # (N_ATTN, D, D)
    w1_ref,             # (N_FF, D, D_FF)
    w2_ref,             # (N_FF, D_FF, D)
    vec64_ref,          # (N_FF, 1, D_FF)      [FF first bias]
    vec32_ref,          # (N_VEC32, 1, D)      [all other biases + LN params]
    out_ref,            # (n_tgt, D)
    *, n_src, n_tgt,
):
    f32 = jnp.float32
    scale = 1.0 / math.sqrt(D_HEAD)

    def layer_norm(x, g_row, b_row):
        # Annotated-Transformer LayerNorm: unbiased std, (std + eps) denominator.
        g = vec32_ref[g_row]
        b = vec32_ref[b_row]
        mean = jnp.mean(x, axis=-1, keepdims=True)
        xc = x - mean
        var = jnp.sum(xc * xc, axis=-1, keepdims=True) * (1.0 / (D_MODEL - 1))
        inv = pl.reciprocal(jnp.sqrt(var) + LN_EPS, approx=True)     # EUP
        return g * (xc * inv) + b

    def mha(xq, xkv, add_mask, m, cross):
        # Fused QKV projection: one (N, D) x (D, 3D) matmul (+ one more for cross KV).
        wqkv = wqkv_ref[m]
        bqkv = bqkv_ref[m]
        qkv_q = jnp.dot(xq, wqkv, preferred_element_type=f32) + bqkv
        qkv_kv = qkv_q if not cross else (
            jnp.dot(xkv, wqkv, preferred_element_type=f32) + bqkv)
        ctx_heads = []
        for h in range(N_HEADS):                      # static lane slices per head
            q = qkv_q[:, h * D_HEAD:(h + 1) * D_HEAD]
            k = qkv_kv[:, D_MODEL + h * D_HEAD:D_MODEL + (h + 1) * D_HEAD]
            v = qkv_kv[:, 2 * D_MODEL + h * D_HEAD:2 * D_MODEL + (h + 1) * D_HEAD]
            # q @ k^T without materializing k.T (contract last dims of both).
            s = lax.dot_general(q, k, (((1,), (1,)), ((), ())),
                                preferred_element_type=f32) * scale + add_mask
            s = s - jnp.max(s, axis=-1, keepdims=True)
            p = jnp.exp(s)
            p = p * pl.reciprocal(jnp.sum(p, axis=-1, keepdims=True), approx=True)
            ctx_heads.append(jnp.dot(p, v, preferred_element_type=f32))
        ctx = jnp.concatenate(ctx_heads, axis=-1)     # (N, D), heads along lanes
        return (jnp.dot(ctx, wo_ref[m], preferred_element_type=f32)
                + vec32_ref[BO_ROW(m)])               # single fused output projection

    def feed_forward(x, f):
        h1 = jnp.dot(x, w1_ref[f], preferred_element_type=f32) + vec64_ref[f]
        h1 = jnp.maximum(h1, 0.0)
        return (jnp.dot(h1, w2_ref[f], preferred_element_type=f32)
                + vec32_ref[B2_ROW(f)])

    enc_mask = mask_ref[0]            # (n_src, n_src)
    dec_self_mask = mask_ref[1]       # (n_tgt, n_tgt)
    dec_cross_mask = mask_ref[2]      # (n_tgt, n_src)

    # --------------------------------- encoder --------------------------------
    x = emb_ref[0:n_src, :]
    for l in range(N_LAYERS):
        n1 = layer_norm(x, ENC_LN_ROW(l, 0), ENC_LN_ROW(l, 1))
        x = x + mha(n1, n1, enc_mask, ATTN_ENC(l), cross=False)
        n2 = layer_norm(x, ENC_LN_ROW(l, 2), ENC_LN_ROW(l, 3))
        x = x + feed_forward(n2, FF_ENC(l))
    memory = layer_norm(x, ENC_FLN_G, ENC_FLN_B)      # (n_src, D)

    # --------------------------------- decoder --------------------------------
    y = emb_ref[n_src:n_src + n_tgt, :]
    for l in range(N_LAYERS):
        n1 = layer_norm(y, DEC_LN_ROW(l, 0), DEC_LN_ROW(l, 1))
        y = y + mha(n1, n1, dec_self_mask, ATTN_DEC_SELF(l), cross=False)
        n2 = layer_norm(y, DEC_LN_ROW(l, 2), DEC_LN_ROW(l, 3))
        y = y + mha(n2, memory, dec_cross_mask, ATTN_DEC_CROSS(l), cross=True)
        n3 = layer_norm(y, DEC_LN_ROW(l, 4), DEC_LN_ROW(l, 5))
        y = y + feed_forward(n3, FF_DEC(l))

    out_ref[...] = layer_norm(y, DEC_FLN_G, DEC_FLN_B).astype(out_ref.dtype)


# ----------------------------- weight packing (runs ONCE at init) ------------
def pack_params(params):
    enc, dec = params["encoder"], params["decoder"]

    attn_mods = [None] * N_ATTN
    ff_mods = [None] * N_FF
    for l in range(N_LAYERS):
        attn_mods[ATTN_ENC(l)] = enc["layers"][l]["self_attn"]
        attn_mods[ATTN_DEC_SELF(l)] = dec["layers"][l]["self_attn"]
        attn_mods[ATTN_DEC_CROSS(l)] = dec["layers"][l]["src_attn"]
        ff_mods[FF_ENC(l)] = enc["layers"][l]["ff"]
        ff_mods[FF_DEC(l)] = dec["layers"][l]["ff"]

    wqkv = jnp.stack([jnp.concatenate([m["wq"], m["wk"], m["wv"]], axis=1)
                      for m in attn_mods])                                   # (6, 32, 96)
    bqkv = jnp.stack([jnp.concatenate([m["bq"], m["bk"], m["bv"]])
                      .reshape(1, 3 * D_MODEL) for m in attn_mods])          # (6, 1, 96)
    wo = jnp.stack([m["wo"] for m in attn_mods])                             # (6, 32, 32)

    w1 = jnp.stack([m["w1"] for m in ff_mods])                               # (4, 32, 64)
    w2 = jnp.stack([m["w2"] for m in ff_mods])                               # (4, 64, 32)
    vec64 = jnp.stack([m["b1"].reshape(1, D_FF) for m in ff_mods])           # (4, 1, 64)

    rows = [None] * N_VEC32
    for i, m in enumerate(attn_mods):
        rows[BO_ROW(i)] = m["bo"]
    for i, m in enumerate(ff_mods):
        rows[B2_ROW(i)] = m["b2"]
    for l in range(N_LAYERS):
        lp = enc["layers"][l]
        for i, n in enumerate(("ln1_g", "ln1_b", "ln2_g", "ln2_b")):
            rows[ENC_LN_ROW(l, i)] = lp[n]
    rows[ENC_FLN_G], rows[ENC_FLN_B] = enc["ln_g"], enc["ln_b"]
    for l in range(N_LAYERS):
        lp = dec["layers"][l]
        for i, n in enumerate(("ln1_g", "ln1_b", "ln2_g", "ln2_b", "ln3_g", "ln3_b")):
            rows[DEC_LN_ROW(l, i)] = lp[n]
    rows[DEC_FLN_G], rows[DEC_FLN_B] = dec["ln_g"], dec["ln_b"]
    vec32 = jnp.stack([r.reshape(1, D_MODEL) for r in rows])                 # (34, 1, 32)

    return {
        "wqkv": wqkv, "bqkv": bqkv, "wo": wo,
        "w1": w1, "w2": w2, "vec64": vec64, "vec32": vec32,
        "src_table": params["src_embed"]["table"],
        "tgt_table": params["tgt_embed"]["table"],
        "pe": params["pe"],
    }


# ----------------------------- wrapper / forward ------------------------------
def _embed(table, tokens, pe):
    # Row gather + sqrt(d) scale + positional encoding; dropout = identity (eval).
    b, s = tokens.shape
    e = jnp.take(table, tokens.reshape(-1), axis=0) * math.sqrt(D_MODEL)    # (b*s, D)
    e = e.reshape(b, s, D_MODEL) + pe[:s][None, :, :]
    return e.reshape(b * s, D_MODEL)


def _block_diag_additive(keep, batch, s_q, s_kv):
    # (batch, ?, s_kv) keep-mask -> (batch*s_q, batch*s_kv) additive mask:
    # 0 where attended, -1e9 where masked or cross-batch.
    keep = jnp.broadcast_to(keep.astype(jnp.float32), (batch, s_q, s_kv))
    eye = jnp.eye(batch, dtype=jnp.float32)
    big = jnp.einsum('bc,bqk->bqck', eye, keep).reshape(batch * s_q, batch * s_kv)
    return (big - 1.0) * NEG_BIG


def forward(packed, src, tgt, src_mask, tgt_mask):
    # EncoderDecorders.forward: decode(encode(src, src_mask), src_mask, tgt, tgt_mask)
    batch, s_src = src.shape
    s_tgt = tgt.shape[1]
    assert s_src == s_tgt, "mask-slab stacking assumes equal src/tgt length"
    n_src, n_tgt = batch * s_src, batch * s_tgt

    src_x = _embed(packed["src_table"], src, packed["pe"])       # (n_src, D)
    tgt_x = _embed(packed["tgt_table"], tgt, packed["pe"])       # (n_tgt, D)
    emb = jnp.concatenate([src_x, tgt_x], axis=0)                # (n_src+n_tgt, D)

    masks = jnp.stack([
        _block_diag_additive(src_mask, batch, s_src, s_src),     # encoder self-attn
        _block_diag_additive(tgt_mask, batch, s_tgt, s_tgt),     # decoder self-attn
        _block_diag_additive(src_mask, batch, s_tgt, s_src),     # decoder cross-attn
    ], axis=0)                                                   # (3, N, N)

    out = pl.pallas_call(
        partial(_encdec_kernel, n_src=n_src, n_tgt=n_tgt),
        out_shape=jax.ShapeDtypeStruct((n_tgt, D_MODEL), jnp.float32),
        compiler_params=pltpu.CompilerParams(vmem_limit_bytes=16 * 1024 * 1024),
    )(emb, masks, packed["wqkv"], packed["bqkv"], packed["wo"],
      packed["w1"], packed["w2"], packed["vec64"], packed["vec32"])

    return out.reshape(batch, s_tgt, D_MODEL)


# ----------------------------- parameter init --------------------------------
def positional_encoding(max_len, d):
    pos = jnp.arange(max_len, dtype=jnp.float32)[:, None]
    div = jnp.exp(jnp.arange(0, d, 2, dtype=jnp.float32) * -(math.log(10000.0) / d))
    pe = jnp.zeros((max_len, d), jnp.float32)
    pe = pe.at[:, 0::2].set(jnp.sin(pos * div))
    pe = pe.at[:, 1::2].set(jnp.cos(pos * div))
    return pe


def init_params(key):
    keys = jax.random.split(key, 128)
    it = iter(keys)

    def lin(d_in, d_out):
        w = jax.random.normal(next(it), (d_in, d_out), jnp.float32) * (1.0 / math.sqrt(d_in))
        return w, jnp.zeros((d_out,), jnp.float32)

    def attn():
        p = {}
        for n in ("q", "k", "v", "o"):
            w, b = lin(D_MODEL, D_MODEL)
            p["w" + n], p["b" + n] = w, b
        return p

    def ff():
        w1, b1 = lin(D_MODEL, D_FF)
        w2, b2 = lin(D_FF, D_MODEL)
        return {"w1": w1, "b1": b1, "w2": w2, "b2": b2}

    def ln():
        return jnp.ones((D_MODEL,), jnp.float32), jnp.zeros((D_MODEL,), jnp.float32)

    def enc_layer():
        g1, b1 = ln(); g2, b2 = ln()
        return {"self_attn": attn(), "ff": ff(),
                "ln1_g": g1, "ln1_b": b1, "ln2_g": g2, "ln2_b": b2}

    def dec_layer():
        g1, b1 = ln(); g2, b2 = ln(); g3, b3 = ln()
        return {"self_attn": attn(), "src_attn": attn(), "ff": ff(),
                "ln1_g": g1, "ln1_b": b1, "ln2_g": g2, "ln2_b": b2,
                "ln3_g": g3, "ln3_b": b3}

    enc_g, enc_b = ln()
    dec_g, dec_b = ln()
    params = {
        "src_embed": {"table": jax.random.normal(next(it), (SRC_VOCAB, D_MODEL),
                                                 jnp.float32) * 0.1},
        "tgt_embed": {"table": jax.random.normal(next(it), (TGT_VOCAB, D_MODEL),
                                                 jnp.float32) * 0.1},
        "pe": positional_encoding(MAX_LEN, D_MODEL),
        "encoder": {"layers": [enc_layer() for _ in range(N_LAYERS)],
                    "ln_g": enc_g, "ln_b": enc_b},
        "decoder": {"layers": [dec_layer() for _ in range(N_LAYERS)],
                    "ln_g": dec_g, "ln_b": dec_b},
        # The generator head (linear + log_softmax) exists in the torch module but is
        # not invoked by EncoderDecorders.forward, so it is not materialized here.
    }
    return params


# ----------------------------------- main -------------------------------------
if __name__ == "__main__":
    key = jax.random.PRNGKey(0)
    pkey, skey, tkey = jax.random.split(key, 3)

    # Pack once at init time (hoisted out of the jitted per-call path).
    packed = pack_params(init_params(pkey))

    src = jax.random.randint(skey, (B, S_SRC), 1, SRC_VOCAB, dtype=jnp.int32)
    tgt = jax.random.randint(tkey, (B, S_TGT), 1, TGT_VOCAB, dtype=jnp.int32)

    pad = 0
    src_mask = (src != pad)[:, None, :].astype(jnp.float32)                     # (B, 1, S_src)
    subsequent = jnp.tril(jnp.ones((S_TGT, S_TGT), jnp.float32))                # causal
    tgt_mask = (tgt != pad)[:, None, :].astype(jnp.float32) * subsequent[None]  # (B, S_tgt, S_tgt)

    fwd = jax.jit(forward)
    out = fwd(packed, src, tgt, src_mask, tgt_mask)
    out = jax.block_until_ready(out)

    assert out.shape == (B, S_TGT, D_MODEL), out.shape
    assert bool(jnp.all(jnp.isfinite(out)))
    print("KERNEL_OK")
</pallas_src>

<mosaic_0001>
module attributes {stable_mosaic.version = 11 : i64} {
  func.func @_encdec_kernel(%arg0: memref<32x32xf32, #tpu.memory_space<vmem>>, %arg1: memref<3x16x16xf32, #tpu.memory_space<vmem>>, %arg2: memref<6x32x96xf32, #tpu.memory_space<vmem>>, %arg3: memref<6x1x96xf32, #tpu.memory_space<vmem>>, %arg4: memref<6x32x32xf32, #tpu.memory_space<vmem>>, %arg5: memref<4x32x64xf32, #tpu.memory_space<vmem>>, %arg6: memref<4x64x32xf32, #tpu.memory_space<vmem>>, %arg7: memref<4x1x64xf32, #tpu.memory_space<vmem>>, %arg8: memref<34x1x32xf32, #tpu.memory_space<vmem>>, %arg9: memref<16x32xf32, #tpu.memory_space<vmem>>) attributes {dimension_semantics = [], scalar_prefetch = 0 : i64, scratch_operands = 0 : i64, tpu.core_type = #tpu.core_type<tc>} {
    %c0 = arith.constant 0 : index
    %c0_0 = arith.constant 0 : index
    %c0_1 = arith.constant 0 : index
    %0 = vector.load %arg1[%c0, %c0_0, %c0_1] : memref<3x16x16xf32, #tpu.memory_space<vmem>>, vector<1x16x16xf32>
    %1 = vector.shape_cast %0 : vector<1x16x16xf32> to vector<16x16xf32>
    %c1 = arith.constant 1 : index
    %c0_2 = arith.constant 0 : index
    %c0_3 = arith.constant 0 : index
    %2 = vector.load %arg1[%c1, %c0_2, %c0_3] : memref<3x16x16xf32, #tpu.memory_space<vmem>>, vector<1x16x16xf32>
    %3 = vector.shape_cast %2 : vector<1x16x16xf32> to vector<16x16xf32>
    %c2 = arith.constant 2 : index
    %c0_4 = arith.constant 0 : index
    %c0_5 = arith.constant 0 : index
    %4 = vector.load %arg1[%c2, %c0_4, %c0_5] : memref<3x16x16xf32, #tpu.memory_space<vmem>>, vector<1x16x16xf32>
    %5 = vector.shape_cast %4 : vector<1x16x16xf32> to vector<16x16xf32>
    %c0_6 = arith.constant 0 : index
    %c0_7 = arith.constant 0 : index
    %6 = vector.load %arg0[%c0_6, %c0_7] : memref<32x32xf32, #tpu.memory_space<vmem>>, vector<16x32xf32>
    %c10 = arith.constant 10 : index
    %c0_8 = arith.constant 0 : index
    %c0_9 = arith.constant 0 : index
    %7 = vector.load %arg8[%c10, %c0_8, %c0_9] : memref<34x1x32xf32, #tpu.memory_space<vmem>>, vector<1x1x32xf32>
    %8 = vector.shape_cast %7 : vector<1x1x32xf32> to vector<1x32xf32>
    %c11 = arith.constant 11 : index
    %c0_10 = arith.constant 0 : index
    %c0_11 = arith.constant 0 : index
    %9 = vector.load %arg8[%c11, %c0_10, %c0_11] : memref<34x1x32xf32, #tpu.memory_space<vmem>>, vector<1x1x32xf32>
    %10 = vector.shape_cast %9 : vector<1x1x32xf32> to vector<1x32xf32>
    %cst = arith.constant dense<0.000000e+00> : vector<16xf32>
    %11 = vector.multi_reduction <add>, %6, %cst [1] : vector<16x32xf32> to vector<16xf32>
    %12 = vector.shape_cast %11 : vector<16xf32> to vector<16x1xf32>
    %cst_12 = arith.constant 3.200000e+01 : f32
    %13 = vector.broadcast %cst_12 : f32 to vector<16x1xf32>
    %14 = arith.divf %12, %13 : vector<16x1xf32>
    %15 = vector.broadcast %14 : vector<16x1xf32> to vector<16x32xf32>
    %16 = arith.subf %6, %15 : vector<16x32xf32>
    %17 = arith.mulf %16, %16 : vector<16x32xf32>
    %cst_13 = arith.constant dense<0.000000e+00> : vector<16xf32>
    %18 = vector.multi_reduction <add>, %17, %cst_13 [1] : vector<16x32xf32> to vector<16xf32>
    %19 = vector.shape_cast %18 : vector<16xf32> to vector<16x1xf32>
    %cst_14 = arith.constant 0.0322580636 : f32
    %20 = vector.broadcast %cst_14 : f32 to vector<16x1xf32>
    %21 = arith.mulf %19, %20 : vector<16x1xf32>
    %22 = math.sqrt %21 : vector<16x1xf32>
    %cst_15 = arith.constant 9.99999997E-7 : f32
    %23 = vector.broadcast %cst_15 : f32 to vector<16x1xf32>
    %24 = arith.addf %22, %23 : vector<16x1xf32>
    %25 = tpu.reciprocal %24 {approx = true} : vector<16x1xf32> -> vector<16x1xf32>
    %26 = vector.broadcast %25 : vector<16x1xf32> to vector<16x32xf32>
    %27 = arith.mulf %16, %26 : vector<16x32xf32>
    %28 = vector.broadcast %8 : vector<1x32xf32> to vector<16x32xf32>
    %29 = arith.mulf %28, %27 : vector<16x32xf32>
    %30 = vector.broadcast %10 : vector<1x32xf32> to vector<16x32xf32>
    %31 = arith.addf %29, %30 : vector<16x32xf32>
    %c0_16 = arith.constant 0 : index
    %c0_17 = arith.constant 0 : index
    %c0_18 = arith.constant 0 : index
    %32 = vector.load %arg2[%c0_16, %c0_17, %c0_18] : memref<6x32x96xf32, #tpu.memory_space<vmem>>, vector<1x32x96xf32>
    %33 = vector.shape_cast %32 : vector<1x32x96xf32> to vector<32x96xf32>
    %c0_19 = arith.constant 0 : index
    %c0_20 = arith.constant 0 : index
    %c0_21 = arith.constant 0 : index
    %34 = vector.load %arg3[%c0_19, %c0_20, %c0_21] : memref<6x1x96xf32, #tpu.memory_space<vmem>>, vector<1x1x96xf32>
    %35 = vector.shape_cast %34 : vector<1x1x96xf32> to vector<1x96xf32>
    %cst_22 = arith.constant dense<0.000000e+00> : vector<16x96xf32>
    %36 = tpu.matmul %31, %33, %cst_22 {dimension_numbers = #tpu.dot_dimension_numbers<[1], [0], [0], [1], [0, 0, 1, 1], [], []>} : vector<16x32xf32>, vector<32x96xf32>, vector<16x96xf32> -> vector<16x96xf32>
    %37 = vector.broadcast %35 : vector<1x96xf32> to vector<16x96xf32>
    %38 = arith.addf %36, %37 : vector<16x96xf32>
    %39 = vector.extract_strided_slice %38 {offsets = [0, 0], sizes = [16, 8], strides = [1, 1]} : vector<16x96xf32> to vector<16x8xf32>
    %40 = vector.extract_strided_slice %38 {offsets = [0, 32], sizes = [16, 8], strides = [1, 1]} : vector<16x96xf32> to vector<16x8xf32>
    %41 = vector.extract_strided_slice %38 {offsets = [0, 64], sizes = [16, 8], strides = [1, 1]} : vector<16x96xf32> to vector<16x8xf32>
    %cst_23 = arith.constant dense<0.000000e+00> : vector<16x16xf32>
    %42 = tpu.matmul %39, %40, %cst_23 {dimension_numbers = #tpu.dot_dimension_numbers<[1], [1], [0], [0], [0, 0, 1, 0], [], []>} : vector<16x8xf32>, vector<16x8xf32>, vector<16x16xf32> -> vector<16x16xf32>
    %cst_24 = arith.constant 0.353553385 : f32
    %43 = vector.broadcast %cst_24 : f32 to vector<16x16xf32>
    %44 = arith.mulf %42, %43 : vector<16x16xf32>
    %45 = arith.addf %44, %1 : vector<16x16xf32>
    %cst_25 = arith.constant dense<0xFF800000> : vector<16xf32>
    %46 = vector.multi_reduction <maximumf>, %45, %cst_25 [1] : vector<16x16xf32> to vector<16xf32>
    %47 = vector.shape_cast %46 : vector<16xf32> to vector<16x1xf32>
    %48 = vector.broadcast %47 : vector<16x1xf32> to vector<16x16xf32>
    %49 = arith.subf %45, %48 : vector<16x16xf32>
    %50 = math.exp %49 : vector<16x16xf32>
    %cst_26 = arith.constant dense<0.000000e+00> : vector<16xf32>
    %51 = vector.multi_reduction <add>, %50, %cst_26 [1] : vector<16x16xf32> to vector<16xf32>
    %52 = vector.shape_cast %51 : vector<16xf32> to vector<16x1xf32>
    %53 = tpu.reciprocal %52 {approx = true} : vector<16x1xf32> -> vector<16x1xf32>
    %54 = vector.broadcast %53 : vector<16x1xf32> to vector<16x16xf32>
    %55 = arith.mulf %50, %54 : vector<16x16xf32>
    %cst_27 = arith.constant dense<0.000000e+00> : vector<16x8xf32>
    %56 = tpu.matmul %55, %41, %cst_27 {dimension_numbers = #tpu.dot_dimension_numbers<[1], [0], [0], [1], [0, 0, 1, 1], [], []>} : vector<16x16xf32>, vector<16x8xf32>, vector<16x8xf32> -> vector<16x8xf32>
    %57 = vector.extract_strided_slice %38 {offsets = [0, 8], sizes = [16, 8], strides = [1, 1]} : vector<16x96xf32> to vector<16x8xf32>
    %58 = vector.extract_strided_slice %38 {offsets = [0, 40], sizes = [16, 8], strides = [1, 1]} : vector<16x96xf32> to vector<16x8xf32>
    %59 = vector.extract_strided_slice %38 {offsets = [0, 72], sizes = [16, 8], strides = [1, 1]} : vector<16x96xf32> to vector<16x8xf32>
    %cst_28 = arith.constant dense<0.000000e+00> : vector<16x16xf32>
    %60 = tpu.matmul %57, %58, %cst_28 {dimension_numbers = #tpu.dot_dimension_numbers<[1], [1], [0], [0], [0, 0, 1, 0], [], []>} : vector<16x8xf32>, vector<16x8xf32>, vector<16x16xf32> -> vector<16x16xf32>
    %cst_29 = arith.constant 0.353553385 : f32
    %61 = vector.broadcast %cst_29 : f32 to vector<16x16xf32>
    %62 = arith.mulf %60, %61 : vector<16x16xf32>
    %63 = arith.addf %62, %1 : vector<16x16xf32>
    %cst_30 = arith.constant dense<0xFF800000> : vector<16xf32>
    %64 = vector.multi_reduction <maximumf>, %63, %cst_30 [1] : vector<16x16xf32> to vector<16xf32>
    %65 = vector.shape_cast %64 : vector<16xf32> to vector<16x1xf32>
    %66 = vector.broadcast %65 : vector<16x1xf32> to vector<16x16xf32>
    %67 = arith.subf %63, %66 : vector<16x16xf32>
    %68 = math.exp %67 : vector<16x16xf32>
    %cst_31 = arith.constant dense<0.000000e+00> : vector<16xf32>
    %69 = vector.multi_reduction <add>, %68, %cst_31 [1] : vector<16x16xf32> to vector<16xf32>
    %70 = vector.shape_cast %69 : vector<16xf32> to vector<16x1xf32>
    %71 = tpu.reciprocal %70 {approx = true} : vector<16x1xf32> -> vector<16x1xf32>
    %72 = vector.broadcast %71 : vector<16x1xf32> to vector<16x16xf32>
    %73 = arith.mulf %68, %72 : vector<16x16xf32>
    %cst_32 = arith.constant dense<0.000000e+00> : vector<16x8xf32>
    %74 = tpu.matmul %73, %59, %cst_32 {dimension_numbers = #tpu.dot_dimension_numbers<[1], [0], [0], [1], [0, 0, 1, 1], [], []>} : vector<16x16xf32>, vector<16x8xf32>, vector<16x8xf32> -> vector<16x8xf32>
    %75 = vector.extract_strided_slice %38 {offsets = [0, 16], sizes = [16, 8], strides = [1, 1]} : vector<16x96xf32> to vector<16x8xf32>
    %76 = vector.extract_strided_slice %38 {offsets = [0, 48], sizes = [16, 8], strides = [1, 1]} : vector<16x96xf32> to vector<16x8xf32>
    %77 = vector.extract_strided_slice %38 {offsets = [0, 80], sizes = [16, 8], strides = [1, 1]} : vector<16x96xf32> to vector<16x8xf32>
    %cst_33 = arith.constant dense<0.000000e+00> : vector<16x16xf32>
    %78 = tpu.matmul %75, %76, %cst_33 {dimension_numbers = #tpu.dot_dimension_numbers<[1], [1], [0], [0], [0, 0, 1, 0], [], []>} : vector<16x8xf32>, vector<16x8xf32>, vector<16x16xf32> -> vector<16x16xf32>
    %cst_34 = arith.constant 0.353553385 : f32
    %79 = vector.broadcast %cst_34 : f32 to vector<16x16xf32>
    %80 = arith.mulf %78, %79 : vector<16x16xf32>
    %81 = arith.addf %80, %1 : vector<16x16xf32>
    %cst_35 = arith.constant dense<0xFF800000> : vector<16xf32>
    %82 = vector.multi_reduction <maximumf>, %81, %cst_35 [1] : vector<16x16xf32> to vector<16xf32>
    %83 = vector.shape_cast %82 : vector<16xf32> to vector<16x1xf32>
    %84 = vector.broadcast %83 : vector<16x1xf32> to vector<16x16xf32>
    %85 = arith.subf %81, %84 : vector<16x16xf32>
    %86 = math.exp %85 : vector<16x16xf32>
    %cst_36 = arith.constant dense<0.000000e+00> : vector<16xf32>
    %87 = vector.multi_reduction <add>, %86, %cst_36 [1] : vector<16x16xf32> to vector<16xf32>
    %88 = vector.shape_cast %87 : vector<16xf32> to vector<16x1xf32>
    %89 = tpu.reciprocal %88 {approx = true} : vector<16x1xf32> -> vector<16x1xf32>
    %90 = vector.broadcast %89 : vector<16x1xf32> to vector<16x16xf32>
    %91 = arith.mulf %86, %90 : vector<16x16xf32>
    %cst_37 = arith.constant dense<0.000000e+00> : vector<16x8xf32>
    %92 = tpu.matmul %91, %77, %cst_37 {dimension_numbers = #tpu.dot_dimension_numbers<[1], [0], [0], [1], [0, 0, 1, 1], [], []>} : vector<16x16xf32>, vector<16x8xf32>, vector<16x8xf32> -> vector<16x8xf32>
    %93 = vector.extract_strided_slice %38 {offsets = [0, 24], sizes = [16, 8], strides = [1, 1]} : vector<16x96xf32> to vector<16x8xf32>
    %94 = vector.extract_strided_slice %38 {offsets = [0, 56], sizes = [16, 8], strides = [1, 1]} : vector<16x96xf32> to vector<16x8xf32>
    %95 = vector.extract_strided_slice %38 {offsets = [0, 88], sizes = [16, 8], strides = [1, 1]} : vector<16x96xf32> to vector<16x8xf32>
    %cst_38 = arith.constant dense<0.000000e+00> : vector<16x16xf32>
    %96 = tpu.matmul %93, %94, %cst_38 {dimension_numbers = #tpu.dot_dimension_numbers<[1], [1], [0], [0], [0, 0, 1, 0], [], []>} : vector<16x8xf32>, vector<16x8xf32>, vector<16x16xf32> -> vector<16x16xf32>
    %cst_39 = arith.constant 0.353553385 : f32
    %97 = vector.broadcast %cst_39 : f32 to vector<16x16xf32>
    %98 = arith.mulf %96, %97 : vector<16x16xf32>
    %99 = arith.addf %98, %1 : vector<16x16xf32>
    %cst_40 = arith.constant dense<0xFF800000> : vector<16xf32>
    %100 = vector.multi_reduction <maximumf>, %99, %cst_40 [1] : vector<16x16xf32> to vector<16xf32>
    %101 = vector.shape_cast %100 : vector<16xf32> to vector<16x1xf32>
    %102 = vector.broadcast %101 : vector<16x1xf32> to vector<16x16xf32>
    %103 = arith.subf %99, %102 : vector<16x16xf32>
    %104 = math.exp %103 : vector<16x16xf32>
    %cst_41 = arith.constant dense<0.000000e+00> : vector<16xf32>
    %105 = vector.multi_reduction <add>, %104, %cst_41 [1] : vector<16x16xf32> to vector<16xf32>
    %106 = vector.shape_cast %105 : vector<16xf32> to vector<16x1xf32>
    %107 = tpu.reciprocal %106 {approx = true} : vector<16x1xf32> -> vector<16x1xf32>
    %108 = vector.broadcast %107 : vector<16x1xf32> to vector<16x16xf32>
    %109 = arith.mulf %104, %108 : vector<16x16xf32>
    %cst_42 = arith.constant dense<0.000000e+00> : vector<16x8xf32>
    %110 = tpu.matmul %109, %95, %cst_42 {dimension_numbers = #tpu.dot_dimension_numbers<[1], [0], [0], [1], [0, 0, 1, 1], [], []>} : vector<16x16xf32>, vector<16x8xf32>, vector<16x8xf32> -> vector<16x8xf32>
    %111 = tpu.concatenate %56, %74, %92, %110 in 1 : vector<16x8xf32>, vector<16x8xf32>, vector<16x8xf32>, vector<16x8xf32> -> vector<16x32xf32>
    %c0_43 = arith.constant 0 : index
    %c0_44 = arith.constant 0 : index
    %c0_45 = arith.constant 0 : index
    %112 = vector.load %arg4[%c0_43, %c0_44, %c0_45] : memref<6x32x32xf32, #tpu.memory_space<vmem>>, vector<1x32x32xf32>
    %113 = vector.shape_cast %112 : vector<1x32x32xf32> to vector<32x32xf32>
    %cst_46 = arith.constant dense<0.000000e+00> : vector<16x32xf32>
    %114 = tpu.matmul %111, %113, %cst_46 {dimension_numbers = #tpu.dot_dimension_numbers<[1], [0], [0], [1], [0, 0, 1, 1], [], []>} : vector<16x32xf32>, vector<32x32xf32>, vector<16x32xf32> -> vector<16x32xf32>
    %c0_47 = arith.constant 0 : index
    %c0_48 = arith.constant 0 : index
    %c0_49 = arith.constant 0 : index
    %115 = vector.load %arg8[%c0_47, %c0_48, %c0_49] : memref<34x1x32xf32, #tpu.memory_space<vmem>>, vector<1x1x32xf32>
    %116 = vector.shape_cast %115 : vector<1x1x32xf32> to vector<1x32xf32>
    %117 = vector.broadcast %116 : vector<1x32xf32> to vector<16x32xf32>
    %118 = arith.addf %114, %117 : vector<16x32xf32>
    %119 = arith.addf %6, %118 : vector<16x32xf32>
    %c12 = arith.constant 12 : index
    %c0_50 = arith.constant 0 : index
    %c0_51 = arith.constant 0 : index
    %120 = vector.load %arg8[%c12, %c0_50, %c0_51] : memref<34x1x32xf32, #tpu.memory_space<vmem>>, vector<1x1x32xf32>
    %121 = vector.shape_cast %120 : vector<1x1x32xf32> to vector<1x32xf32>
    %c13 = arith.constant 13 : index
    %c0_52 = arith.constant 0 : index
    %c0_53 = arith.constant 0 : index
    %122 = vector.load %arg8[%c13, %c0_52, %c0_53] : memref<34x1x32xf32, #tpu.memory_space<vmem>>, vector<1x1x32xf32>
    %123 = vector.shape_cast %122 : vector<1x1x32xf32> to vector<1x32xf32>
    %cst_54 = arith.constant dense<0.000000e+00> : vector<16xf32>
    %124 = vector.multi_reduction <add>, %119, %cst_54 [1] : vector<16x32xf32> to vector<16xf32>
    %125 = vector.shape_cast %124 : vector<16xf32> to vector<16x1xf32>
    %cst_55 = arith.constant 3.200000e+01 : f32
    %126 = vector.broadcast %cst_55 : f32 to vector<16x1xf32>
    %127 = arith.divf %125, %126 : vector<16x1xf32>
    %128 = vector.broadcast %127 : vector<16x1xf32> to vector<16x32xf32>
    %129 = arith.subf %119, %128 : vector<16x32xf32>
    %130 = arith.mulf %129, %129 : vector<16x32xf32>
    %cst_56 = arith.constant dense<0.000000e+00> : vector<16xf32>
    %131 = vector.multi_reduction <add>, %130, %cst_56 [1] : vector<16x32xf32> to vector<16xf32>
    %132 = vector.shape_cast %131 : vector<16xf32> to vector<16x1xf32>
    %cst_57 = arith.constant 0.0322580636 : f32
    %133 = vector.broadcast %cst_57 : f32 to vector<16x1xf32>
    %134 = arith.mulf %132, %133 : vector<16x1xf32>
    %135 = math.sqrt %134 : vector<16x1xf32>
    %cst_58 = arith.constant 9.99999997E-7 : f32
    %136 = vector.broadcast %cst_58 : f32 to vector<16x1xf32>
    %137 = arith.addf %135, %136 : vector<16x1xf32>
    %138 = tpu.reciprocal %137 {approx = true} : vector<16x1xf32> -> vector<16x1xf32>
    %139 = vector.broadcast %138 : vector<16x1xf32> to vector<16x32xf32>
    %140 = arith.mulf %129, %139 : vector<16x32xf32>
    %141 = vector.broadcast %121 : vector<1x32xf32> to vector<16x32xf32>
    %142 = arith.mulf %141, %140 : vector<16x32xf32>
    %143 = vector.broadcast %123 : vector<1x32xf32> to vector<16x32xf32>
    %144 = arith.addf %142, %143 : vector<16x32xf32>
    %c0_59 = arith.constant 0 : index
    %c0_60 = arith.constant 0 : index
    %c0_61 = arith.constant 0 : index
    %145 = vector.load %arg5[%c0_59, %c0_60, %c0_61] : memref<4x32x64xf32, #tpu.memory_space<vmem>>, vector<1x32x64xf32>
    %146 = vector.shape_cast %145 : vector<1x32x64xf32> to vector<32x64xf32>
    %cst_62 = arith.constant dense<0.000000e+00> : vector<16x64xf32>
    %147 = tpu.matmul %144, %146, %cst_62 {dimension_numbers = #tpu.dot_dimension_numbers<[1], [0], [0], [1], [0, 0, 1, 1], [], []>} : vector<16x32xf32>, vector<32x64xf32>, vector<16x64xf32> -> vector<16x64xf32>
    %c0_63 = arith.constant 0 : index
    %c0_64 = arith.constant 0 : index
    %c0_65 = arith.constant 0 : index
    %148 = vector.load %arg7[%c0_63, %c0_64, %c0_65] : memref<4x1x64xf32, #tpu.memory_space<vmem>>, vector<1x1x64xf32>
    %149 = vector.shape_cast %148 : vector<1x1x64xf32> to vector<1x64xf32>
    %150 = vector.broadcast %149 : vector<1x64xf32> to vector<16x64xf32>
    %151 = arith.addf %147, %150 : vector<16x64xf32>
    %cst_66 = arith.constant 0.000000e+00 : f32
    %152 = vector.broadcast %cst_66 : f32 to vector<16x64xf32>
    %153 = arith.maximumf %151, %152 : vector<16x64xf32>
    %c0_67 = arith.constant 0 : index
    %c0_68 = arith.constant 0 : index
    %c0_69 = arith.constant 0 : index
    %154 = vector.load %arg6[%c0_67, %c0_68, %c0_69] : memref<4x64x32xf32, #tpu.memory_space<vmem>>, vector<1x64x32xf32>
    %155 = vector.shape_cast %154 : vector<1x64x32xf32> to vector<64x32xf32>
    %cst_70 = arith.constant dense<0.000000e+00> : vector<16x32xf32>
    %156 = tpu.matmul %153, %155, %cst_70 {dimension_numbers = #tpu.dot_dimension_numbers<[1], [0], [0], [1], [0, 0, 1, 1], [], []>} : vector<16x64xf32>, vector<64x32xf32>, vector<16x32xf32> -> vector<16x32xf32>
    %c6 = arith.constant 6 : index
    %c0_71 = arith.constant 0 : index
    %c0_72 = arith.constant 0 : index
    %157 = vector.load %arg8[%c6, %c0_71, %c0_72] : memref<34x1x32xf32, #tpu.memory_space<vmem>>, vector<1x1x32xf32>
    %158 = vector.shape_cast %157 : vector<1x1x32xf32> to vector<1x32xf32>
    %159 = vector.broadcast %158 : vector<1x32xf32> to vector<16x32xf32>
    %160 = arith.addf %156, %159 : vector<16x32xf32>
    %161 = arith.addf %119, %160 : vector<16x32xf32>
    %c14 = arith.constant 14 : index
    %c0_73 = arith.constant 0 : index
    %c0_74 = arith.constant 0 : index
    %162 = vector.load %arg8[%c14, %c0_73, %c0_74] : memref<34x1x32xf32, #tpu.memory_space<vmem>>, vector<1x1x32xf32>
    %163 = vector.shape_cast %162 : vector<1x1x32xf32> to vector<1x32xf32>
    %c15 = arith.constant 15 : index
    %c0_75 = arith.constant 0 : index
    %c0_76 = arith.constant 0 : index
    %164 = vector.load %arg8[%c15, %c0_75, %c0_76] : memref<34x1x32xf32, #tpu.memory_space<vmem>>, vector<1x1x32xf32>
    %165 = vector.shape_cast %164 : vector<1x1x32xf32> to vector<1x32xf32>
    %cst_77 = arith.constant dense<0.000000e+00> : vector<16xf32>
    %166 = vector.multi_reduction <add>, %161, %cst_77 [1] : vector<16x32xf32> to vector<16xf32>
    %167 = vector.shape_cast %166 : vector<16xf32> to vector<16x1xf32>
    %cst_78 = arith.constant 3.200000e+01 : f32
    %168 = vector.broadcast %cst_78 : f32 to vector<16x1xf32>
    %169 = arith.divf %167, %168 : vector<16x1xf32>
    %170 = vector.broadcast %169 : vector<16x1xf32> to vector<16x32xf32>
    %171 = arith.subf %161, %170 : vector<16x32xf32>
    %172 = arith.mulf %171, %171 : vector<16x32xf32>
    %cst_79 = arith.constant dense<0.000000e+00> : vector<16xf32>
    %173 = vector.multi_reduction <add>, %172, %cst_79 [1] : vector<16x32xf32> to vector<16xf32>
    %174 = vector.shape_cast %173 : vector<16xf32> to vector<16x1xf32>
    %cst_80 = arith.constant 0.0322580636 : f32
    %175 = vector.broadcast %cst_80 : f32 to vector<16x1xf32>
    %176 = arith.mulf %174, %175 : vector<16x1xf32>
    %177 = math.sqrt %176 : vector<16x1xf32>
    %cst_81 = arith.constant 9.99999997E-7 : f32
    %178 = vector.broadcast %cst_81 : f32 to vector<16x1xf32>
    %179 = arith.addf %177, %178 : vector<16x1xf32>
    %180 = tpu.reciprocal %179 {approx = true} : vector<16x1xf32> -> vector<16x1xf32>
    %181 = vector.broadcast %180 : vector<16x1xf32> to vector<16x32xf32>
    %182 = arith.mulf %171, %181 : vector<16x32xf32>
    %183 = vector.broadcast %163 : vector<1x32xf32> to vector<16x32xf32>
    %184 = arith.mulf %183, %182 : vector<16x32xf32>
    %185 = vector.broadcast %165 : vector<1x32xf32> to vector<16x32xf32>
    %186 = arith.addf %184, %185 : vector<16x32xf32>
    %c1_82 = arith.constant 1 : index
    %c0_83 = arith.constant 0 : index
    %c0_84 = arith.constant 0 : index
    %187 = vector.load %arg2[%c1_82, %c0_83, %c0_84] : memref<6x32x96xf32, #tpu.memory_space<vmem>>, vector<1x32x96xf32>
    %188 = vector.shape_cast %187 : vector<1x32x96xf32> to vector<32x96xf32>
    %c1_85 = arith.constant 1 : index
    %c0_86 = arith.constant 0 : index
    %c0_87 = arith.constant 0 : index
    %189 = vector.load %arg3[%c1_85, %c0_86, %c0_87] : memref<6x1x96xf32, #tpu.memory_space<vmem>>, vector<1x1x96xf32>
    %190 = vector.shape_cast %189 : vector<1x1x96xf32> to vector<1x96xf32>
    %cst_88 = arith.constant dense<0.000000e+00> : vector<16x96xf32>
    %191 = tpu.matmul %186, %188, %cst_88 {dimension_numbers = #tpu.dot_dimension_numbers<[1], [0], [0], [1], [0, 0, 1, 1], [], []>} : vector<16x32xf32>, vector<32x96xf32>, vector<16x96xf32> -> vector<16x96xf32>
    %192 = vector.broadcast %190 : vector<1x96xf32> to vector<16x96xf32>
    %193 = arith.addf %191, %192 : vector<16x96xf32>
    %194 = vector.extract_strided_slice %193 {offsets = [0, 0], sizes = [16, 8], strides = [1, 1]} : vector<16x96xf32> to vector<16x8xf32>
    %195 = vector.extract_strided_slice %193 {offsets = [0, 32], sizes = [16, 8], strides = [1, 1]} : vector<16x96xf32> to vector<16x8xf32>
    %196 = vector.extract_strided_slice %193 {offsets = [0, 64], sizes = [16, 8], strides = [1, 1]} : vector<16x96xf32> to vector<16x8xf32>
    %cst_89 = arith.constant dense<0.000000e+00> : vector<16x16xf32>
    %197 = tpu.matmul %194, %195, %cst_89 {dimension_numbers = #tpu.dot_dimension_numbers<[1], [1], [0], [0], [0, 0, 1, 0], [], []>} : vector<16x8xf32>, vector<16x8xf32>, vector<16x16xf32> -> vector<16x16xf32>
    %cst_90 = arith.constant 0.353553385 : f32
    %198 = vector.broadcast %cst_90 : f32 to vector<16x16xf32>
    %199 = arith.mulf %197, %198 : vector<16x16xf32>
    %200 = arith.addf %199, %1 : vector<16x16xf32>
    %cst_91 = arith.constant dense<0xFF800000> : vector<16xf32>
    %201 = vector.multi_reduction <maximumf>, %200, %cst_91 [1] : vector<16x16xf32> to vector<16xf32>
    %202 = vector.shape_cast %201 : vector<16xf32> to vector<16x1xf32>
    %203 = vector.broadcast %202 : vector<16x1xf32> to vector<16x16xf32>
    %204 = arith.subf %200, %203 : vector<16x16xf32>
    %205 = math.exp %204 : vector<16x16xf32>
    %cst_92 = arith.constant dense<0.000000e+00> : vector<16xf32>
    %206 = vector.multi_reduction <add>, %205, %cst_92 [1] : vector<16x16xf32> to vector<16xf32>
    %207 = vector.shape_cast %206 : vector<16xf32> to vector<16x1xf32>
    %208 = tpu.reciprocal %207 {approx = true} : vector<16x1xf32> -> vector<16x1xf32>
    %209 = vector.broadcast %208 : vector<16x1xf32> to vector<16x16xf32>
    %210 = arith.mulf %205, %209 : vector<16x16xf32>
    %cst_93 = arith.constant dense<0.000000e+00> : vector<16x8xf32>
    %211 = tpu.matmul %210, %196, %cst_93 {dimension_numbers = #tpu.dot_dimension_numbers<[1], [0], [0], [1], [0, 0, 1, 1], [], []>} : vector<16x16xf32>, vector<16x8xf32>, vector<16x8xf32> -> vector<16x8xf32>
    %212 = vector.extract_strided_slice %193 {offsets = [0, 8], sizes = [16, 8], strides = [1, 1]} : vector<16x96xf32> to vector<16x8xf32>
    %213 = vector.extract_strided_slice %193 {offsets = [0, 40], sizes = [16, 8], strides = [1, 1]} : vector<16x96xf32> to vector<16x8xf32>
    %214 = vector.extract_strided_slice %193 {offsets = [0, 72], sizes = [16, 8], strides = [1, 1]} : vector<16x96xf32> to vector<16x8xf32>
    %cst_94 = arith.constant dense<0.000000e+00> : vector<16x16xf32>
    %215 = tpu.matmul %212, %213, %cst_94 {dimension_numbers = #tpu.dot_dimension_numbers<[1], [1], [0], [0], [0, 0, 1, 0], [], []>} : vector<16x8xf32>, vector<16x8xf32>, vector<16x16xf32> -> vector<16x16xf32>
    %cst_95 = arith.constant 0.353553385 : f32
    %216 = vector.broadcast %cst_95 : f32 to vector<16x16xf32>
    %217 = arith.mulf %215, %216 : vector<16x16xf32>
    %218 = arith.addf %217, %1 : vector<16x16xf32>
    %cst_96 = arith.constant dense<0xFF800000> : vector<16xf32>
    %219 = vector.multi_reduction <maximumf>, %218, %cst_96 [1] : vector<16x16xf32> to vector<16xf32>
    %220 = vector.shape_cast %219 : vector<16xf32> to vector<16x1xf32>
    %221 = vector.broadcast %220 : vector<16x1xf32> to vector<16x16xf32>
    %222 = arith.subf %218, %221 : vector<16x16xf32>
    %223 = math.exp %222 : vector<16x16xf32>
    %cst_97 = arith.constant dense<0.000000e+00> : vector<16xf32>
    %224 = vector.multi_reduction <add>, %223, %cst_97 [1] : vector<16x16xf32> to vector<16xf32>
    %225 = vector.shape_cast %224 : vector<16xf32> to vector<16x1xf32>
    %226 = tpu.reciprocal %225 {approx = true} : vector<16x1xf32> -> vector<16x1xf32>
    %227 = vector.broadcast %226 : vector<16x1xf32> to vector<16x16xf32>
    %228 = arith.mulf %223, %227 : vector<16x16xf32>
    %cst_98 = arith.constant dense<0.000000e+00> : vector<16x8xf32>
    %229 = tpu.matmul %228, %214, %cst_98 {dimension_numbers = #tpu.dot_dimension_numbers<[1], [0], [0], [1], [0, 0, 1, 1], [], []>} : vector<16x16xf32>, vector<16x8xf32>, vector<16x8xf32> -> vector<16x8xf32>
    %230 = vector.extract_strided_slice %193 {offsets = [0, 16], sizes = [16, 8], strides = [1, 1]} : vector<16x96xf32> to vector<16x8xf32>
    %231 = vector.extract_strided_slice %193 {offsets = [0, 48], sizes = [16, 8], strides = [1, 1]} : vector<16x96xf32> to vector<16x8xf32>
    %232 = vector.extract_strided_slice %193 {offsets = [0, 80], sizes = [16, 8], strides = [1, 1]} : vector<16x96xf32> to vector<16x8xf32>
    %cst_99 = arith.constant dense<0.000000e+00> : vector<16x16xf32>
    %233 = tpu.matmul %230, %231, %cst_99 {dimension_numbers = #tpu.dot_dimension_numbers<[1], [1], [0], [0], [0, 0, 1, 0], [], []>} : vector<16x8xf32>, vector<16x8xf32>, vector<16x16xf32> -> vector<16x16xf32>
    %cst_100 = arith.constant 0.353553385 : f32
    %234 = vector.broadcast %cst_100 : f32 to vector<16x16xf32>
    %235 = arith.mulf %233, %234 : vector<16x16xf32>
    %236 = arith.addf %235, %1 : vector<16x16xf32>
    %cst_101 = arith.constant dense<0xFF800000> : vector<16xf32>
    %237 = vector.multi_reduction <maximumf>, %236, %cst_101 [1] : vector<16x16xf32> to vector<16xf32>
    %238 = vector.shape_cast %237 : vector<16xf32> to vector<16x1xf32>
    %239 = vector.broadcast %238 : vector<16x1xf32> to vector<16x16xf32>
    %240 = arith.subf %236, %239 : vector<16x16xf32>
    %241 = math.exp %240 : vector<16x16xf32>
    %cst_102 = arith.constant dense<0.000000e+00> : vector<16xf32>
    %242 = vector.multi_reduction <add>, %241, %cst_102 [1] : vector<16x16xf32> to vector<16xf32>
    %243 = vector.shape_cast %242 : vector<16xf32> to vector<16x1xf32>
    %244 = tpu.reciprocal %243 {approx = true} : vector<16x1xf32> -> vector<16x1xf32>
    %245 = vector.broadcast %244 : vector<16x1xf32> to vector<16x16xf32>
    %246 = arith.mulf %241, %245 : vector<16x16xf32>
    %cst_103 = arith.constant dense<0.000000e+00> : vector<16x8xf32>
    %247 = tpu.matmul %246, %232, %cst_103 {dimension_numbers = #tpu.dot_dimension_numbers<[1], [0], [0], [1], [0, 0, 1, 1], [], []>} : vector<16x16xf32>, vector<16x8xf32>, vector<16x8xf32> -> vector<16x8xf32>
    %248 = vector.extract_strided_slice %193 {offsets = [0, 24], sizes = [16, 8], strides = [1, 1]} : vector<16x96xf32> to vector<16x8xf32>
    %249 = vector.extract_strided_slice %193 {offsets = [0, 56], sizes = [16, 8], strides = [1, 1]} : vector<16x96xf32> to vector<16x8xf32>
    %250 = vector.extract_strided_slice %193 {offsets = [0, 88], sizes = [16, 8], strides = [1, 1]} : vector<16x96xf32> to vector<16x8xf32>
    %cst_104 = arith.constant dense<0.000000e+00> : vector<16x16xf32>
    %251 = tpu.matmul %248, %249, %cst_104 {dimension_numbers = #tpu.dot_dimension_numbers<[1], [1], [0], [0], [0, 0, 1, 0], [], []>} : vector<16x8xf32>, vector<16x8xf32>, vector<16x16xf32> -> vector<16x16xf32>
    %cst_105 = arith.constant 0.353553385 : f32
    %252 = vector.broadcast %cst_105 : f32 to vector<16x16xf32>
    %253 = arith.mulf %251, %252 : vector<16x16xf32>
    %254 = arith.addf %253, %1 : vector<16x16xf32>
    %cst_106 = arith.constant dense<0xFF800000> : vector<16xf32>
    %255 = vector.multi_reduction <maximumf>, %254, %cst_106 [1] : vector<16x16xf32> to vector<16xf32>
    %256 = vector.shape_cast %255 : vector<16xf32> to vector<16x1xf32>
    %257 = vector.broadcast %256 : vector<16x1xf32> to vector<16x16xf32>
    %258 = arith.subf %254, %257 : vector<16x16xf32>
    %259 = math.exp %258 : vector<16x16xf32>
    %cst_107 = arith.constant dense<0.000000e+00> : vector<16xf32>
    %260 = vector.multi_reduction <add>, %259, %cst_107 [1] : vector<16x16xf32> to vector<16xf32>
    %261 = vector.shape_cast %260 : vector<16xf32> to vector<16x1xf32>
    %262 = tpu.reciprocal %261 {approx = true} : vector<16x1xf32> -> vector<16x1xf32>
    %263 = vector.broadcast %262 : vector<16x1xf32> to vector<16x16xf32>
    %264 = arith.mulf %259, %263 : vector<16x16xf32>
    %cst_108 = arith.constant dense<0.000000e+00> : vector<16x8xf32>
    %265 = tpu.matmul %264, %250, %cst_108 {dimension_numbers = #tpu.dot_dimension_numbers<[1], [0], [0], [1], [0, 0, 1, 1], [], []>} : vector<16x16xf32>, vector<16x8xf32>, vector<16x8xf32> -> vector<16x8xf32>
    %266 = tpu.concatenate %211, %229, %247, %265 in 1 : vector<16x8xf32>, vector<16x8xf32>, vector<16x8xf32>, vector<16x8xf32> -> vector<16x32xf32>
    %c1_109 = arith.constant 1 : index
    %c0_110 = arith.constant 0 : index
    %c0_111 = arith.constant 0 : index
    %267 = vector.load %arg4[%c1_109, %c0_110, %c0_111] : memref<6x32x32xf32, #tpu.memory_space<vmem>>, vector<1x32x32xf32>
    %268 = vector.shape_cast %267 : vector<1x32x32xf32> to vector<32x32xf32>
    %cst_112 = arith.constant dense<0.000000e+00> : vector<16x32xf32>
    %269 = tpu.matmul %266, %268, %cst_112 {dimension_numbers = #tpu.dot_dimension_numbers<[1], [0], [0], [1], [0, 0, 1, 1], [], []>} : vector<16x32xf32>, vector<32x32xf32>, vector<16x32xf32> -> vector<16x32xf32>
    %c1_113 = arith.constant 1 : index
    %c0_114 = arith.constant 0 : index
    %c0_115 = arith.constant 0 : index
    %270 = vector.load %arg8[%c1_113, %c0_114, %c0_115] : memref<34x1x32xf32, #tpu.memory_space<vmem>>, vector<1x1x32xf32>
    %271 = vector.shape_cast %270 : vector<1x1x32xf32> to vector<1x32xf32>
    %272 = vector.broadcast %271 : vector<1x32xf32> to vector<16x32xf32>
    %273 = arith.addf %269, %272 : vector<16x32xf32>
    %274 = arith.addf %161, %273 : vector<16x32xf32>
    %c16 = arith.constant 16 : index
    %c0_116 = arith.constant 0 : index
    %c0_117 = arith.constant 0 : index
    %275 = vector.load %arg8[%c16, %c0_116, %c0_117] : memref<34x1x32xf32, #tpu.memory_space<vmem>>, vector<1x1x32xf32>
    %276 = vector.shape_cast %275 : vector<1x1x32xf32> to vector<1x32xf32>
    %c17 = arith.constant 17 : index
    %c0_118 = arith.constant 0 : index
    %c0_119 = arith.constant 0 : index
    %277 = vector.load %arg8[%c17, %c0_118, %c0_119] : memref<34x1x32xf32, #tpu.memory_space<vmem>>, vector<1x1x32xf32>
    %278 = vector.shape_cast %277 : vector<1x1x32xf32> to vector<1x32xf32>
    %cst_120 = arith.constant dense<0.000000e+00> : vector<16xf32>
    %279 = vector.multi_reduction <add>, %274, %cst_120 [1] : vector<16x32xf32> to vector<16xf32>
    %280 = vector.shape_cast %279 : vector<16xf32> to vector<16x1xf32>
    %cst_121 = arith.constant 3.200000e+01 : f32
    %281 = vector.broadcast %cst_121 : f32 to vector<16x1xf32>
    %282 = arith.divf %280, %281 : vector<16x1xf32>
    %283 = vector.broadcast %282 : vector<16x1xf32> to vector<16x32xf32>
    %284 = arith.subf %274, %283 : vector<16x32xf32>
    %285 = arith.mulf %284, %284 : vector<16x32xf32>
    %cst_122 = arith.constant dense<0.000000e+00> : vector<16xf32>
    %286 = vector.multi_reduction <add>, %285, %cst_122 [1] : vector<16x32xf32> to vector<16xf32>
    %287 = vector.shape_cast %286 : vector<16xf32> to vector<16x1xf32>
    %cst_123 = arith.constant 0.0322580636 : f32
    %288 = vector.broadcast %cst_123 : f32 to vector<16x1xf32>
    %289 = arith.mulf %287, %288 : vector<16x1xf32>
    %290 = math.sqrt %289 : vector<16x1xf32>
    %cst_124 = arith.constant 9.99999997E-7 : f32
    %291 = vector.broadcast %cst_124 : f32 to vector<16x1xf32>
    %292 = arith.addf %290, %291 : vector<16x1xf32>
    %293 = tpu.reciprocal %292 {approx = true} : vector<16x1xf32> -> vector<16x1xf32>
    %294 = vector.broadcast %293 : vector<16x1xf32> to vector<16x32xf32>
    %295 = arith.mulf %284, %294 : vector<16x32xf32>
    %296 = vector.broadcast %276 : vector<1x32xf32> to vector<16x32xf32>
    %297 = arith.mulf %296, %295 : vector<16x32xf32>
    %298 = vector.broadcast %278 : vector<1x32xf32> to vector<16x32xf32>
    %299 = arith.addf %297, %298 : vector<16x32xf32>
    %c1_125 = arith.constant 1 : index
    %c0_126 = arith.constant 0 : index
    %c0_127 = arith.constant 0 : index
    %300 = vector.load %arg5[%c1_125, %c0_126, %c0_127] : memref<4x32x64xf32, #tpu.memory_space<vmem>>, vector<1x32x64xf32>
    %301 = vector.shape_cast %300 : vector<1x32x64xf32> to vector<32x64xf32>
    %cst_128 = arith.constant dense<0.000000e+00> : vector<16x64xf32>
    %302 = tpu.matmul %299, %301, %cst_128 {dimension_numbers = #tpu.dot_dimension_numbers<[1], [0], [0], [1], [0, 0, 1, 1], [], []>} : vector<16x32xf32>, vector<32x64xf32>, vector<16x64xf32> -> vector<16x64xf32>
    %c1_129 = arith.constant 1 : index
    %c0_130 = arith.constant 0 : index
    %c0_131 = arith.constant 0 : index
    %303 = vector.load %arg7[%c1_129, %c0_130, %c0_131] : memref<4x1x64xf32, #tpu.memory_space<vmem>>, vector<1x1x64xf32>
    %304 = vector.shape_cast %303 : vector<1x1x64xf32> to vector<1x64xf32>
    %305 = vector.broadcast %304 : vector<1x64xf32> to vector<16x64xf32>
    %306 = arith.addf %302, %305 : vector<16x64xf32>
    %cst_132 = arith.constant 0.000000e+00 : f32
    %307 = vector.broadcast %cst_132 : f32 to vector<16x64xf32>
    %308 = arith.maximumf %306, %307 : vector<16x64xf32>
    %c1_133 = arith.constant 1 : index
    %c0_134 = arith.constant 0 : index
    %c0_135 = arith.constant 0 : index
    %309 = vector.load %arg6[%c1_133, %c0_134, %c0_135] : memref<4x64x32xf32, #tpu.memory_space<vmem>>, vector<1x64x32xf32>
    %310 = vector.shape_cast %309 : vector<1x64x32xf32> to vector<64x32xf32>
    %cst_136 = arith.constant dense<0.000000e+00> : vector<16x32xf32>
    %311 = tpu.matmul %308, %310, %cst_136 {dimension_numbers = #tpu.dot_dimension_numbers<[1], [0], [0], [1], [0, 0, 1, 1], [], []>} : vector<16x64xf32>, vector<64x32xf32>, vector<16x32xf32> -> vector<16x32xf32>
    %c7 = arith.constant 7 : index
    %c0_137 = arith.constant 0 : index
    %c0_138 = arith.constant 0 : index
    %312 = vector.load %arg8[%c7, %c0_137, %c0_138] : memref<34x1x32xf32, #tpu.memory_space<vmem>>, vector<1x1x32xf32>
    %313 = vector.shape_cast %312 : vector<1x1x32xf32> to vector<1x32xf32>
    %314 = vector.broadcast %313 : vector<1x32xf32> to vector<16x32xf32>
    %315 = arith.addf %311, %314 : vector<16x32xf32>
    %316 = arith.addf %274, %315 : vector<16x32xf32>
    %c18 = arith.constant 18 : index
    %c0_139 = arith.constant 0 : index
    %c0_140 = arith.constant 0 : index
    %317 = vector.load %arg8[%c18, %c0_139, %c0_140] : memref<34x1x32xf32, #tpu.memory_space<vmem>>, vector<1x1x32xf32>
    %318 = vector.shape_cast %317 : vector<1x1x32xf32> to vector<1x32xf32>
    %c19 = arith.constant 19 : index
    %c0_141 = arith.constant 0 : index
    %c0_142 = arith.constant 0 : index
    %319 = vector.load %arg8[%c19, %c0_141, %c0_142] : memref<34x1x32xf32, #tpu.memory_space<vmem>>, vector<1x1x32xf32>
    %320 = vector.shape_cast %319 : vector<1x1x32xf32> to vector<1x32xf32>
    %cst_143 = arith.constant dense<0.000000e+00> : vector<16xf32>
    %321 = vector.multi_reduction <add>, %316, %cst_143 [1] : vector<16x32xf32> to vector<16xf32>
    %322 = vector.shape_cast %321 : vector<16xf32> to vector<16x1xf32>
    %cst_144 = arith.constant 3.200000e+01 : f32
    %323 = vector.broadcast %cst_144 : f32 to vector<16x1xf32>
    %324 = arith.divf %322, %323 : vector<16x1xf32>
    %325 = vector.broadcast %324 : vector<16x1xf32> to vector<16x32xf32>
    %326 = arith.subf %316, %325 : vector<16x32xf32>
    %327 = arith.mulf %326, %326 : vector<16x32xf32>
    %cst_145 = arith.constant dense<0.000000e+00> : vector<16xf32>
    %328 = vector.multi_reduction <add>, %327, %cst_145 [1] : vector<16x32xf32> to vector<16xf32>
    %329 = vector.shape_cast %328 : vector<16xf32> to vector<16x1xf32>
    %cst_146 = arith.constant 0.0322580636 : f32
    %330 = vector.broadcast %cst_146 : f32 to vector<16x1xf32>
    %331 = arith.mulf %329, %330 : vector<16x1xf32>
    %332 = math.sqrt %331 : vector<16x1xf32>
    %cst_147 = arith.constant 9.99999997E-7 : f32
    %333 = vector.broadcast %cst_147 : f32 to vector<16x1xf32>
    %334 = arith.addf %332, %333 : vector<16x1xf32>
    %335 = tpu.reciprocal %334 {approx = true} : vector<16x1xf32> -> vector<16x1xf32>
    %336 = vector.broadcast %335 : vector<16x1xf32> to vector<16x32xf32>
    %337 = arith.mulf %326, %336 : vector<16x32xf32>
    %338 = vector.broadcast %318 : vector<1x32xf32> to vector<16x32xf32>
    %339 = arith.mulf %338, %337 : vector<16x32xf32>
    %340 = vector.broadcast %320 : vector<1x32xf32> to vector<16x32xf32>
    %341 = arith.addf %339, %340 : vector<16x32xf32>
    %c16_148 = arith.constant 16 : index
    %c0_149 = arith.constant 0 : index
    %342 = vector.load %arg0[%c16_148, %c0_149] : memref<32x32xf32, #tpu.memory_space<vmem>>, vector<16x32xf32>
    %c20 = arith.constant 20 : index
    %c0_150 = arith.constant 0 : index
    %c0_151 = arith.constant 0 : index
    %343 = vector.load %arg8[%c20, %c0_150, %c0_151] : memref<34x1x32xf32, #tpu.memory_space<vmem>>, vector<1x1x32xf32>
    %344 = vector.shape_cast %343 : vector<1x1x32xf32> to vector<1x32xf32>
    %c21 = arith.constant 21 : index
    %c0_152 = arith.constant 0 : index
    %c0_153 = arith.constant 0 : index
    %345 = vector.load %arg8[%c21, %c0_152, %c0_153] : memref<34x1x32xf32, #tpu.memory_space<vmem>>, vector<1x1x32xf32>
    %346 = vector.shape_cast %345 : vector<1x1x32xf32> to vector<1x32xf32>
    %cst_154 = arith.constant dense<0.000000e+00> : vector<16xf32>
    %347 = vector.multi_reduction <add>, %342, %cst_154 [1] : vector<16x32xf32> to vector<16xf32>
    %348 = vector.shape_cast %347 : vector<16xf32> to vector<16x1xf32>
    %cst_155 = arith.constant 3.200000e+01 : f32
    %349 = vector.broadcast %cst_155 : f32 to vector<16x1xf32>
    %350 = arith.divf %348, %349 : vector<16x1xf32>
    %351 = vector.broadcast %350 : vector<16x1xf32> to vector<16x32xf32>
    %352 = arith.subf %342, %351 : vector<16x32xf32>
    %353 = arith.mulf %352, %352 : vector<16x32xf32>
    %cst_156 = arith.constant dense<0.000000e+00> : vector<16xf32>
    %354 = vector.multi_reduction <add>, %353, %cst_156 [1] : vector<16x32xf32> to vector<16xf32>
    %355 = vector.shape_cast %354 : vector<16xf32> to vector<16x1xf32>
    %cst_157 = arith.constant 0.0322580636 : f32
    %356 = vector.broadcast %cst_157 : f32 to vector<16x1xf32>
    %357 = arith.mulf %355, %356 : vector<16x1xf32>
    %358 = math.sqrt %357 : vector<16x1xf32>
    %cst_158 = arith.constant 9.99999997E-7 : f32
    %359 = vector.broadcast %cst_158 : f32 to vector<16x1xf32>
    %360 = arith.addf %358, %359 : vector<16x1xf32>
    %361 = tpu.reciprocal %360 {approx = true} : vector<16x1xf32> -> vector<16x1xf32>
    %362 = vector.broadcast %361 : vector<16x1xf32> to vector<16x32xf32>
    %363 = arith.mulf %352, %362 : vector<16x32xf32>
    %364 = vector.broadcast %344 : vector<1x32xf32> to vector<16x32xf32>
    %365 = arith.mulf %364, %363 : vector<16x32xf32>
    %366 = vector.broadcast %346 : vector<1x32xf32> to vector<16x32xf32>
    %367 = arith.addf %365, %366 : vector<16x32xf32>
    %c2_159 = arith.constant 2 : index
    %c0_160 = arith.constant 0 : index
    %c0_161 = arith.constant 0 : index
    %368 = vector.load %arg2[%c2_159, %c0_160, %c0_161] : memref<6x32x96xf32, #tpu.memory_space<vmem>>, vector<1x32x96xf32>
    %369 = vector.shape_cast %368 : vector<1x32x96xf32> to vector<32x96xf32>
    %c2_162 = arith.constant 2 : index
    %c0_163 = arith.constant 0 : index
    %c0_164 = arith.constant 0 : index
    %370 = vector.load %arg3[%c2_162, %c0_163, %c0_164] : memref<6x1x96xf32, #tpu.memory_space<vmem>>, vector<1x1x96xf32>
    %371 = vector.shape_cast %370 : vector<1x1x96xf32> to vector<1x96xf32>
    %cst_165 = arith.constant dense<0.000000e+00> : vector<16x96xf32>
    %372 = tpu.matmul %367, %369, %cst_165 {dimension_numbers = #tpu.dot_dimension_numbers<[1], [0], [0], [1], [0, 0, 1, 1], [], []>} : vector<16x32xf32>, vector<32x96xf32>, vector<16x96xf32> -> vector<16x96xf32>
    %373 = vector.broadcast %371 : vector<1x96xf32> to vector<16x96xf32>
    %374 = arith.addf %372, %373 : vector<16x96xf32>
    %375 = vector.extract_strided_slice %374 {offsets = [0, 0], sizes = [16, 8], strides = [1, 1]} : vector<16x96xf32> to vector<16x8xf32>
    %376 = vector.extract_strided_slice %374 {offsets = [0, 32], sizes = [16, 8], strides = [1, 1]} : vector<16x96xf32> to vector<16x8xf32>
    %377 = vector.extract_strided_slice %374 {offsets = [0, 64], sizes = [16, 8], strides = [1, 1]} : vector<16x96xf32> to vector<16x8xf32>
    %cst_166 = arith.constant dense<0.000000e+00> : vector<16x16xf32>
    %378 = tpu.matmul %375, %376, %cst_166 {dimension_numbers = #tpu.dot_dimension_numbers<[1], [1], [0], [0], [0, 0, 1, 0], [], []>} : vector<16x8xf32>, vector<16x8xf32>, vector<16x16xf32> -> vector<16x16xf32>
    %cst_167 = arith.constant 0.353553385 : f32
    %379 = vector.broadcast %cst_167 : f32 to vector<16x16xf32>
    %380 = arith.mulf %378, %379 : vector<16x16xf32>
    %381 = arith.addf %380, %3 : vector<16x16xf32>
    %cst_168 = arith.constant dense<0xFF800000> : vector<16xf32>
    %382 = vector.multi_reduction <maximumf>, %381, %cst_168 [1] : vector<16x16xf32> to vector<16xf32>
    %383 = vector.shape_cast %382 : vector<16xf32> to vector<16x1xf32>
    %384 = vector.broadcast %383 : vector<16x1xf32> to vector<16x16xf32>
    %385 = arith.subf %381, %384 : vector<16x16xf32>
    %386 = math.exp %385 : vector<16x16xf32>
    %cst_169 = arith.constant dense<0.000000e+00> : vector<16xf32>
    %387 = vector.multi_reduction <add>, %386, %cst_169 [1] : vector<16x16xf32> to vector<16xf32>
    %388 = vector.shape_cast %387 : vector<16xf32> to vector<16x1xf32>
    %389 = tpu.reciprocal %388 {approx = true} : vector<16x1xf32> -> vector<16x1xf32>
    %390 = vector.broadcast %389 : vector<16x1xf32> to vector<16x16xf32>
    %391 = arith.mulf %386, %390 : vector<16x16xf32>
    %cst_170 = arith.constant dense<0.000000e+00> : vector<16x8xf32>
    %392 = tpu.matmul %391, %377, %cst_170 {dimension_numbers = #tpu.dot_dimension_numbers<[1], [0], [0], [1], [0, 0, 1, 1], [], []>} : vector<16x16xf32>, vector<16x8xf32>, vector<16x8xf32> -> vector<16x8xf32>
    %393 = vector.extract_strided_slice %374 {offsets = [0, 8], sizes = [16, 8], strides = [1, 1]} : vector<16x96xf32> to vector<16x8xf32>
    %394 = vector.extract_strided_slice %374 {offsets = [0, 40], sizes = [16, 8], strides = [1, 1]} : vector<16x96xf32> to vector<16x8xf32>
    %395 = vector.extract_strided_slice %374 {offsets = [0, 72], sizes = [16, 8], strides = [1, 1]} : vector<16x96xf32> to vector<16x8xf32>
    %cst_171 = arith.constant dense<0.000000e+00> : vector<16x16xf32>
    %396 = tpu.matmul %393, %394, %cst_171 {dimension_numbers = #tpu.dot_dimension_numbers<[1], [1], [0], [0], [0, 0, 1, 0], [], []>} : vector<16x8xf32>, vector<16x8xf32>, vector<16x16xf32> -> vector<16x16xf32>
    %cst_172 = arith.constant 0.353553385 : f32
    %397 = vector.broadcast %cst_172 : f32 to vector<16x16xf32>
    %398 = arith.mulf %396, %397 : vector<16x16xf32>
    %399 = arith.addf %398, %3 : vector<16x16xf32>
    %cst_173 = arith.constant dense<0xFF800000> : vector<16xf32>
    %400 = vector.multi_reduction <maximumf>, %399, %cst_173 [1] : vector<16x16xf32> to vector<16xf32>
    %401 = vector.shape_cast %400 : vector<16xf32> to vector<16x1xf32>
    %402 = vector.broadcast %401 : vector<16x1xf32> to vector<16x16xf32>
    %403 = arith.subf %399, %402 : vector<16x16xf32>
    %404 = math.exp %403 : vector<16x16xf32>
    %cst_174 = arith.constant dense<0.000000e+00> : vector<16xf32>
    %405 = vector.multi_reduction <add>, %404, %cst_174 [1] : vector<16x16xf32> to vector<16xf32>
    %406 = vector.shape_cast %405 : vector<16xf32> to vector<16x1xf32>
    %407 = tpu.reciprocal %406 {approx = true} : vector<16x1xf32> -> vector<16x1xf32>
    %408 = vector.broadcast %407 : vector<16x1xf32> to vector<16x16xf32>
    %409 = arith.mulf %404, %408 : vector<16x16xf32>
    %cst_175 = arith.constant dense<0.000000e+00> : vector<16x8xf32>
    %410 = tpu.matmul %409, %395, %cst_175 {dimension_numbers = #tpu.dot_dimension_numbers<[1], [0], [0], [1], [0, 0, 1, 1], [], []>} : vector<16x16xf32>, vector<16x8xf32>, vector<16x8xf32> -> vector<16x8xf32>
    %411 = vector.extract_strided_slice %374 {offsets = [0, 16], sizes = [16, 8], strides = [1, 1]} : vector<16x96xf32> to vector<16x8xf32>
    %412 = vector.extract_strided_slice %374 {offsets = [0, 48], sizes = [16, 8], strides = [1, 1]} : vector<16x96xf32> to vector<16x8xf32>
    %413 = vector.extract_strided_slice %374 {offsets = [0, 80], sizes = [16, 8], strides = [1, 1]} : vector<16x96xf32> to vector<16x8xf32>
    %cst_176 = arith.constant dense<0.000000e+00> : vector<16x16xf32>
    %414 = tpu.matmul %411, %412, %cst_176 {dimension_numbers = #tpu.dot_dimension_numbers<[1], [1], [0], [0], [0, 0, 1, 0], [], []>} : vector<16x8xf32>, vector<16x8xf32>, vector<16x16xf32> -> vector<16x16xf32>
    %cst_177 = arith.constant 0.353553385 : f32
    %415 = vector.broadcast %cst_177 : f32 to vector<16x16xf32>
    %416 = arith.mulf %414, %415 : vector<16x16xf32>
    %417 = arith.addf %416, %3 : vector<16x16xf32>
    %cst_178 = arith.constant dense<0xFF800000> : vector<16xf32>
    %418 = vector.multi_reduction <maximumf>, %417, %cst_178 [1] : vector<16x16xf32> to vector<16xf32>
    %419 = vector.shape_cast %418 : vector<16xf32> to vector<16x1xf32>
    %420 = vector.broadcast %419 : vector<16x1xf32> to vector<16x16xf32>
    %421 = arith.subf %417, %420 : vector<16x16xf32>
    %422 = math.exp %421 : vector<16x16xf32>
    %cst_179 = arith.constant dense<0.000000e+00> : vector<16xf32>
    %423 = vector.multi_reduction <add>, %422, %cst_179 [1] : vector<16x16xf32> to vector<16xf32>
    %424 = vector.shape_cast %423 : vector<16xf32> to vector<16x1xf32>
    %425 = tpu.reciprocal %424 {approx = true} : vector<16x1xf32> -> vector<16x1xf32>
    %426 = vector.broadcast %425 : vector<16x1xf32> to vector<16x16xf32>
    %427 = arith.mulf %422, %426 : vector<16x16xf32>
    %cst_180 = arith.constant dense<0.000000e+00> : vector<16x8xf32>
    %428 = tpu.matmul %427, %413, %cst_180 {dimension_numbers = #tpu.dot_dimension_numbers<[1], [0], [0], [1], [0, 0, 1, 1], [], []>} : vector<16x16xf32>, vector<16x8xf32>, vector<16x8xf32> -> vector<16x8xf32>
    %429 = vector.extract_strided_slice %374 {offsets = [0, 24], sizes = [16, 8], strides = [1, 1]} : vector<16x96xf32> to vector<16x8xf32>
    %430 = vector.extract_strided_slice %374 {offsets = [0, 56], sizes = [16, 8], strides = [1, 1]} : vector<16x96xf32> to vector<16x8xf32>
    %431 = vector.extract_strided_slice %374 {offsets = [0, 88], sizes = [16, 8], strides = [1, 1]} : vector<16x96xf32> to vector<16x8xf32>
    %cst_181 = arith.constant dense<0.000000e+00> : vector<16x16xf32>
    %432 = tpu.matmul %429, %430, %cst_181 {dimension_numbers = #tpu.dot_dimension_numbers<[1], [1], [0], [0], [0, 0, 1, 0], [], []>} : vector<16x8xf32>, vector<16x8xf32>, vector<16x16xf32> -> vector<16x16xf32>
    %cst_182 = arith.constant 0.353553385 : f32
    %433 = vector.broadcast %cst_182 : f32 to vector<16x16xf32>
    %434 = arith.mulf %432, %433 : vector<16x16xf32>
    %435 = arith.addf %434, %3 : vector<16x16xf32>
    %cst_183 = arith.constant dense<0xFF800000> : vector<16xf32>
    %436 = vector.multi_reduction <maximumf>, %435, %cst_183 [1] : vector<16x16xf32> to vector<16xf32>
    %437 = vector.shape_cast %436 : vector<16xf32> to vector<16x1xf32>
    %438 = vector.broadcast %437 : vector<16x1xf32> to vector<16x16xf32>
    %439 = arith.subf %435, %438 : vector<16x16xf32>
    %440 = math.exp %439 : vector<16x16xf32>
    %cst_184 = arith.constant dense<0.000000e+00> : vector<16xf32>
    %441 = vector.multi_reduction <add>, %440, %cst_184 [1] : vector<16x16xf32> to vector<16xf32>
    %442 = vector.shape_cast %441 : vector<16xf32> to vector<16x1xf32>
    %443 = tpu.reciprocal %442 {approx = true} : vector<16x1xf32> -> vector<16x1xf32>
    %444 = vector.broadcast %443 : vector<16x1xf32> to vector<16x16xf32>
    %445 = arith.mulf %440, %444 : vector<16x16xf32>
    %cst_185 = arith.constant dense<0.000000e+00> : vector<16x8xf32>
    %446 = tpu.matmul %445, %431, %cst_185 {dimension_numbers = #tpu.dot_dimension_numbers<[1], [0], [0], [1], [0, 0, 1, 1], [], []>} : vector<16x16xf32>, vector<16x8xf32>, vector<16x8xf32> -> vector<16x8xf32>
    %447 = tpu.concatenate %392, %410, %428, %446 in 1 : vector<16x8xf32>, vector<16x8xf32>, vector<16x8xf32>, vector<16x8xf32> -> vector<16x32xf32>
    %c2_186 = arith.constant 2 : index
    %c0_187 = arith.constant 0 : index
    %c0_188 = arith.constant 0 : index
    %448 = vector.load %arg4[%c2_186, %c0_187, %c0_188] : memref<6x32x32xf32, #tpu.memory_space<vmem>>, vector<1x32x32xf32>
    %449 = vector.shape_cast %448 : vector<1x32x32xf32> to vector<32x32xf32>
    %cst_189 = arith.constant dense<0.000000e+00> : vector<16x32xf32>
    %450 = tpu.matmul %447, %449, %cst_189 {dimension_numbers = #tpu.dot_dimension_numbers<[1], [0], [0], [1], [0, 0, 1, 1], [], []>} : vector<16x32xf32>, vector<32x32xf32>, vector<16x32xf32> -> vector<16x32xf32>
    %c2_190 = arith.constant 2 : index
    %c0_191 = arith.constant 0 : index
    %c0_192 = arith.constant 0 : index
    %451 = vector.load %arg8[%c2_190, %c0_191, %c0_192] : memref<34x1x32xf32, #tpu.memory_space<vmem>>, vector<1x1x32xf32>
    %452 = vector.shape_cast %451 : vector<1x1x32xf32> to vector<1x32xf32>
    %453 = vector.broadcast %452 : vector<1x32xf32> to vector<16x32xf32>
    %454 = arith.addf %450, %453 : vector<16x32xf32>
    %455 = arith.addf %342, %454 : vector<16x32xf32>
    %c22 = arith.constant 22 : index
    %c0_193 = arith.constant 0 : index
    %c0_194 = arith.constant 0 : index
    %456 = vector.load %arg8[%c22, %c0_193, %c0_194] : memref<34x1x32xf32, #tpu.memory_space<vmem>>, vector<1x1x32xf32>
    %457 = vector.shape_cast %456 : vector<1x1x32xf32> to vector<1x32xf32>
    %c23 = arith.constant 23 : index
    %c0_195 = arith.constant 0 : index
    %c0_196 = arith.constant 0 : index
    %458 = vector.load %arg8[%c23, %c0_195, %c0_196] : memref<34x1x32xf32, #tpu.memory_space<vmem>>, vector<1x1x32xf32>
    %459 = vector.shape_cast %458 : vector<1x1x32xf32> to vector<1x32xf32>
    %cst_197 = arith.constant dense<0.000000e+00> : vector<16xf32>
    %460 = vector.multi_reduction <add>, %455, %cst_197 [1] : vector<16x32xf32> to vector<16xf32>
    %461 = vector.shape_cast %460 : vector<16xf32> to vector<16x1xf32>
    %cst_198 = arith.constant 3.200000e+01 : f32
    %462 = vector.broadcast %cst_198 : f32 to vector<16x1xf32>
    %463 = arith.divf %461, %462 : vector<16x1xf32>
    %464 = vector.broadcast %463 : vector<16x1xf32> to vector<16x32xf32>
    %465 = arith.subf %455, %464 : vector<16x32xf32>
    %466 = arith.mulf %465, %465 : vector<16x32xf32>
    %cst_199 = arith.constant dense<0.000000e+00> : vector<16xf32>
    %467 = vector.multi_reduction <add>, %466, %cst_199 [1] : vector<16x32xf32> to vector<16xf32>
    %468 = vector.shape_cast %467 : vector<16xf32> to vector<16x1xf32>
    %cst_200 = arith.constant 0.0322580636 : f32
    %469 = vector.broadcast %cst_200 : f32 to vector<16x1xf32>
    %470 = arith.mulf %468, %469 : vector<16x1xf32>
    %471 = math.sqrt %470 : vector<16x1xf32>
    %cst_201 = arith.constant 9.99999997E-7 : f32
    %472 = vector.broadcast %cst_201 : f32 to vector<16x1xf32>
    %473 = arith.addf %471, %472 : vector<16x1xf32>
    %474 = tpu.reciprocal %473 {approx = true} : vector<16x1xf32> -> vector<16x1xf32>
    %475 = vector.broadcast %474 : vector<16x1xf32> to vector<16x32xf32>
    %476 = arith.mulf %465, %475 : vector<16x32xf32>
    %477 = vector.broadcast %457 : vector<1x32xf32> to vector<16x32xf32>
    %478 = arith.mulf %477, %476 : vector<16x32xf32>
    %479 = vector.broadcast %459 : vector<1x32xf32> to vector<16x32xf32>
    %480 = arith.addf %478, %479 : vector<16x32xf32>
    %c3 = arith.constant 3 : index
    %c0_202 = arith.constant 0 : index
    %c0_203 = arith.constant 0 : index
    %481 = vector.load %arg2[%c3, %c0_202, %c0_203] : memref<6x32x96xf32, #tpu.memory_space<vmem>>, vector<1x32x96xf32>
    %482 = vector.shape_cast %481 : vector<1x32x96xf32> to vector<32x96xf32>
    %c3_204 = arith.constant 3 : index
    %c0_205 = arith.constant 0 : index
    %c0_206 = arith.constant 0 : index
    %483 = vector.load %arg3[%c3_204, %c0_205, %c0_206] : memref<6x1x96xf32, #tpu.memory_space<vmem>>, vector<1x1x96xf32>
    %484 = vector.shape_cast %483 : vector<1x1x96xf32> to vector<1x96xf32>
    %cst_207 = arith.constant dense<0.000000e+00> : vector<16x96xf32>
    %485 = tpu.matmul %480, %482, %cst_207 {dimension_numbers = #tpu.dot_dimension_numbers<[1], [0], [0], [1], [0, 0, 1, 1], [], []>} : vector<16x32xf32>, vector<32x96xf32>, vector<16x96xf32> -> vector<16x96xf32>
    %486 = vector.broadcast %484 : vector<1x96xf32> to vector<16x96xf32>
    %487 = arith.addf %485, %486 : vector<16x96xf32>
    %cst_208 = arith.constant dense<0.000000e+00> : vector<16x96xf32>
    %488 = tpu.matmul %341, %482, %cst_208 {dimension_numbers = #tpu.dot_dimension_numbers<[1], [0], [0], [1], [0, 0, 1, 1], [], []>} : vector<16x32xf32>, vector<32x96xf32>, vector<16x96xf32> -> vector<16x96xf32>
    %489 = vector.broadcast %484 : vector<1x96xf32> to vector<16x96xf32>
    %490 = arith.addf %488, %489 : vector<16x96xf32>
    %491 = vector.extract_strided_slice %487 {offsets = [0, 0], sizes = [16, 8], strides = [1, 1]} : vector<16x96xf32> to vector<16x8xf32>
    %492 = vector.extract_strided_slice %490 {offsets = [0, 32], sizes = [16, 8], strides = [1, 1]} : vector<16x96xf32> to vector<16x8xf32>
    %493 = vector.extract_strided_slice %490 {offsets = [0, 64], sizes = [16, 8], strides = [1, 1]} : vector<16x96xf32> to vector<16x8xf32>
    %cst_209 = arith.constant dense<0.000000e+00> : vector<16x16xf32>
    %494 = tpu.matmul %491, %492, %cst_209 {dimension_numbers = #tpu.dot_dimension_numbers<[1], [1], [0], [0], [0, 0, 1, 0], [], []>} : vector<16x8xf32>, vector<16x8xf32>, vector<16x16xf32> -> vector<16x16xf32>
    %cst_210 = arith.constant 0.353553385 : f32
    %495 = vector.broadcast %cst_210 : f32 to vector<16x16xf32>
    %496 = arith.mulf %494, %495 : vector<16x16xf32>
    %497 = arith.addf %496, %5 : vector<16x16xf32>
    %cst_211 = arith.constant dense<0xFF800000> : vector<16xf32>
    %498 = vector.multi_reduction <maximumf>, %497, %cst_211 [1] : vector<16x16xf32> to vector<16xf32>
    %499 = vector.shape_cast %498 : vector<16xf32> to vector<16x1xf32>
    %500 = vector.broadcast %499 : vector<16x1xf32> to vector<16x16xf32>
    %501 = arith.subf %497, %500 : vector<16x16xf32>
    %502 = math.exp %501 : vector<16x16xf32>
    %cst_212 = arith.constant dense<0.000000e+00> : vector<16xf32>
    %503 = vector.multi_reduction <add>, %502, %cst_212 [1] : vector<16x16xf32> to vector<16xf32>
    %504 = vector.shape_cast %503 : vector<16xf32> to vector<16x1xf32>
    %505 = tpu.reciprocal %504 {approx = true} : vector<16x1xf32> -> vector<16x1xf32>
    %506 = vector.broadcast %505 : vector<16x1xf32> to vector<16x16xf32>
    %507 = arith.mulf %502, %506 : vector<16x16xf32>
    %cst_213 = arith.constant dense<0.000000e+00> : vector<16x8xf32>
    %508 = tpu.matmul %507, %493, %cst_213 {dimension_numbers = #tpu.dot_dimension_numbers<[1], [0], [0], [1], [0, 0, 1, 1], [], []>} : vector<16x16xf32>, vector<16x8xf32>, vector<16x8xf32> -> vector<16x8xf32>
    %509 = vector.extract_strided_slice %487 {offsets = [0, 8], sizes = [16, 8], strides = [1, 1]} : vector<16x96xf32> to vector<16x8xf32>
    %510 = vector.extract_strided_slice %490 {offsets = [0, 40], sizes = [16, 8], strides = [1, 1]} : vector<16x96xf32> to vector<16x8xf32>
    %511 = vector.extract_strided_slice %490 {offsets = [0, 72], sizes = [16, 8], strides = [1, 1]} : vector<16x96xf32> to vector<16x8xf32>
    %cst_214 = arith.constant dense<0.000000e+00> : vector<16x16xf32>
    %512 = tpu.matmul %509, %510, %cst_214 {dimension_numbers = #tpu.dot_dimension_numbers<[1], [1], [0], [0], [0, 0, 1, 0], [], []>} : vector<16x8xf32>, vector<16x8xf32>, vector<16x16xf32> -> vector<16x16xf32>
    %cst_215 = arith.constant 0.353553385 : f32
    %513 = vector.broadcast %cst_215 : f32 to vector<16x16xf32>
    %514 = arith.mulf %512, %513 : vector<16x16xf32>
    %515 = arith.addf %514, %5 : vector<16x16xf32>
    %cst_216 = arith.constant dense<0xFF800000> : vector<16xf32>
    %516 = vector.multi_reduction <maximumf>, %515, %cst_216 [1] : vector<16x16xf32> to vector<16xf32>
    %517 = vector.shape_cast %516 : vector<16xf32> to vector<16x1xf32>
    %518 = vector.broadcast %517 : vector<16x1xf32> to vector<16x16xf32>
    %519 = arith.subf %515, %518 : vector<16x16xf32>
    %520 = math.exp %519 : vector<16x16xf32>
    %cst_217 = arith.constant dense<0.000000e+00> : vector<16xf32>
    %521 = vector.multi_reduction <add>, %520, %cst_217 [1] : vector<16x16xf32> to vector<16xf32>
    %522 = vector.shape_cast %521 : vector<16xf32> to vector<16x1xf32>
    %523 = tpu.reciprocal %522 {approx = true} : vector<16x1xf32> -> vector<16x1xf32>
    %524 = vector.broadcast %523 : vector<16x1xf32> to vector<16x16xf32>
    %525 = arith.mulf %520, %524 : vector<16x16xf32>
    %cst_218 = arith.constant dense<0.000000e+00> : vector<16x8xf32>
    %526 = tpu.matmul %525, %511, %cst_218 {dimension_numbers = #tpu.dot_dimension_numbers<[1], [0], [0], [1], [0, 0, 1, 1], [], []>} : vector<16x16xf32>, vector<16x8xf32>, vector<16x8xf32> -> vector<16x8xf32>
    %527 = vector.extract_strided_slice %487 {offsets = [0, 16], sizes = [16, 8], strides = [1, 1]} : vector<16x96xf32> to vector<16x8xf32>
    %528 = vector.extract_strided_slice %490 {offsets = [0, 48], sizes = [16, 8], strides = [1, 1]} : vector<16x96xf32> to vector<16x8xf32>
    %529 = vector.extract_strided_slice %490 {offsets = [0, 80], sizes = [16, 8], strides = [1, 1]} : vector<16x96xf32> to vector<16x8xf32>
    %cst_219 = arith.constant dense<0.000000e+00> : vector<16x16xf32>
    %530 = tpu.matmul %527, %528, %cst_219 {dimension_numbers = #tpu.dot_dimension_numbers<[1], [1], [0], [0], [0, 0, 1, 0], [], []>} : vector<16x8xf32>, vector<16x8xf32>, vector<16x16xf32> -> vector<16x16xf32>
    %cst_220 = arith.constant 0.353553385 : f32
    %531 = vector.broadcast %cst_220 : f32 to vector<16x16xf32>
    %532 = arith.mulf %530, %531 : vector<16x16xf32>
    %533 = arith.addf %532, %5 : vector<16x16xf32>
    %cst_221 = arith.constant dense<0xFF800000> : vector<16xf32>
    %534 = vector.multi_reduction <maximumf>, %533, %cst_221 [1] : vector<16x16xf32> to vector<16xf32>
    %535 = vector.shape_cast %534 : vector<16xf32> to vector<16x1xf32>
    %536 = vector.broadcast %535 : vector<16x1xf32> to vector<16x16xf32>
    %537 = arith.subf %533, %536 : vector<16x16xf32>
    %538 = math.exp %537 : vector<16x16xf32>
    %cst_222 = arith.constant dense<0.000000e+00> : vector<16xf32>
    %539 = vector.multi_reduction <add>, %538, %cst_222 [1] : vector<16x16xf32> to vector<16xf32>
    %540 = vector.shape_cast %539 : vector<16xf32> to vector<16x1xf32>
    %541 = tpu.reciprocal %540 {approx = true} : vector<16x1xf32> -> vector<16x1xf32>
    %542 = vector.broadcast %541 : vector<16x1xf32> to vector<16x16xf32>
    %543 = arith.mulf %538, %542 : vector<16x16xf32>
    %cst_223 = arith.constant dense<0.000000e+00> : vector<16x8xf32>
    %544 = tpu.matmul %543, %529, %cst_223 {dimension_numbers = #tpu.dot_dimension_numbers<[1], [0], [0], [1], [0, 0, 1, 1], [], []>} : vector<16x16xf32>, vector<16x8xf32>, vector<16x8xf32> -> vector<16x8xf32>
    %545 = vector.extract_strided_slice %487 {offsets = [0, 24], sizes = [16, 8], strides = [1, 1]} : vector<16x96xf32> to vector<16x8xf32>
    %546 = vector.extract_strided_slice %490 {offsets = [0, 56], sizes = [16, 8], strides = [1, 1]} : vector<16x96xf32> to vector<16x8xf32>
    %547 = vector.extract_strided_slice %490 {offsets = [0, 88], sizes = [16, 8], strides = [1, 1]} : vector<16x96xf32> to vector<16x8xf32>
    %cst_224 = arith.constant dense<0.000000e+00> : vector<16x16xf32>
    %548 = tpu.matmul %545, %546, %cst_224 {dimension_numbers = #tpu.dot_dimension_numbers<[1], [1], [0], [0], [0, 0, 1, 0], [], []>} : vector<16x8xf32>, vector<16x8xf32>, vector<16x16xf32> -> vector<16x16xf32>
    %cst_225 = arith.constant 0.353553385 : f32
    %549 = vector.broadcast %cst_225 : f32 to vector<16x16xf32>
    %550 = arith.mulf %548, %549 : vector<16x16xf32>
    %551 = arith.addf %550, %5 : vector<16x16xf32>
    %cst_226 = arith.constant dense<0xFF800000> : vector<16xf32>
    %552 = vector.multi_reduction <maximumf>, %551, %cst_226 [1] : vector<16x16xf32> to vector<16xf32>
    %553 = vector.shape_cast %552 : vector<16xf32> to vector<16x1xf32>
    %554 = vector.broadcast %553 : vector<16x1xf32> to vector<16x16xf32>
    %555 = arith.subf %551, %554 : vector<16x16xf32>
    %556 = math.exp %555 : vector<16x16xf32>
    %cst_227 = arith.constant dense<0.000000e+00> : vector<16xf32>
    %557 = vector.multi_reduction <add>, %556, %cst_227 [1] : vector<16x16xf32> to vector<16xf32>
    %558 = vector.shape_cast %557 : vector<16xf32> to vector<16x1xf32>
    %559 = tpu.reciprocal %558 {approx = true} : vector<16x1xf32> -> vector<16x1xf32>
    %560 = vector.broadcast %559 : vector<16x1xf32> to vector<16x16xf32>
    %561 = arith.mulf %556, %560 : vector<16x16xf32>
    %cst_228 = arith.constant dense<0.000000e+00> : vector<16x8xf32>
    %562 = tpu.matmul %561, %547, %cst_228 {dimension_numbers = #tpu.dot_dimension_numbers<[1], [0], [0], [1], [0, 0, 1, 1], [], []>} : vector<16x16xf32>, vector<16x8xf32>, vector<16x8xf32> -> vector<16x8xf32>
    %563 = tpu.concatenate %508, %526, %544, %562 in 1 : vector<16x8xf32>, vector<16x8xf32>, vector<16x8xf32>, vector<16x8xf32> -> vector<16x32xf32>
    %c3_229 = arith.constant 3 : index
    %c0_230 = arith.constant 0 : index
    %c0_231 = arith.constant 0 : index
    %564 = vector.load %arg4[%c3_229, %c0_230, %c0_231] : memref<6x32x32xf32, #tpu.memory_space<vmem>>, vector<1x32x32xf32>
    %565 = vector.shape_cast %564 : vector<1x32x32xf32> to vector<32x32xf32>
    %cst_232 = arith.constant dense<0.000000e+00> : vector<16x32xf32>
    %566 = tpu.matmul %563, %565, %cst_232 {dimension_numbers = #tpu.dot_dimension_numbers<[1], [0], [0], [1], [0, 0, 1, 1], [], []>} : vector<16x32xf32>, vector<32x32xf32>, vector<16x32xf32> -> vector<16x32xf32>
    %c3_233 = arith.constant 3 : index
    %c0_234 = arith.constant 0 : index
    %c0_235 = arith.constant 0 : index
    %567 = vector.load %arg8[%c3_233, %c0_234, %c0_235] : memref<34x1x32xf32, #tpu.memory_space<vmem>>, vector<1x1x32xf32>
    %568 = vector.shape_cast %567 : vector<1x1x32xf32> to vector<1x32xf32>
    %569 = vector.broadcast %568 : vector<1x32xf32> to vector<16x32xf32>
    %570 = arith.addf %566, %569 : vector<16x32xf32>
    %571 = arith.addf %455, %570 : vector<16x32xf32>
    %c24 = arith.constant 24 : index
    %c0_236 = arith.constant 0 : index
    %c0_237 = arith.constant 0 : index
    %572 = vector.load %arg8[%c24, %c0_236, %c0_237] : memref<34x1x32xf32, #tpu.memory_space<vmem>>, vector<1x1x32xf32>
    %573 = vector.shape_cast %572 : vector<1x1x32xf32> to vector<1x32xf32>
    %c25 = arith.constant 25 : index
    %c0_238 = arith.constant 0 : index
    %c0_239 = arith.constant 0 : index
    %574 = vector.load %arg8[%c25, %c0_238, %c0_239] : memref<34x1x32xf32, #tpu.memory_space<vmem>>, vector<1x1x32xf32>
    %575 = vector.shape_cast %574 : vector<1x1x32xf32> to vector<1x32xf32>
    %cst_240 = arith.constant dense<0.000000e+00> : vector<16xf32>
    %576 = vector.multi_reduction <add>, %571, %cst_240 [1] : vector<16x32xf32> to vector<16xf32>
    %577 = vector.shape_cast %576 : vector<16xf32> to vector<16x1xf32>
    %cst_241 = arith.constant 3.200000e+01 : f32
    %578 = vector.broadcast %cst_241 : f32 to vector<16x1xf32>
    %579 = arith.divf %577, %578 : vector<16x1xf32>
    %580 = vector.broadcast %579 : vector<16x1xf32> to vector<16x32xf32>
    %581 = arith.subf %571, %580 : vector<16x32xf32>
    %582 = arith.mulf %581, %581 : vector<16x32xf32>
    %cst_242 = arith.constant dense<0.000000e+00> : vector<16xf32>
    %583 = vector.multi_reduction <add>, %582, %cst_242 [1] : vector<16x32xf32> to vector<16xf32>
    %584 = vector.shape_cast %583 : vector<16xf32> to vector<16x1xf32>
    %cst_243 = arith.constant 0.0322580636 : f32
    %585 = vector.broadcast %cst_243 : f32 to vector<16x1xf32>
    %586 = arith.mulf %584, %585 : vector<16x1xf32>
    %587 = math.sqrt %586 : vector<16x1xf32>
    %cst_244 = arith.constant 9.99999997E-7 : f32
    %588 = vector.broadcast %cst_244 : f32 to vector<16x1xf32>
    %589 = arith.addf %587, %588 : vector<16x1xf32>
    %590 = tpu.reciprocal %589 {approx = true} : vector<16x1xf32> -> vector<16x1xf32>
    %591 = vector.broadcast %590 : vector<16x1xf32> to vector<16x32xf32>
    %592 = arith.mulf %581, %591 : vector<16x32xf32>
    %593 = vector.broadcast %573 : vector<1x32xf32> to vector<16x32xf32>
    %594 = arith.mulf %593, %592 : vector<16x32xf32>
    %595 = vector.broadcast %575 : vector<1x32xf32> to vector<16x32xf32>
    %596 = arith.addf %594, %595 : vector<16x32xf32>
    %c2_245 = arith.constant 2 : index
    %c0_246 = arith.constant 0 : index
    %c0_247 = arith.constant 0 : index
    %597 = vector.load %arg5[%c2_245, %c0_246, %c0_247] : memref<4x32x64xf32, #tpu.memory_space<vmem>>, vector<1x32x64xf32>
    %598 = vector.shape_cast %597 : vector<1x32x64xf32> to vector<32x64xf32>
    %cst_248 = arith.constant dense<0.000000e+00> : vector<16x64xf32>
    %599 = tpu.matmul %596, %598, %cst_248 {dimension_numbers = #tpu.dot_dimension_numbers<[1], [0], [0], [1], [0, 0, 1, 1], [], []>} : vector<16x32xf32>, vector<32x64xf32>, vector<16x64xf32> -> vector<16x64xf32>
    %c2_249 = arith.constant 2 : index
    %c0_250 = arith.constant 0 : index
    %c0_251 = arith.constant 0 : index
    %600 = vector.load %arg7[%c2_249, %c0_250, %c0_251] : memref<4x1x64xf32, #tpu.memory_space<vmem>>, vector<1x1x64xf32>
    %601 = vector.shape_cast %600 : vector<1x1x64xf32> to vector<1x64xf32>
    %602 = vector.broadcast %601 : vector<1x64xf32> to vector<16x64xf32>
    %603 = arith.addf %599, %602 : vector<16x64xf32>
    %cst_252 = arith.constant 0.000000e+00 : f32
    %604 = vector.broadcast %cst_252 : f32 to vector<16x64xf32>
    %605 = arith.maximumf %603, %604 : vector<16x64xf32>
    %c2_253 = arith.constant 2 : index
    %c0_254 = arith.constant 0 : index
    %c0_255 = arith.constant 0 : index
    %606 = vector.load %arg6[%c2_253, %c0_254, %c0_255] : memref<4x64x32xf32, #tpu.memory_space<vmem>>, vector<1x64x32xf32>
    %607 = vector.shape_cast %606 : vector<1x64x32xf32> to vector<64x32xf32>
    %cst_256 = arith.constant dense<0.000000e+00> : vector<16x32xf32>
    %608 = tpu.matmul %605, %607, %cst_256 {dimension_numbers = #tpu.dot_dimension_numbers<[1], [0], [0], [1], [0, 0, 1, 1], [], []>} : vector<16x64xf32>, vector<64x32xf32>, vector<16x32xf32> -> vector<16x32xf32>
    %c8 = arith.constant 8 : index
    %c0_257 = arith.constant 0 : index
    %c0_258 = arith.constant 0 : index
    %609 = vector.load %arg8[%c8, %c0_257, %c0_258] : memref<34x1x32xf32, #tpu.memory_space<vmem>>, vector<1x1x32xf32>
    %610 = vector.shape_cast %609 : vector<1x1x32xf32> to vector<1x32xf32>
    %611 = vector.broadcast %610 : vector<1x32xf32> to vector<16x32xf32>
    %612 = arith.addf %608, %611 : vector<16x32xf32>
    %613 = arith.addf %571, %612 : vector<16x32xf32>
    %c26 = arith.constant 26 : index
    %c0_259 = arith.constant 0 : index
    %c0_260 = arith.constant 0 : index
    %614 = vector.load %arg8[%c26, %c0_259, %c0_260] : memref<34x1x32xf32, #tpu.memory_space<vmem>>, vector<1x1x32xf32>
    %615 = vector.shape_cast %614 : vector<1x1x32xf32> to vector<1x32xf32>
    %c27 = arith.constant 27 : index
    %c0_261 = arith.constant 0 : index
    %c0_262 = arith.constant 0 : index
    %616 = vector.load %arg8[%c27, %c0_261, %c0_262] : memref<34x1x32xf32, #tpu.memory_space<vmem>>, vector<1x1x32xf32>
    %617 = vector.shape_cast %616 : vector<1x1x32xf32> to vector<1x32xf32>
    %cst_263 = arith.constant dense<0.000000e+00> : vector<16xf32>
    %618 = vector.multi_reduction <add>, %613, %cst_263 [1] : vector<16x32xf32> to vector<16xf32>
    %619 = vector.shape_cast %618 : vector<16xf32> to vector<16x1xf32>
    %cst_264 = arith.constant 3.200000e+01 : f32
    %620 = vector.broadcast %cst_264 : f32 to vector<16x1xf32>
    %621 = arith.divf %619, %620 : vector<16x1xf32>
    %622 = vector.broadcast %621 : vector<16x1xf32> to vector<16x32xf32>
    %623 = arith.subf %613, %622 : vector<16x32xf32>
    %624 = arith.mulf %623, %623 : vector<16x32xf32>
    %cst_265 = arith.constant dense<0.000000e+00> : vector<16xf32>
    %625 = vector.multi_reduction <add>, %624, %cst_265 [1] : vector<16x32xf32> to vector<16xf32>
    %626 = vector.shape_cast %625 : vector<16xf32> to vector<16x1xf32>
    %cst_266 = arith.constant 0.0322580636 : f32
    %627 = vector.broadcast %cst_266 : f32 to vector<16x1xf32>
    %628 = arith.mulf %626, %627 : vector<16x1xf32>
    %629 = math.sqrt %628 : vector<16x1xf32>
    %cst_267 = arith.constant 9.99999997E-7 : f32
    %630 = vector.broadcast %cst_267 : f32 to vector<16x1xf32>
    %631 = arith.addf %629, %630 : vector<16x1xf32>
    %632 = tpu.reciprocal %631 {approx = true} : vector<16x1xf32> -> vector<16x1xf32>
    %633 = vector.broadcast %632 : vector<16x1xf32> to vector<16x32xf32>
    %634 = arith.mulf %623, %633 : vector<16x32xf32>
    %635 = vector.broadcast %615 : vector<1x32xf32> to vector<16x32xf32>
    %636 = arith.mulf %635, %634 : vector<16x32xf32>
    %637 = vector.broadcast %617 : vector<1x32xf32> to vector<16x32xf32>
    %638 = arith.addf %636, %637 : vector<16x32xf32>
    %c4 = arith.constant 4 : index
    %c0_268 = arith.constant 0 : index
    %c0_269 = arith.constant 0 : index
    %639 = vector.load %arg2[%c4, %c0_268, %c0_269] : memref<6x32x96xf32, #tpu.memory_space<vmem>>, vector<1x32x96xf32>
    %640 = vector.shape_cast %639 : vector<1x32x96xf32> to vector<32x96xf32>
    %c4_270 = arith.constant 4 : index
    %c0_271 = arith.constant 0 : index
    %c0_272 = arith.constant 0 : index
    %641 = vector.load %arg3[%c4_270, %c0_271, %c0_272] : memref<6x1x96xf32, #tpu.memory_space<vmem>>, vector<1x1x96xf32>
    %642 = vector.shape_cast %641 : vector<1x1x96xf32> to vector<1x96xf32>
    %cst_273 = arith.constant dense<0.000000e+00> : vector<16x96xf32>
    %643 = tpu.matmul %638, %640, %cst_273 {dimension_numbers = #tpu.dot_dimension_numbers<[1], [0], [0], [1], [0, 0, 1, 1], [], []>} : vector<16x32xf32>, vector<32x96xf32>, vector<16x96xf32> -> vector<16x96xf32>
    %644 = vector.broadcast %642 : vector<1x96xf32> to vector<16x96xf32>
    %645 = arith.addf %643, %644 : vector<16x96xf32>
    %646 = vector.extract_strided_slice %645 {offsets = [0, 0], sizes = [16, 8], strides = [1, 1]} : vector<16x96xf32> to vector<16x8xf32>
    %647 = vector.extract_strided_slice %645 {offsets = [0, 32], sizes = [16, 8], strides = [1, 1]} : vector<16x96xf32> to vector<16x8xf32>
    %648 = vector.extract_strided_slice %645 {offsets = [0, 64], sizes = [16, 8], strides = [1, 1]} : vector<16x96xf32> to vector<16x8xf32>
    %cst_274 = arith.constant dense<0.000000e+00> : vector<16x16xf32>
    %649 = tpu.matmul %646, %647, %cst_274 {dimension_numbers = #tpu.dot_dimension_numbers<[1], [1], [0], [0], [0, 0, 1, 0], [], []>} : vector<16x8xf32>, vector<16x8xf32>, vector<16x16xf32> -> vector<16x16xf32>
    %cst_275 = arith.constant 0.353553385 : f32
    %650 = vector.broadcast %cst_275 : f32 to vector<16x16xf32>
    %651 = arith.mulf %649, %650 : vector<16x16xf32>
    %652 = arith.addf %651, %3 : vector<16x16xf32>
    %cst_276 = arith.constant dense<0xFF800000> : vector<16xf32>
    %653 = vector.multi_reduction <maximumf>, %652, %cst_276 [1] : vector<16x16xf32> to vector<16xf32>
    %654 = vector.shape_cast %653 : vector<16xf32> to vector<16x1xf32>
    %655 = vector.broadcast %654 : vector<16x1xf32> to vector<16x16xf32>
    %656 = arith.subf %652, %655 : vector<16x16xf32>
    %657 = math.exp %656 : vector<16x16xf32>
    %cst_277 = arith.constant dense<0.000000e+00> : vector<16xf32>
    %658 = vector.multi_reduction <add>, %657, %cst_277 [1] : vector<16x16xf32> to vector<16xf32>
    %659 = vector.shape_cast %658 : vector<16xf32> to vector<16x1xf32>
    %660 = tpu.reciprocal %659 {approx = true} : vector<16x1xf32> -> vector<16x1xf32>
    %661 = vector.broadcast %660 : vector<16x1xf32> to vector<16x16xf32>
    %662 = arith.mulf %657, %661 : vector<16x16xf32>
    %cst_278 = arith.constant dense<0.000000e+00> : vector<16x8xf32>
    %663 = tpu.matmul %662, %648, %cst_278 {dimension_numbers = #tpu.dot_dimension_numbers<[1], [0], [0], [1], [0, 0, 1, 1], [], []>} : vector<16x16xf32>, vector<16x8xf32>, vector<16x8xf32> -> vector<16x8xf32>
    %664 = vector.extract_strided_slice %645 {offsets = [0, 8], sizes = [16, 8], strides = [1, 1]} : vector<16x96xf32> to vector<16x8xf32>
    %665 = vector.extract_strided_slice %645 {offsets = [0, 40], sizes = [16, 8], strides = [1, 1]} : vector<16x96xf32> to vector<16x8xf32>
    %666 = vector.extract_strided_slice %645 {offsets = [0, 72], sizes = [16, 8], strides = [1, 1]} : vector<16x96xf32> to vector<16x8xf32>
    %cst_279 = arith.constant dense<0.000000e+00> : vector<16x16xf32>
    %667 = tpu.matmul %664, %665, %cst_279 {dimension_numbers = #tpu.dot_dimension_numbers<[1], [1], [0], [0], [0, 0, 1, 0], [], []>} : vector<16x8xf32>, vector<16x8xf32>, vector<16x16xf32> -> vector<16x16xf32>
    %cst_280 = arith.constant 0.353553385 : f32
    %668 = vector.broadcast %cst_280 : f32 to vector<16x16xf32>
    %669 = arith.mulf %667, %668 : vector<16x16xf32>
    %670 = arith.addf %669, %3 : vector<16x16xf32>
    %cst_281 = arith.constant dense<0xFF800000> : vector<16xf32>
    %671 = vector.multi_reduction <maximumf>, %670, %cst_281 [1] : vector<16x16xf32> to vector<16xf32>
    %672 = vector.shape_cast %671 : vector<16xf32> to vector<16x1xf32>
    %673 = vector.broadcast %672 : vector<16x1xf32> to vector<16x16xf32>
    %674 = arith.subf %670, %673 : vector<16x16xf32>
    %675 = math.exp %674 : vector<16x16xf32>
    %cst_282 = arith.constant dense<0.000000e+00> : vector<16xf32>
    %676 = vector.multi_reduction <add>, %675, %cst_282 [1] : vector<16x16xf32> to vector<16xf32>
    %677 = vector.shape_cast %676 : vector<16xf32> to vector<16x1xf32>
    %678 = tpu.reciprocal %677 {approx = true} : vector<16x1xf32> -> vector<16x1xf32>
    %679 = vector.broadcast %678 : vector<16x1xf32> to vector<16x16xf32>
    %680 = arith.mulf %675, %679 : vector<16x16xf32>
    %cst_283 = arith.constant dense<0.000000e+00> : vector<16x8xf32>
    %681 = tpu.matmul %680, %666, %cst_283 {dimension_numbers = #tpu.dot_dimension_numbers<[1], [0], [0], [1], [0, 0, 1, 1], [], []>} : vector<16x16xf32>, vector<16x8xf32>, vector<16x8xf32> -> vector<16x8xf32>
    %682 = vector.extract_strided_slice %645 {offsets = [0, 16], sizes = [16, 8], strides = [1, 1]} : vector<16x96xf32> to vector<16x8xf32>
    %683 = vector.extract_strided_slice %645 {offsets = [0, 48], sizes = [16, 8], strides = [1, 1]} : vector<16x96xf32> to vector<16x8xf32>
    %684 = vector.extract_strided_slice %645 {offsets = [0, 80], sizes = [16, 8], strides = [1, 1]} : vector<16x96xf32> to vector<16x8xf32>
    %cst_284 = arith.constant dense<0.000000e+00> : vector<16x16xf32>
    %685 = tpu.matmul %682, %683, %cst_284 {dimension_numbers = #tpu.dot_dimension_numbers<[1], [1], [0], [0], [0, 0, 1, 0], [], []>} : vector<16x8xf32>, vector<16x8xf32>, vector<16x16xf32> -> vector<16x16xf32>
    %cst_285 = arith.constant 0.353553385 : f32
    %686 = vector.broadcast %cst_285 : f32 to vector<16x16xf32>
    %687 = arith.mulf %685, %686 : vector<16x16xf32>
    %688 = arith.addf %687, %3 : vector<16x16xf32>
    %cst_286 = arith.constant dense<0xFF800000> : vector<16xf32>
    %689 = vector.multi_reduction <maximumf>, %688, %cst_286 [1] : vector<16x16xf32> to vector<16xf32>
    %690 = vector.shape_cast %689 : vector<16xf32> to vector<16x1xf32>
    %691 = vector.broadcast %690 : vector<16x1xf32> to vector<16x16xf32>
    %692 = arith.subf %688, %691 : vector<16x16xf32>
    %693 = math.exp %692 : vector<16x16xf32>
    %cst_287 = arith.constant dense<0.000000e+00> : vector<16xf32>
    %694 = vector.multi_reduction <add>, %693, %cst_287 [1] : vector<16x16xf32> to vector<16xf32>
    %695 = vector.shape_cast %694 : vector<16xf32> to vector<16x1xf32>
    %696 = tpu.reciprocal %695 {approx = true} : vector<16x1xf32> -> vector<16x1xf32>
    %697 = vector.broadcast %696 : vector<16x1xf32> to vector<16x16xf32>
    %698 = arith.mulf %693, %697 : vector<16x16xf32>
    %cst_288 = arith.constant dense<0.000000e+00> : vector<16x8xf32>
    %699 = tpu.matmul %698, %684, %cst_288 {dimension_numbers = #tpu.dot_dimension_numbers<[1], [0], [0], [1], [0, 0, 1, 1], [], []>} : vector<16x16xf32>, vector<16x8xf32>, vector<16x8xf32> -> vector<16x8xf32>
    %700 = vector.extract_strided_slice %645 {offsets = [0, 24], sizes = [16, 8], strides = [1, 1]} : vector<16x96xf32> to vector<16x8xf32>
    %701 = vector.extract_strided_slice %645 {offsets = [0, 56], sizes = [16, 8], strides = [1, 1]} : vector<16x96xf32> to vector<16x8xf32>
    %702 = vector.extract_strided_slice %645 {offsets = [0, 88], sizes = [16, 8], strides = [1, 1]} : vector<16x96xf32> to vector<16x8xf32>
    %cst_289 = arith.constant dense<0.000000e+00> : vector<16x16xf32>
    %703 = tpu.matmul %700, %701, %cst_289 {dimension_numbers = #tpu.dot_dimension_numbers<[1], [1], [0], [0], [0, 0, 1, 0], [], []>} : vector<16x8xf32>, vector<16x8xf32>, vector<16x16xf32> -> vector<16x16xf32>
    %cst_290 = arith.constant 0.353553385 : f32
    %704 = vector.broadcast %cst_290 : f32 to vector<16x16xf32>
    %705 = arith.mulf %703, %704 : vector<16x16xf32>
    %706 = arith.addf %705, %3 : vector<16x16xf32>
    %cst_291 = arith.constant dense<0xFF800000> : vector<16xf32>
    %707 = vector.multi_reduction <maximumf>, %706, %cst_291 [1] : vector<16x16xf32> to vector<16xf32>
    %708 = vector.shape_cast %707 : vector<16xf32> to vector<16x1xf32>
    %709 = vector.broadcast %708 : vector<16x1xf32> to vector<16x16xf32>
    %710 = arith.subf %706, %709 : vector<16x16xf32>
    %711 = math.exp %710 : vector<16x16xf32>
    %cst_292 = arith.constant dense<0.000000e+00> : vector<16xf32>
    %712 = vector.multi_reduction <add>, %711, %cst_292 [1] : vector<16x16xf32> to vector<16xf32>
    %713 = vector.shape_cast %712 : vector<16xf32> to vector<16x1xf32>
    %714 = tpu.reciprocal %713 {approx = true} : vector<16x1xf32> -> vector<16x1xf32>
    %715 = vector.broadcast %714 : vector<16x1xf32> to vector<16x16xf32>
    %716 = arith.mulf %711, %715 : vector<16x16xf32>
    %cst_293 = arith.constant dense<0.000000e+00> : vector<16x8xf32>
    %717 = tpu.matmul %716, %702, %cst_293 {dimension_numbers = #tpu.dot_dimension_numbers<[1], [0], [0], [1], [0, 0, 1, 1], [], []>} : vector<16x16xf32>, vector<16x8xf32>, vector<16x8xf32> -> vector<16x8xf32>
    %718 = tpu.concatenate %663, %681, %699, %717 in 1 : vector<16x8xf32>, vector<16x8xf32>, vector<16x8xf32>, vector<16x8xf32> -> vector<16x32xf32>
    %c4_294 = arith.constant 4 : index
    %c0_295 = arith.constant 0 : index
    %c0_296 = arith.constant 0 : index
    %719 = vector.load %arg4[%c4_294, %c0_295, %c0_296] : memref<6x32x32xf32, #tpu.memory_space<vmem>>, vector<1x32x32xf32>
    %720 = vector.shape_cast %719 : vector<1x32x32xf32> to vector<32x32xf32>
    %cst_297 = arith.constant dense<0.000000e+00> : vector<16x32xf32>
    %721 = tpu.matmul %718, %720, %cst_297 {dimension_numbers = #tpu.dot_dimension_numbers<[1], [0], [0], [1], [0, 0, 1, 1], [], []>} : vector<16x32xf32>, vector<32x32xf32>, vector<16x32xf32> -> vector<16x32xf32>
    %c4_298 = arith.constant 4 : index
    %c0_299 = arith.constant 0 : index
    %c0_300 = arith.constant 0 : index
    %722 = vector.load %arg8[%c4_298, %c0_299, %c0_300] : memref<34x1x32xf32, #tpu.memory_space<vmem>>, vector<1x1x32xf32>
    %723 = vector.shape_cast %722 : vector<1x1x32xf32> to vector<1x32xf32>
    %724 = vector.broadcast %723 : vector<1x32xf32> to vector<16x32xf32>
    %725 = arith.addf %721, %724 : vector<16x32xf32>
    %726 = arith.addf %613, %725 : vector<16x32xf32>
    %c28 = arith.constant 28 : index
    %c0_301 = arith.constant 0 : index
    %c0_302 = arith.constant 0 : index
    %727 = vector.load %arg8[%c28, %c0_301, %c0_302] : memref<34x1x32xf32, #tpu.memory_space<vmem>>, vector<1x1x32xf32>
    %728 = vector.shape_cast %727 : vector<1x1x32xf32> to vector<1x32xf32>
    %c29 = arith.constant 29 : index
    %c0_303 = arith.constant 0 : index
    %c0_304 = arith.constant 0 : index
    %729 = vector.load %arg8[%c29, %c0_303, %c0_304] : memref<34x1x32xf32, #tpu.memory_space<vmem>>, vector<1x1x32xf32>
    %730 = vector.shape_cast %729 : vector<1x1x32xf32> to vector<1x32xf32>
    %cst_305 = arith.constant dense<0.000000e+00> : vector<16xf32>
    %731 = vector.multi_reduction <add>, %726, %cst_305 [1] : vector<16x32xf32> to vector<16xf32>
    %732 = vector.shape_cast %731 : vector<16xf32> to vector<16x1xf32>
    %cst_306 = arith.constant 3.200000e+01 : f32
    %733 = vector.broadcast %cst_306 : f32 to vector<16x1xf32>
    %734 = arith.divf %732, %733 : vector<16x1xf32>
    %735 = vector.broadcast %734 : vector<16x1xf32> to vector<16x32xf32>
    %736 = arith.subf %726, %735 : vector<16x32xf32>
    %737 = arith.mulf %736, %736 : vector<16x32xf32>
    %cst_307 = arith.constant dense<0.000000e+00> : vector<16xf32>
    %738 = vector.multi_reduction <add>, %737, %cst_307 [1] : vector<16x32xf32> to vector<16xf32>
    %739 = vector.shape_cast %738 : vector<16xf32> to vector<16x1xf32>
    %cst_308 = arith.constant 0.0322580636 : f32
    %740 = vector.broadcast %cst_308 : f32 to vector<16x1xf32>
    %741 = arith.mulf %739, %740 : vector<16x1xf32>
    %742 = math.sqrt %741 : vector<16x1xf32>
    %cst_309 = arith.constant 9.99999997E-7 : f32
    %743 = vector.broadcast %cst_309 : f32 to vector<16x1xf32>
    %744 = arith.addf %742, %743 : vector<16x1xf32>
    %745 = tpu.reciprocal %744 {approx = true} : vector<16x1xf32> -> vector<16x1xf32>
    %746 = vector.broadcast %745 : vector<16x1xf32> to vector<16x32xf32>
    %747 = arith.mulf %736, %746 : vector<16x32xf32>
    %748 = vector.broadcast %728 : vector<1x32xf32> to vector<16x32xf32>
    %749 = arith.mulf %748, %747 : vector<16x32xf32>
    %750 = vector.broadcast %730 : vector<1x32xf32> to vector<16x32xf32>
    %751 = arith.addf %749, %750 : vector<16x32xf32>
    %c5 = arith.constant 5 : index
    %c0_310 = arith.constant 0 : index
    %c0_311 = arith.constant 0 : index
    %752 = vector.load %arg2[%c5, %c0_310, %c0_311] : memref<6x32x96xf32, #tpu.memory_space<vmem>>, vector<1x32x96xf32>
    %753 = vector.shape_cast %752 : vector<1x32x96xf32> to vector<32x96xf32>
    %c5_312 = arith.constant 5 : index
    %c0_313 = arith.constant 0 : index
    %c0_314 = arith.constant 0 : index
    %754 = vector.load %arg3[%c5_312, %c0_313, %c0_314] : memref<6x1x96xf32, #tpu.memory_space<vmem>>, vector<1x1x96xf32>
    %755 = vector.shape_cast %754 : vector<1x1x96xf32> to vector<1x96xf32>
    %cst_315 = arith.constant dense<0.000000e+00> : vector<16x96xf32>
    %756 = tpu.matmul %751, %753, %cst_315 {dimension_numbers = #tpu.dot_dimension_numbers<[1], [0], [0], [1], [0, 0, 1, 1], [], []>} : vector<16x32xf32>, vector<32x96xf32>, vector<16x96xf32> -> vector<16x96xf32>
    %757 = vector.broadcast %755 : vector<1x96xf32> to vector<16x96xf32>
    %758 = arith.addf %756, %757 : vector<16x96xf32>
    %cst_316 = arith.constant dense<0.000000e+00> : vector<16x96xf32>
    %759 = tpu.matmul %341, %753, %cst_316 {dimension_numbers = #tpu.dot_dimension_numbers<[1], [0], [0], [1], [0, 0, 1, 1], [], []>} : vector<16x32xf32>, vector<32x96xf32>, vector<16x96xf32> -> vector<16x96xf32>
    %760 = vector.broadcast %755 : vector<1x96xf32> to vector<16x96xf32>
    %761 = arith.addf %759, %760 : vector<16x96xf32>
    %762 = vector.extract_strided_slice %758 {offsets = [0, 0], sizes = [16, 8], strides = [1, 1]} : vector<16x96xf32> to vector<16x8xf32>
    %763 = vector.extract_strided_slice %761 {offsets = [0, 32], sizes = [16, 8], strides = [1, 1]} : vector<16x96xf32> to vector<16x8xf32>
    %764 = vector.extract_strided_slice %761 {offsets = [0, 64], sizes = [16, 8], strides = [1, 1]} : vector<16x96xf32> to vector<16x8xf32>
    %cst_317 = arith.constant dense<0.000000e+00> : vector<16x16xf32>
    %765 = tpu.matmul %762, %763, %cst_317 {dimension_numbers = #tpu.dot_dimension_numbers<[1], [1], [0], [0], [0, 0, 1, 0], [], []>} : vector<16x8xf32>, vector<16x8xf32>, vector<16x16xf32> -> vector<16x16xf32>
    %cst_318 = arith.constant 0.353553385 : f32
    %766 = vector.broadcast %cst_318 : f32 to vector<16x16xf32>
    %767 = arith.mulf %765, %766 : vector<16x16xf32>
    %768 = arith.addf %767, %5 : vector<16x16xf32>
    %cst_319 = arith.constant dense<0xFF800000> : vector<16xf32>
    %769 = vector.multi_reduction <maximumf>, %768, %cst_319 [1] : vector<16x16xf32> to vector<16xf32>
    %770 = vector.shape_cast %769 : vector<16xf32> to vector<16x1xf32>
    %771 = vector.broadcast %770 : vector<16x1xf32> to vector<16x16xf32>
    %772 = arith.subf %768, %771 : vector<16x16xf32>
    %773 = math.exp %772 : vector<16x16xf32>
    %cst_320 = arith.constant dense<0.000000e+00> : vector<16xf32>
    %774 = vector.multi_reduction <add>, %773, %cst_320 [1] : vector<16x16xf32> to vector<16xf32>
    %775 = vector.shape_cast %774 : vector<16xf32> to vector<16x1xf32>
    %776 = tpu.reciprocal %775 {approx = true} : vector<16x1xf32> -> vector<16x1xf32>
    %777 = vector.broadcast %776 : vector<16x1xf32> to vector<16x16xf32>
    %778 = arith.mulf %773, %777 : vector<16x16xf32>
    %cst_321 = arith.constant dense<0.000000e+00> : vector<16x8xf32>
    %779 = tpu.matmul %778, %764, %cst_321 {dimension_numbers = #tpu.dot_dimension_numbers<[1], [0], [0], [1], [0, 0, 1, 1], [], []>} : vector<16x16xf32>, vector<16x8xf32>, vector<16x8xf32> -> vector<16x8xf32>
    %780 = vector.extract_strided_slice %758 {offsets = [0, 8], sizes = [16, 8], strides = [1, 1]} : vector<16x96xf32> to vector<16x8xf32>
    %781 = vector.extract_strided_slice %761 {offsets = [0, 40], sizes = [16, 8], strides = [1, 1]} : vector<16x96xf32> to vector<16x8xf32>
    %782 = vector.extract_strided_slice %761 {offsets = [0, 72], sizes = [16, 8], strides = [1, 1]} : vector<16x96xf32> to vector<16x8xf32>
    %cst_322 = arith.constant dense<0.000000e+00> : vector<16x16xf32>
    %783 = tpu.matmul %780, %781, %cst_322 {dimension_numbers = #tpu.dot_dimension_numbers<[1], [1], [0], [0], [0, 0, 1, 0], [], []>} : vector<16x8xf32>, vector<16x8xf32>, vector<16x16xf32> -> vector<16x16xf32>
    %cst_323 = arith.constant 0.353553385 : f32
    %784 = vector.broadcast %cst_323 : f32 to vector<16x16xf32>
    %785 = arith.mulf %783, %784 : vector<16x16xf32>
    %786 = arith.addf %785, %5 : vector<16x16xf32>
    %cst_324 = arith.constant dense<0xFF800000> : vector<16xf32>
    %787 = vector.multi_reduction <maximumf>, %786, %cst_324 [1] : vector<16x16xf32> to vector<16xf32>
    %788 = vector.shape_cast %787 : vector<16xf32> to vector<16x1xf32>
    %789 = vector.broadcast %788 : vector<16x1xf32> to vector<16x16xf32>
    %790 = arith.subf %786, %789 : vector<16x16xf32>
    %791 = math.exp %790 : vector<16x16xf32>
    %cst_325 = arith.constant dense<0.000000e+00> : vector<16xf32>
    %792 = vector.multi_reduction <add>, %791, %cst_325 [1] : vector<16x16xf32> to vector<16xf32>
    %793 = vector.shape_cast %792 : vector<16xf32> to vector<16x1xf32>
    %794 = tpu.reciprocal %793 {approx = true} : vector<16x1xf32> -> vector<16x1xf32>
    %795 = vector.broadcast %794 : vector<16x1xf32> to vector<16x16xf32>
    %796 = arith.mulf %791, %795 : vector<16x16xf32>
    %cst_326 = arith.constant dense<0.000000e+00> : vector<16x8xf32>
    %797 = tpu.matmul %796, %782, %cst_326 {dimension_numbers = #tpu.dot_dimension_numbers<[1], [0], [0], [1], [0, 0, 1, 1], [], []>} : vector<16x16xf32>, vector<16x8xf32>, vector<16x8xf32> -> vector<16x8xf32>
    %798 = vector.extract_strided_slice %758 {offsets = [0, 16], sizes = [16, 8], strides = [1, 1]} : vector<16x96xf32> to vector<16x8xf32>
    %799 = vector.extract_strided_slice %761 {offsets = [0, 48], sizes = [16, 8], strides = [1, 1]} : vector<16x96xf32> to vector<16x8xf32>
    %800 = vector.extract_strided_slice %761 {offsets = [0, 80], sizes = [16, 8], strides = [1, 1]} : vector<16x96xf32> to vector<16x8xf32>
    %cst_327 = arith.constant dense<0.000000e+00> : vector<16x16xf32>
    %801 = tpu.matmul %798, %799, %cst_327 {dimension_numbers = #tpu.dot_dimension_numbers<[1], [1], [0], [0], [0, 0, 1, 0], [], []>} : vector<16x8xf32>, vector<16x8xf32>, vector<16x16xf32> -> vector<16x16xf32>
    %cst_328 = arith.constant 0.353553385 : f32
    %802 = vector.broadcast %cst_328 : f32 to vector<16x16xf32>
    %803 = arith.mulf %801, %802 : vector<16x16xf32>
    %804 = arith.addf %803, %5 : vector<16x16xf32>
    %cst_329 = arith.constant dense<0xFF800000> : vector<16xf32>
    %805 = vector.multi_reduction <maximumf>, %804, %cst_329 [1] : vector<16x16xf32> to vector<16xf32>
    %806 = vector.shape_cast %805 : vector<16xf32> to vector<16x1xf32>
    %807 = vector.broadcast %806 : vector<16x1xf32> to vector<16x16xf32>
    %808 = arith.subf %804, %807 : vector<16x16xf32>
    %809 = math.exp %808 : vector<16x16xf32>
    %cst_330 = arith.constant dense<0.000000e+00> : vector<16xf32>
    %810 = vector.multi_reduction <add>, %809, %cst_330 [1] : vector<16x16xf32> to vector<16xf32>
    %811 = vector.shape_cast %810 : vector<16xf32> to vector<16x1xf32>
    %812 = tpu.reciprocal %811 {approx = true} : vector<16x1xf32> -> vector<16x1xf32>
    %813 = vector.broadcast %812 : vector<16x1xf32> to vector<16x16xf32>
    %814 = arith.mulf %809, %813 : vector<16x16xf32>
    %cst_331 = arith.constant dense<0.000000e+00> : vector<16x8xf32>
    %815 = tpu.matmul %814, %800, %cst_331 {dimension_numbers = #tpu.dot_dimension_numbers<[1], [0], [0], [1], [0, 0, 1, 1], [], []>} : vector<16x16xf32>, vector<16x8xf32>, vector<16x8xf32> -> vector<16x8xf32>
    %816 = vector.extract_strided_slice %758 {offsets = [0, 24], sizes = [16, 8], strides = [1, 1]} : vector<16x96xf32> to vector<16x8xf32>
    %817 = vector.extract_strided_slice %761 {offsets = [0, 56], sizes = [16, 8], strides = [1, 1]} : vector<16x96xf32> to vector<16x8xf32>
    %818 = vector.extract_strided_slice %761 {offsets = [0, 88], sizes = [16, 8], strides = [1, 1]} : vector<16x96xf32> to vector<16x8xf32>
    %cst_332 = arith.constant dense<0.000000e+00> : vector<16x16xf32>
    %819 = tpu.matmul %816, %817, %cst_332 {dimension_numbers = #tpu.dot_dimension_numbers<[1], [1], [0], [0], [0, 0, 1, 0], [], []>} : vector<16x8xf32>, vector<16x8xf32>, vector<16x16xf32> -> vector<16x16xf32>
    %cst_333 = arith.constant 0.353553385 : f32
    %820 = vector.broadcast %cst_333 : f32 to vector<16x16xf32>
    %821 = arith.mulf %819, %820 : vector<16x16xf32>
    %822 = arith.addf %821, %5 : vector<16x16xf32>
    %cst_334 = arith.constant dense<0xFF800000> : vector<16xf32>
    %823 = vector.multi_reduction <maximumf>, %822, %cst_334 [1] : vector<16x16xf32> to vector<16xf32>
    %824 = vector.shape_cast %823 : vector<16xf32> to vector<16x1xf32>
    %825 = vector.broadcast %824 : vector<16x1xf32> to vector<16x16xf32>
    %826 = arith.subf %822, %825 : vector<16x16xf32>
    %827 = math.exp %826 : vector<16x16xf32>
    %cst_335 = arith.constant dense<0.000000e+00> : vector<16xf32>
    %828 = vector.multi_reduction <add>, %827, %cst_335 [1] : vector<16x16xf32> to vector<16xf32>
    %829 = vector.shape_cast %828 : vector<16xf32> to vector<16x1xf32>
    %830 = tpu.reciprocal %829 {approx = true} : vector<16x1xf32> -> vector<16x1xf32>
    %831 = vector.broadcast %830 : vector<16x1xf32> to vector<16x16xf32>
    %832 = arith.mulf %827, %831 : vector<16x16xf32>
    %cst_336 = arith.constant dense<0.000000e+00> : vector<16x8xf32>
    %833 = tpu.matmul %832, %818, %cst_336 {dimension_numbers = #tpu.dot_dimension_numbers<[1], [0], [0], [1], [0, 0, 1, 1], [], []>} : vector<16x16xf32>, vector<16x8xf32>, vector<16x8xf32> -> vector<16x8xf32>
    %834 = tpu.concatenate %779, %797, %815, %833 in 1 : vector<16x8xf32>, vector<16x8xf32>, vector<16x8xf32>, vector<16x8xf32> -> vector<16x32xf32>
    %c5_337 = arith.constant 5 : index
    %c0_338 = arith.constant 0 : index
    %c0_339 = arith.constant 0 : index
    %835 = vector.load %arg4[%c5_337, %c0_338, %c0_339] : memref<6x32x32xf32, #tpu.memory_space<vmem>>, vector<1x32x32xf32>
    %836 = vector.shape_cast %835 : vector<1x32x32xf32> to vector<32x32xf32>
    %cst_340 = arith.constant dense<0.000000e+00> : vector<16x32xf32>
    %837 = tpu.matmul %834, %836, %cst_340 {dimension_numbers = #tpu.dot_dimension_numbers<[1], [0], [0], [1], [0, 0, 1, 1], [], []>} : vector<16x32xf32>, vector<32x32xf32>, vector<16x32xf32> -> vector<16x32xf32>
    %c5_341 = arith.constant 5 : index
    %c0_342 = arith.constant 0 : index
    %c0_343 = arith.constant 0 : index
    %838 = vector.load %arg8[%c5_341, %c0_342, %c0_343] : memref<34x1x32xf32, #tpu.memory_space<vmem>>, vector<1x1x32xf32>
    %839 = vector.shape_cast %838 : vector<1x1x32xf32> to vector<1x32xf32>
    %840 = vector.broadcast %839 : vector<1x32xf32> to vector<16x32xf32>
    %841 = arith.addf %837, %840 : vector<16x32xf32>
    %842 = arith.addf %726, %841 : vector<16x32xf32>
    %c30 = arith.constant 30 : index
    %c0_344 = arith.constant 0 : index
    %c0_345 = arith.constant 0 : index
    %843 = vector.load %arg8[%c30, %c0_344, %c0_345] : memref<34x1x32xf32, #tpu.memory_space<vmem>>, vector<1x1x32xf32>
    %844 = vector.shape_cast %843 : vector<1x1x32xf32> to vector<1x32xf32>
    %c31 = arith.constant 31 : index
    %c0_346 = arith.constant 0 : index
    %c0_347 = arith.constant 0 : index
    %845 = vector.load %arg8[%c31, %c0_346, %c0_347] : memref<34x1x32xf32, #tpu.memory_space<vmem>>, vector<1x1x32xf32>
    %846 = vector.shape_cast %845 : vector<1x1x32xf32> to vector<1x32xf32>
    %cst_348 = arith.constant dense<0.000000e+00> : vector<16xf32>
    %847 = vector.multi_reduction <add>, %842, %cst_348 [1] : vector<16x32xf32> to vector<16xf32>
    %848 = vector.shape_cast %847 : vector<16xf32> to vector<16x1xf32>
    %cst_349 = arith.constant 3.200000e+01 : f32
    %849 = vector.broadcast %cst_349 : f32 to vector<16x1xf32>
    %850 = arith.divf %848, %849 : vector<16x1xf32>
    %851 = vector.broadcast %850 : vector<16x1xf32> to vector<16x32xf32>
    %852 = arith.subf %842, %851 : vector<16x32xf32>
    %853 = arith.mulf %852, %852 : vector<16x32xf32>
    %cst_350 = arith.constant dense<0.000000e+00> : vector<16xf32>
    %854 = vector.multi_reduction <add>, %853, %cst_350 [1] : vector<16x32xf32> to vector<16xf32>
    %855 = vector.shape_cast %854 : vector<16xf32> to vector<16x1xf32>
    %cst_351 = arith.constant 0.0322580636 : f32
    %856 = vector.broadcast %cst_351 : f32 to vector<16x1xf32>
    %857 = arith.mulf %855, %856 : vector<16x1xf32>
    %858 = math.sqrt %857 : vector<16x1xf32>
    %cst_352 = arith.constant 9.99999997E-7 : f32
    %859 = vector.broadcast %cst_352 : f32 to vector<16x1xf32>
    %860 = arith.addf %858, %859 : vector<16x1xf32>
    %861 = tpu.reciprocal %860 {approx = true} : vector<16x1xf32> -> vector<16x1xf32>
    %862 = vector.broadcast %861 : vector<16x1xf32> to vector<16x32xf32>
    %863 = arith.mulf %852, %862 : vector<16x32xf32>
    %864 = vector.broadcast %844 : vector<1x32xf32> to vector<16x32xf32>
    %865 = arith.mulf %864, %863 : vector<16x32xf32>
    %866 = vector.broadcast %846 : vector<1x32xf32> to vector<16x32xf32>
    %867 = arith.addf %865, %866 : vector<16x32xf32>
    %c3_353 = arith.constant 3 : index
    %c0_354 = arith.constant 0 : index
    %c0_355 = arith.constant 0 : index
    %868 = vector.load %arg5[%c3_353, %c0_354, %c0_355] : memref<4x32x64xf32, #tpu.memory_space<vmem>>, vector<1x32x64xf32>
    %869 = vector.shape_cast %868 : vector<1x32x64xf32> to vector<32x64xf32>
    %cst_356 = arith.constant dense<0.000000e+00> : vector<16x64xf32>
    %870 = tpu.matmul %867, %869, %cst_356 {dimension_numbers = #tpu.dot_dimension_numbers<[1], [0], [0], [1], [0, 0, 1, 1], [], []>} : vector<16x32xf32>, vector<32x64xf32>, vector<16x64xf32> -> vector<16x64xf32>
    %c3_357 = arith.constant 3 : index
    %c0_358 = arith.constant 0 : index
    %c0_359 = arith.constant 0 : index
    %871 = vector.load %arg7[%c3_357, %c0_358, %c0_359] : memref<4x1x64xf32, #tpu.memory_space<vmem>>, vector<1x1x64xf32>
    %872 = vector.shape_cast %871 : vector<1x1x64xf32> to vector<1x64xf32>
    %873 = vector.broadcast %872 : vector<1x64xf32> to vector<16x64xf32>
    %874 = arith.addf %870, %873 : vector<16x64xf32>
    %cst_360 = arith.constant 0.000000e+00 : f32
    %875 = vector.broadcast %cst_360 : f32 to vector<16x64xf32>
    %876 = arith.maximumf %874, %875 : vector<16x64xf32>
    %c3_361 = arith.constant 3 : index
    %c0_362 = arith.constant 0 : index
    %c0_363 = arith.constant 0 : index
    %877 = vector.load %arg6[%c3_361, %c0_362, %c0_363] : memref<4x64x32xf32, #tpu.memory_space<vmem>>, vector<1x64x32xf32>
    %878 = vector.shape_cast %877 : vector<1x64x32xf32> to vector<64x32xf32>
    %cst_364 = arith.constant dense<0.000000e+00> : vector<16x32xf32>
    %879 = tpu.matmul %876, %878, %cst_364 {dimension_numbers = #tpu.dot_dimension_numbers<[1], [0], [0], [1], [0, 0, 1, 1], [], []>} : vector<16x64xf32>, vector<64x32xf32>, vector<16x32xf32> -> vector<16x32xf32>
    %c9 = arith.constant 9 : index
    %c0_365 = arith.constant 0 : index
    %c0_366 = arith.constant 0 : index
    %880 = vector.load %arg8[%c9, %c0_365, %c0_366] : memref<34x1x32xf32, #tpu.memory_space<vmem>>, vector<1x1x32xf32>
    %881 = vector.shape_cast %880 : vector<1x1x32xf32> to vector<1x32xf32>
    %882 = vector.broadcast %881 : vector<1x32xf32> to vector<16x32xf32>
    %883 = arith.addf %879, %882 : vector<16x32xf32>
    %884 = arith.addf %842, %883 : vector<16x32xf32>
    %c32 = arith.constant 32 : index
    %c0_367 = arith.constant 0 : index
    %c0_368 = arith.constant 0 : index
    %885 = vector.load %arg8[%c32, %c0_367, %c0_368] : memref<34x1x32xf32, #tpu.memory_space<vmem>>, vector<1x1x32xf32>
    %886 = vector.shape_cast %885 : vector<1x1x32xf32> to vector<1x32xf32>
    %c33 = arith.constant 33 : index
    %c0_369 = arith.constant 0 : index
    %c0_370 = arith.constant 0 : index
    %887 = vector.load %arg8[%c33, %c0_369, %c0_370] : memref<34x1x32xf32, #tpu.memory_space<vmem>>, vector<1x1x32xf32>
    %888 = vector.shape_cast %887 : vector<1x1x32xf32> to vector<1x32xf32>
    %cst_371 = arith.constant dense<0.000000e+00> : vector<16xf32>
    %889 = vector.multi_reduction <add>, %884, %cst_371 [1] : vector<16x32xf32> to vector<16xf32>
    %890 = vector.shape_cast %889 : vector<16xf32> to vector<16x1xf32>
    %cst_372 = arith.constant 3.200000e+01 : f32
    %891 = vector.broadcast %cst_372 : f32 to vector<16x1xf32>
    %892 = arith.divf %890, %891 : vector<16x1xf32>
    %893 = vector.broadcast %892 : vector<16x1xf32> to vector<16x32xf32>
    %894 = arith.subf %884, %893 : vector<16x32xf32>
    %895 = arith.mulf %894, %894 : vector<16x32xf32>
    %cst_373 = arith.constant dense<0.000000e+00> : vector<16xf32>
    %896 = vector.multi_reduction <add>, %895, %cst_373 [1] : vector<16x32xf32> to vector<16xf32>
    %897 = vector.shape_cast %896 : vector<16xf32> to vector<16x1xf32>
    %cst_374 = arith.constant 0.0322580636 : f32
    %898 = vector.broadcast %cst_374 : f32 to vector<16x1xf32>
    %899 = arith.mulf %897, %898 : vector<16x1xf32>
    %900 = math.sqrt %899 : vector<16x1xf32>
    %cst_375 = arith.constant 9.99999997E-7 : f32
    %901 = vector.broadcast %cst_375 : f32 to vector<16x1xf32>
    %902 = arith.addf %900, %901 : vector<16x1xf32>
    %903 = tpu.reciprocal %902 {approx = true} : vector<16x1xf32> -> vector<16x1xf32>
    %904 = vector.broadcast %903 : vector<16x1xf32> to vector<16x32xf32>
    %905 = arith.mulf %894, %904 : vector<16x32xf32>
    %906 = vector.broadcast %886 : vector<1x32xf32> to vector<16x32xf32>
    %907 = arith.mulf %906, %905 : vector<16x32xf32>
    %908 = vector.broadcast %888 : vector<1x32xf32> to vector<16x32xf32>
    %909 = arith.addf %907, %908 : vector<16x32xf32>
    %c0_376 = arith.constant 0 : index
    %c0_377 = arith.constant 0 : index
    %910 = vector.load %arg9[%c0_376, %c0_377] : memref<16x32xf32, #tpu.memory_space<vmem>>, vector<16x32xf32>
    tpu.vector_store %arg9[%c0_376, %c0_377], %909 {strides = array<i32>} : memref<16x32xf32, #tpu.memory_space<vmem>>, vector<16x32xf32>,
    return
  }
}

</mosaic_0001>

<bundles_post_ra>
// kernel: forward.1
= control target key start
LH: loop header
LB: loop body
LE: loop exit
PB: predicated region body
PF: predicated region fallthrough
CT: control target
= control target key end

     0   :  { %vm47_vm0 = vcmask 261120   ;;  %s11801_s0 = inlined_call_operand.vmem [shape: f32[32,32], index: 0, kind: input, shape index: {}]   ;;  %s11802_s1 = inlined_call_operand.vmem [shape: f32[3,16,16], index: 1, kind: input, shape index: {}]   ;;  %s11803_s2 = inlined_call_operand.vmem [shape: f32[6,32,96], index: 2, kind: input, shape index: {}]   ;;  %s11804_s3 = inlined_call_operand.vmem [shape: f32[6,1,96], index: 3, kind: input, shape index: {}]   ;;  %s11805_s4 = inlined_call_operand.vmem [shape: f32[6,32,32], index: 4, kind: input, shape index: {}]   ;;  %s11806_s5 = inlined_call_operand.vmem [shape: f32[4,32,64], index: 5, kind: input, shape index: {}]   ;;  %s11807_s6 = inlined_call_operand.vmem [shape: f32[4,64,32], index: 6, kind: input, shape index: {}]   ;;  %s11808_s7 = inlined_call_operand.vmem [shape: f32[4,1,64], index: 7, kind: input, shape index: {}]   ;;  %s11809_s8 = inlined_call_operand.vmem [shape: f32[34,1,32], index: 8, kind: input, shape index: {}]   ;;  %s11810_s9 = inlined_call_operand.hbm [shape: f32[16,32], index: 9, kind: output, shape index: {}]  }
   0x1   :  { %v10324_v0 = vld [vmem:[%s11801_s0] sm:$0xff]  ;;  %v10329_v1 = vld [vmem:[%s11801_s0 + $0x8] sm:$0xff] }
   0x2   :  { %14 = vsyncpa [#allocation3], 0  ;;  %v48_v2 = vsel %vm47_vm0, %v10324_v0, 0.0  ;;  %v51_v3 = vsel %vm47_vm0, %v10329_v1, 0.0  ;;  %v105_v14 = vld [vmem:[%s11803_s2] sm:$0xff]  ;;  %v106_v15 = vld [vmem:[%s11803_s2 + $0x8] sm:$0xff] }
   0x3   :  { %49 = vadd.xlane.f32.xlu0 %v48_v2  ;;  %v107_v16 = vld [vmem:[%s11803_s2 + $0x10] sm:$0xff]  ;;  %v9233_v17 = vpack.c.bf16 %v106_v15, %v105_v14  ;;  %v108_v18 = vld [vmem:[%s11803_s2 + $0x18] sm:$0xff]  ;;  %v7936_v37 = vld [vmem:[%s11809_s8 + $0xa] ss:$0 sm:$0xff]  ;;  %vm203_vm5 = vcmask 64512   ;;  %s10255_s27 = smov 88  }
   0x4   :  { %v9237_v19 = vpack.c.bf16 %v108_v18, %v107_v16  ;;  %v7937_v39 = vld [vmem:[%s11809_s8 + $0xb] ss:$0 sm:$0xff]  ;;  %v7938_v46 = vld [vmem:[%s11804_s3] ss:$0 sm:$0xff]  ;;  %s10256_s28 = smov 96   ;;  %s10257_s29 = smov 120   ;;  %vm10382_vm6 = vmpackc.low %vm203_vm5, %vm203_vm5 }
   0x5   :  { %9234 = vmatprep.subr.bf16.mxu1 %v9233_v17  ;;  %v10401_v2 = vld [vmem:[%s11802_s1 + $0x8] sm:$0xff]  ;;  %vm291_vm7 = vcmask 130048   ;;  %s10258_s13 = smov 56   ;;  %s10259_s14 = smov 64   ;;  %vm1041_vm8 = vcmask 195584   ;;  %vm1308_vm13 = vcmask 523264  }
   0x6   :  { %9236 = vmatpush3.bf16.msra.mxu1 %v9233_v17  ;;  %s10260_s15 = smov 80   ;;  %s10261_s16 = smov 112  }
   0x7   :  { %52 = vadd.xlane.f32.xlu0 %v51_v3  ;;  %9238 = vmatprep.subr.bf16.mxu1 %v9237_v19  ;;  %s11823_s17 = smov 48   ;;  %s11821_s18 = smov 104  }
   0x8   :  { %s11819_s19 = smov 72   ;;  %s11817_s20 = smov 40  }
   0x9   :  { %s11815_s21 = smov 8   ;;  %s11813_s22 = smov 16  }
   0xa   :  { %9240 = vmatpush3.bf16.msra.mxu1 %v9237_v19  ;;  %s11811_s23 = smov 24   ;;  %s11829_s10 = smov 24  }
   0xb   :  { %s11831_s30 = smov 40  }
  0x90   :  { %v50_v4 = vpop.xlane.xlu0 %49 }
  0x91   :  { %v55_v5 = vmul.f32 0.03125, %v50_v4 }
  0x93   :  { %v57_v6 = vsub.f32 %v10324_v0, %v55_v5  ;;  %v10406_v5 = vld [vmem:[%s11802_s1] sm:$0xff] }
  0x94   :  { %v53_v7 = vpop.xlane.xlu0 %52 }
  0x95   :  { %v56_v8 = vmul.f32 0.03125, %v53_v7  ;;  %v59_v9 = vmul.f32 %v57_v6, %v57_v6 }
  0x97   :  { %v58_v10 = vsub.f32 %v10329_v1, %v56_v8  ;;  %v61_v11 = vsel %vm47_vm0, %v59_v9, 0.0 }
  0x98   :  { %62 = vadd.xlane.f32.xlu1 %v61_v11 }
  0x99   :  { %v60_v12 = vmul.f32 %v58_v10, %v58_v10 }
  0x9b   :  { %v64_v13 = vsel %vm47_vm0, %v60_v12, 0.0 }
  0x9c   :  { %65 = vadd.xlane.f32.xlu1 %v64_v13 }
 0x125   :  { %v63_v20 = vpop.xlane.xlu1 %62 }
 0x126   :  { %v67_v21 = vmul.f32 0.032258064, %v63_v20 }
 0x128   :  { %9937 = vrsqrt.f32 %v67_v21  ;;  %vm71_vm1 = vcmp.eq.f32.partialorder %v67_v21, inf  ;;  %v74_v26 = vand.u32 2147483648, %v67_v21  ;;  %vm73_vm2 = vcmp.eq.f32.partialorder %v67_v21, 0.0 }
 0x129   :  { %v66_v22 = vpop.xlane.xlu1 %65 }
 0x12a   :  { %v68_v23 = vmul.f32 0.032258064, %v66_v22 }
 0x12c   :  { %9939 = vrsqrt.f32 %v68_v23  ;;  %vm78_vm3 = vcmp.eq.f32.partialorder %v68_v23, inf  ;;  %v81_v32 = vand.u32 2147483648, %v68_v23  ;;  %vm80_vm4 = vcmp.eq.f32.partialorder %v68_v23, 0.0 }
 0x132   :  { %v9938_v24 = vpop.eup %9937 }
 0x133   :  { %v70_v25 = vmul.f32 %v9938_v24, %v67_v21 }
 0x135   :  { %v72_v27 = vsel %vm71_vm1, %v67_v21, %v70_v25 }
 0x136   :  { %v9940_v28 = vpop.eup %9939  ;;  %v75_v29 = vsel %vm73_vm2, %v74_v26, %v72_v27 }
 0x137   :  { %v77_v30 = vmul.f32 %v9940_v28, %v68_v23  ;;  %v83_v31 = vadd.f32 1e-06, %v75_v29 }
 0x139   :  { %v79_v33 = vsel %vm78_vm3, %v68_v23, %v77_v30  ;;  %9941 = vrcp.f32 %v83_v31 }
 0x13a   :  { %v82_v34 = vsel %vm80_vm4, %v81_v32, %v79_v33 }
 0x13b   :  { %v84_v35 = vadd.f32 1e-06, %v82_v34 }
 0x13d   :  { %9943 = vrcp.f32 %v84_v35 }
 0x143   :  { %v9942_v36 = vpop.eup %9941 }
 0x144   :  { %v87_v38 = vmul.f32 %v9942_v36, %v57_v6 }
 0x146   :  { %v95_v40 = vmul.f32 %v7936_v37, %v87_v38 }
 0x147   :  { %v9944_v41 = vpop.eup %9943 }
 0x148   :  { %v88_v42 = vmul.f32 %v9944_v41, %v58_v10  ;;  %v103_v43 = vadd.f32 %v7937_v39, %v95_v40 }
 0x14a   :  { %v96_v44 = vmul.f32 %v7936_v37, %v88_v42  ;;  %8631 = vmatprep.mubr.msk.f32.mxu1 %vm47_vm0, %v103_v43 }
 0x14c   :  { %v104_v45 = vadd.f32 %v7937_v39, %v96_v44 }
 0x14e   :  { %8632 = vmatmul.mubr.msk.f32.vlgmr.msra.gmra.mrb[0].mxu1 %vm47_vm0, %v104_v45 }
 0x221   :  { %v8633_v47 = vpop.f32.mrb[0].mxu1 }
 0x222   :  { %v10362_v48 = vadd.f32 %v8633_v47, %v7938_v46  ;;  %v188_v49 = vpop.f32.mrb[1].mxu1 }
 0x223   :  { %v10364_v50 = vadd.f32 %v7938_v46, %v188_v49 }
 0x225   :  { %8638 = vmatprep.mubr.msk.f32.mxu1 %vm203_vm5, %v10364_v50  ;;  %v10370_v51 = vpack.i.bf16 %v10362_v48, %v10364_v50 }
 0x227   :  { %9703 = vrot.lane.b32.xlu1 %v10370_v51, %s10255_s27  ;;  %9698 = vrot.lane.b32.xlu0 %v10370_v51, %s10256_s28 }
 0x22b   :  { %401 = vrot.lane.b32.xlu1 %v10364_v50, %s10257_s29 }
 0x22f   :  { %403 = vrot.lane.b32.xlu1 %v10362_v48, %s10257_s29 }
 0x299   :  { %v9704_v52 = vpop.permute.xlu1 %9703  ;;  %v9699_v53 = vpop.permute.xlu0 %9698 }
 0x29a   :  { %v9706_v54 = vunpack.i.h.bf16 %v9704_v52  ;;  %v9705_v55 = vunpack.i.l.bf16 %v9704_v52  ;;  %v9701_v56 = vunpack.i.h.bf16 %v9699_v53  ;;  %v9700_v57 = vunpack.i.l.bf16 %v9699_v53 }
 0x29c   :  { %v9241_v59 = vpack.c.bf16 %v9701_v56, %v9700_v57  ;;  %v9251_v60 = vpack.c.bf16 %v9706_v54, %v9705_v55 }
 0x29d   :  { %v402_v61 = vpop.permute.xlu1 %401 }
 0x29e   :  { %9243 = vmatprep.subr.msk.bf16.mxu1 %vm10382_vm6, %v9241_v59 }
 0x29f   :  { %9246 = vmatpush3.bf16.xpose.msk.msra.mxu1 %vm10382_vm6, %v9241_v59 }
 0x2a0   :  { %9253 = vmatprep.subr.msk.bf16.mxu1 %vm10382_vm6, %v9251_v60 }
 0x2a1   :  { %v404_v62 = vpop.permute.xlu1 %403 }
 0x2a6   :  { %8639 = vmatmul.mubr.msk.f32.vlgmr.msra.gmra.mrb[2].mxu1 %vm203_vm5, %v10362_v48 }
 0x2a7   :  { %9256 = vmatpush3.bf16.xpose.msk.msra.mxu1 %vm10382_vm6, %v9251_v60  ;;  %8652 = vmatprep.mubr.msk.f32.mxu1 %vm203_vm5, %v402_v61 }
 0x2ae   :  { %8653 = vmatmul.mubr.msk.f32.vlgmr.msra.gmra.mrb[4].mxu1 %vm203_vm5, %v404_v62 }
 0x379   :  { %v8640_v63 = vpop.f32.mrb[2].mxu1 }
 0x37a   :  { %v288_v3 = vmul.f32 0.35355338, %v8640_v63  ;;  %v278_v4 = vpop.f32.mrb[3].mxu1 }
 0x37b   :  { %v287_v6 = vmul.f32 0.35355338, %v278_v4 }
 0x37c   :  { %v290_v7 = vadd.f32 %v288_v3, %v10401_v2 }
 0x37d   :  { %v289_v8 = vadd.f32 %v287_v6, %v10406_v5 }
 0x37e   :  { %v295_v9 = vsel %vm291_vm7, %v290_v7, -inf }
 0x37f   :  { %296 = vmax.xlane.f32.xlu1 %v295_v9  ;;  %v292_v10 = vsel %vm291_vm7, %v289_v8, -inf }
 0x380   :  { %293 = vmax.xlane.f32.xlu0 %v292_v10 }
 0x381   :  { %v8654_v11 = vpop.f32.mrb[4].mxu1 }
 0x382   :  { %v483_v12 = vpop.f32.mrb[5].mxu1  ;;  %v493_v13 = vmul.f32 0.35355338, %v8654_v11 }
 0x383   :  { %v492_v14 = vmul.f32 0.35355338, %v483_v12 }
 0x384   :  { %v495_v17 = vadd.f32 %v493_v13, %v10401_v2 }
 0x385   :  { %v494_v15 = vadd.f32 %v492_v14, %v10406_v5 }
 0x386   :  { %v499_v18 = vsel %vm291_vm7, %v495_v17, -inf }
 0x387   :  { %v496_v16 = vsel %vm291_vm7, %v494_v15, -inf }
 0x388   :  { %497 = vmax.xlane.f32.xlu0 %v496_v16 }
 0x38c   :  { %500 = vmax.xlane.f32.xlu0 %v499_v18 }
 0x40c   :  { %v297_v19 = vpop.xlane.xlu1 %296 }
 0x40d   :  { %v299_v20 = vsub.f32 %v290_v7, %v297_v19  ;;  %v294_v21 = vpop.xlane.xlu0 %293 }
 0x40e   :  { %v298_v22 = vsub.f32 %v289_v8, %v294_v21 }
 0x40f   :  { %v302_v23 = vmul.f32 1.442695, %v299_v20 }
 0x410   :  { %v300_v24 = vmul.f32 1.442695, %v298_v22 }
 0x411   :  { %9945 = vpow2.f32 %v302_v23 }
 0x412   :  { %9947 = vpow2.f32 %v300_v24 }
 0x415   :  { %v498_v25 = vpop.xlane.xlu0 %497 }
 0x416   :  { %v502_v26 = vsub.f32 %v494_v15, %v498_v25 }
 0x418   :  { %v504_v27 = vmul.f32 1.442695, %v502_v26 }
 0x419   :  { %v501_v28 = vpop.xlane.xlu0 %500 }
 0x41a   :  { %9949 = vpow2.f32 %v504_v27  ;;  %v503_v29 = vsub.f32 %v495_v17, %v501_v28 }
 0x41b   :  { %v9946_v30 = vpop.eup %9945 }
 0x41c   :  { %v9948_v31 = vpop.eup %9947  ;;  %v506_v32 = vmul.f32 1.442695, %v503_v29  ;;  %v307_v33 = vsel %vm291_vm7, %v9946_v30, 0.0 }
 0x41d   :  { %308 = vadd.xlane.f32.xlu1 %v307_v33  ;;  %v304_v34 = vsel %vm291_vm7, %v9948_v31, 0.0 }
 0x41e   :  { %9951 = vpow2.f32 %v506_v32  ;;  %305 = vadd.xlane.f32.xlu0 %v304_v34 }
 0x424   :  { %v9950_v35 = vpop.eup %9949 }
 0x425   :  { %v508_v36 = vsel %vm291_vm7, %v9950_v35, 0.0 }
 0x426   :  { %509 = vadd.xlane.f32.xlu0 %v508_v36 }
 0x428   :  { %v9952_v37 = vpop.eup %9951 }
 0x429   :  { %v511_v38 = vsel %vm291_vm7, %v9952_v37, 0.0 }
 0x42a   :  { %512 = vadd.xlane.f32.xlu1 %v511_v38 }
 0x43b   :  { %9713 = vrot.lane.b32.xlu1 %v10370_v51, %s10258_s13 }
 0x43c   :  { %9708 = vrot.lane.b32.xlu0 %v10370_v51, %s10259_s14 }
 0x43f   :  { %9718 = vrot.lane.b32.xlu1 %v10370_v51, %s10260_s15 }
 0x440   :  { %607 = vrot.lane.b32.xlu0 %v10362_v48, %s10261_s16 }
 0x443   :  { %605 = vrot.lane.b32.xlu1 %v10364_v50, %s10261_s16 }
 0x4aa   :  { %v309_v40 = vpop.xlane.xlu1 %308 }
 0x4ab   :  { %v306_v39 = vpop.xlane.xlu0 %305 }
 0x4ac   :  { %9953 = vrcp.f32 %v306_v39 }
 0x4ad   :  { %9955 = vrcp.f32 %v309_v40 }
 0x4b3   :  { %v510_v41 = vpop.xlane.xlu0 %509 }
 0x4b4   :  { %9957 = vrcp.f32 %v510_v41 }
 0x4b6   :  { %v9954_v42 = vpop.eup %9953 }
 0x4b7   :  { %v513_v43 = vpop.xlane.xlu1 %512  ;;  %v9709_v44 = vpop.permute.xlu0 %9708  ;;  %v312_v45 = vmul.f32 %v9954_v42, %v9948_v31 }
 0x4b8   :  { %9959 = vrcp.f32 %v513_v43  ;;  %v9711_v46 = vunpack.i.h.bf16 %v9709_v44  ;;  %v9710_v47 = vunpack.i.l.bf16 %v9709_v44  ;;  %v9956_v52 = vpop.eup %9955 }
 0x4b9   :  { %8645 = vmatprep.mubr.msk.f32.mxu0 %vm291_vm7, %v312_v45  ;;  %v313_v57 = vmul.f32 %v9956_v52, %v9946_v30 }
 0x4ba   :  { %v9247_v49 = vpack.c.bf16 %v9711_v46, %v9710_v47 }
 0x4bb   :  { %v9714_v53 = vpop.permute.xlu1 %9713  ;;  %v608_v8 = vpop.permute.xlu0 %607 }
 0x4bc   :  { %v9716_v54 = vunpack.i.h.bf16 %v9714_v53  ;;  %v9715_v55 = vunpack.i.l.bf16 %v9714_v53  ;;  %9248 = vmatprep.subr.bf16.mxu0 %v9247_v49 }
 0x4bd   :  { %9250 = vmatpush3.bf16.msra.mxu0 %v9247_v49 }
 0x4be   :  { %v9958_v56 = vpop.eup %9957  ;;  %v9257_v59 = vpack.c.bf16 %v9716_v54, %v9715_v55 }
 0x4bf   :  { %v9719_v60 = vpop.permute.xlu1 %9718  ;;  %v516_v61 = vmul.f32 %v9958_v56, %v9950_v35 }
 0x4c0   :  { %v9721_v62 = vunpack.i.h.bf16 %v9719_v60  ;;  %v9720_v63 = vunpack.i.l.bf16 %v9719_v60  ;;  %8646 = vmatmul.mubr.msk.f32.vlgmr.msra.gmra.mrb[0].mxu0 %vm291_vm7, %v313_v57  ;;  %9258 = vmatprep.subr.bf16.mxu0 %v9257_v59 }
 0x4c1   :  { %9260 = vmatpush3.bf16.msra.mxu0 %v9257_v59  ;;  %8659 = vmatprep.mubr.msk.f32.mxu0 %vm291_vm7, %v516_v61 }
 0x4c2   :  { %v9960_v3 = vpop.eup %9959  ;;  %v9261_v4 = vpack.c.bf16 %v9721_v62, %v9720_v63 }
 0x4c3   :  { %v517_v6 = vmul.f32 %v9960_v3, %v9952_v37  ;;  %v606_v7 = vpop.permute.xlu1 %605 }
 0x4c4   :  { %9263 = vmatprep.subr.msk.bf16.mxu0 %vm10382_vm6, %v9261_v4 }
 0x4c5   :  { %8660 = vmatmul.mubr.msk.f32.vlgmr.msra.gmra.mrb[2].mxu0 %vm291_vm7, %v517_v6 }
 0x4c6   :  { %8666 = vmatprep.mubr.msk.f32.mxu0 %vm203_vm5, %v606_v7 }
 0x4ca   :  { %9266 = vmatpush3.bf16.xpose.msk.msra.mxu0 %vm10382_vm6, %v9261_v4 }
 0x4d1   :  { %8667 = vmatmul.mubr.msk.f32.vlgmr.msra.gmra.mrb[4].mxu0 %vm203_vm5, %v608_v8 }
 0x593   :  { %v10440_v9 = vpop.f32.mrb[0].mxu0 }
 0x594   :  { %v10442_v10 = vpop.f32.mrb[1].mxu0 }
 0x598   :  { %v10444_v11 = vpop.f32.mrb[2].mxu0 }
 0x599   :  { %v10446_v12 = vpop.f32.mrb[3].mxu0 }
 0x5a4   :  { %v8668_v13 = vpop.f32.mrb[4].mxu0 }
 0x5a5   :  { %v697_v14 = vmul.f32 0.35355338, %v8668_v13  ;;  %v687_v15 = vpop.f32.mrb[5].mxu0 }
 0x5a6   :  { %v696_v16 = vmul.f32 0.35355338, %v687_v15 }
 0x5a7   :  { %v699_v17 = vadd.f32 %v697_v14, %v10401_v2 }
 0x5a8   :  { %v698_v18 = vadd.f32 %v696_v16, %v10406_v5 }
 0x5a9   :  { %v703_v19 = vsel %vm291_vm7, %v699_v17, -inf }
 0x5aa   :  { %704 = vmax.xlane.f32.xlu0 %v703_v19  ;;  %v700_v20 = vsel %vm291_vm7, %v698_v18, -inf }
 0x5ab   :  { %701 = vmax.xlane.f32.xlu1 %v700_v20 }
 0x5bc   :  { %9723 = vrot.lane.b32.xlu1 %v10370_v51, %s11823_s17 }
 0x5c0   :  { %809 = vrot.lane.b32.xlu1 %v10364_v50, %s11821_s18 }
 0x5c4   :  { %811 = vrot.lane.b32.xlu1 %v10362_v48, %s11821_s18 }
 0x637   :  { %v705_v21 = vpop.xlane.xlu0 %704 }
 0x638   :  { %v707_v22 = vsub.f32 %v699_v17, %v705_v21  ;;  %v702_v23 = vpop.xlane.xlu1 %701  ;;  %v1044_v21 = vld [vmem:[%s11805_s4] sm:$0xff] }
 0x639   :  { %v706_v24 = vsub.f32 %v698_v18, %v702_v23 }
 0x63a   :  { %v710_v25 = vmul.f32 1.442695, %v707_v22  ;;  %v1046_v22 = vld [vmem:[%s11805_s4 + $0x10] sm:$0xff] }
 0x63b   :  { %v708_v26 = vmul.f32 1.442695, %v706_v24  ;;  %v1047_v24 = vld [vmem:[%s11805_s4 + $0x18] sm:$0xff] }
 0x63c   :  { %9961 = vpow2.f32 %v710_v25  ;;  %v9724_v27 = vpop.permute.xlu1 %9723  ;;  %v9285_v25 = vpack.c.bf16 %v1047_v24, %v1046_v22 }
 0x63d   :  { %v9726_v28 = vunpack.i.h.bf16 %v9724_v27  ;;  %v9725_v29 = vunpack.i.l.bf16 %v9724_v27  ;;  %9963 = vpow2.f32 %v708_v26 }
 0x63f   :  { %v9267_v30 = vpack.c.bf16 %v9726_v28, %v9725_v29 }
 0x640   :  { %v810_v43 = vpop.permute.xlu1 %809 }
 0x641   :  { %9268 = vmatprep.subr.bf16.mxu1 %v9267_v30 }
 0x642   :  { %9270 = vmatpush3.bf16.msra.mxu1 %v9267_v30 }
 0x644   :  { %v812_v44 = vpop.permute.xlu1 %811 }
 0x646   :  { %v9962_v31 = vpop.eup %9961 }
 0x647   :  { %v715_v50 = vsel %vm291_vm7, %v9962_v31, 0.0  ;;  %v9964_v32 = vpop.eup %9963 }
 0x648   :  { %716 = vadd.xlane.f32.xlu0 %v715_v50  ;;  %v712_v48 = vsel %vm291_vm7, %v9964_v32, 0.0 }
 0x64c   :  { %713 = vadd.xlane.f32.xlu0 %v712_v48 }
 0x662   :  { %9728 = vrot.lane.b32.xlu0 %v10370_v51, %s11819_s19 }
 0x6d5   :  { %v717_v33 = vpop.xlane.xlu0 %716 }
 0x6d6   :  { %9965 = vrcp.f32 %v717_v33 }
 0x6d9   :  { %v714_v34 = vpop.xlane.xlu0 %713 }
 0x6da   :  { %9967 = vrcp.f32 %v714_v34 }
 0x6dd   :  { %v9729_v35 = vpop.permute.xlu0 %9728 }
 0x6de   :  { %v9731_v36 = vunpack.i.h.bf16 %v9729_v35  ;;  %v9730_v37 = vunpack.i.l.bf16 %v9729_v35 }
 0x6e0   :  { %v9271_v38 = vpack.c.bf16 %v9731_v36, %v9730_v37  ;;  %v9966_v39 = vpop.eup %9965 }
 0x6e1   :  { %v721_v42 = vmul.f32 %v9966_v39, %v9962_v31 }
 0x6e2   :  { %9273 = vmatprep.subr.msk.bf16.mxu1 %vm10382_vm6, %v9271_v38 }
 0x6e4   :  { %v9968_v40 = vpop.eup %9967 }
 0x6e5   :  { %v720_v41 = vmul.f32 %v9968_v40, %v9964_v32 }
 0x6e7   :  { %8673 = vmatprep.mubr.msk.f32.mxu1 %vm291_vm7, %v720_v41 }
 0x6e8   :  { %8674 = vmatmul.mubr.msk.f32.vlgmr.msra.gmra.mrb[6].mxu1 %vm291_vm7, %v721_v42 }
 0x6e9   :  { %9276 = vmatpush3.bf16.xpose.msk.msra.mxu1 %vm10382_vm6, %v9271_v38  ;;  %8680 = vmatprep.mubr.msk.f32.mxu1 %vm203_vm5, %v810_v43 }
 0x6f0   :  { %8681 = vmatmul.mubr.msk.f32.vlgmr.msra.gmra.mrb[8].mxu1 %vm203_vm5, %v812_v44 }
 0x7bb   :  { %v8675_v45 = vpop.f32.mrb[6].mxu1 }
 0x7bc   :  { %v800_v46 = vpop.f32.mrb[7].mxu1 }
 0x7c3   :  { %v8682_v47 = vpop.f32.mrb[8].mxu1 }
 0x7c4   :  { %v901_v49 = vmul.f32 0.35355338, %v8682_v47  ;;  %v891_v52 = vpop.f32.mrb[9].mxu1 }
 0x7c5   :  { %v900_v53 = vmul.f32 0.35355338, %v891_v52 }
 0x7c6   :  { %v903_v54 = vadd.f32 %v901_v49, %v10401_v2 }
 0x7c7   :  { %v902_v55 = vadd.f32 %v900_v53, %v10406_v5 }
 0x7c8   :  { %v907_v56 = vsel %vm291_vm7, %v903_v54, -inf }
 0x7c9   :  { %908 = vmax.xlane.f32.xlu0 %v907_v56  ;;  %v904_v57 = vsel %vm291_vm7, %v902_v55, -inf  ;;  %v1198_v56 = vld [vmem:[%s11806_s5] sm:$0xff] }
 0x7ca   :  { %905 = vmax.xlane.f32.xlu1 %v904_v57  ;;  %v1199_v57 = vld [vmem:[%s11806_s5 + $0x8] sm:$0xff] }
 0x7db   :  { %9733 = vrot.lane.b32.xlu1 %v10370_v51, %s11817_s20 }
 0x7df   :  { %1017 = vrot.lane.b32.xlu1 %v10444_v11, %s11815_s21 }
 0x7e3   :  { %1023 = vrot.lane.b32.xlu1 %v800_v46, %s11813_s22 }
 0x7e7   :  { %1025 = vrot.lane.b32.xlu1 %v8675_v45, %s11813_s22  ;;  %s11828_s22 = smov 16  }
 0x856   :  { %v909_v59 = vpop.xlane.xlu0 %908 }
 0x857   :  { %v911_v60 = vsub.f32 %v903_v54, %v909_v59  ;;  %v906_v61 = vpop.xlane.xlu1 %905  ;;  %v1200_v59 = vld [vmem:[%s11806_s5 + $0x10] sm:$0xff] }
 0x858   :  { %v910_v62 = vsub.f32 %v902_v55, %v906_v61  ;;  %v1201_v61 = vld [vmem:[%s11806_s5 + $0x18] sm:$0xff] }
 0x859   :  { %v914_v63 = vmul.f32 1.442695, %v911_v60  ;;  %v9289_v60 = vpack.c.bf16 %v1199_v57, %v1198_v56 }
 0x85a   :  { %v912_v3 = vmul.f32 1.442695, %v910_v62  ;;  %v9293_v62 = vpack.c.bf16 %v1201_v61, %v1200_v59 }
 0x85b   :  { %v9734_v4 = vpop.permute.xlu1 %9733  ;;  %9290 = vmatprep.subr.bf16.mxu1 %v9289_v60 }
 0x85c   :  { %9969 = vpow2.f32 %v912_v3  ;;  %v9736_v6 = vunpack.i.h.bf16 %v9734_v4  ;;  %v9735_v7 = vunpack.i.l.bf16 %v9734_v4  ;;  %9292 = vmatpush3.bf16.msra.mxu1 %v9289_v60  ;;  %v1293_v3 = vld [vmem:[%s11807_s6 + $0x8] sm:$0xff]  ;;  %v1294_v4 = vld [vmem:[%s11807_s6 + $0x10] sm:$0xff] }
 0x85d   :  { %9971 = vpow2.f32 %v914_v63  ;;  %9294 = vmatprep.subr.bf16.mxu1 %v9293_v62  ;;  %v1292_v63 = vld [vmem:[%s11807_s6] sm:$0xff] }
 0x85e   :  { %v9277_v51 = vpack.c.bf16 %v9736_v6, %v9735_v7  ;;  %v9297_v6 = vpack.c.bf16 %v1293_v3, %v1292_v63  ;;  %v1295_v7 = vld [vmem:[%s11807_s6 + $0x18] sm:$0xff] }
 0x85f   :  { %v1018_v28 = vpop.permute.xlu1 %1017 }
 0x860   :  { %9278 = vmatprep.subr.bf16.mxu0 %v9277_v51  ;;  %v1038_v48 = vsel %vm203_vm5, %v10440_v9, %v1018_v28  ;;  %9296 = vmatpush3.bf16.msra.mxu1 %v9293_v62 }
 0x861   :  { %9280 = vmatpush3.bf16.msra.mxu0 %v9277_v51  ;;  %v9301_v51 = vpack.c.bf16 %v1295_v7, %v1294_v4  ;;  %v7984_v7 = vld [vmem:[%s11803_s2 + $0x28] sm:$0xff] }
 0x863   :  { %v1024_v29 = vpop.permute.xlu1 %1023 }
 0x866   :  { %v9970_v8 = vpop.eup %9969 }
 0x867   :  { %v916_v11 = vsel %vm291_vm7, %v9970_v8, 0.0  ;;  %v9972_v13 = vpop.eup %9971  ;;  %v1026_v31 = vpop.permute.xlu1 %1025 }
 0x868   :  { %917 = vadd.xlane.f32.xlu0 %v916_v11  ;;  %v919_v14 = vsel %vm291_vm7, %v9972_v13, 0.0  ;;  %v1040_v35 = vsel %vm291_vm7, %v1038_v48, %v1026_v31  ;;  %v1297_v11 = vld [vmem:[%s11807_s6 + $0x28] sm:$0xff] }
 0x86c   :  { %920 = vadd.xlane.f32.xlu0 %v919_v14 }
 0x882   :  { %1015 = vrot.lane.b32.xlu0 %v10446_v12, %s11815_s21  ;;  %v1045_v12 = vld [vmem:[%s11805_s4 + $0x8] sm:$0xff]  ;;  %s11827_s21 = smov 8  }
 0x883   :  { %v9281_v23 = vpack.c.bf16 %v1045_v12, %v1044_v21 }
 0x885   :  { %9282 = vmatprep.subr.bf16.mxu0 %v9281_v23 }
 0x8f5   :  { %v918_v15 = vpop.xlane.xlu0 %917 }
 0x8f6   :  { %9973 = vrcp.f32 %v918_v15 }
 0x8f9   :  { %v921_v16 = vpop.xlane.xlu0 %920 }
 0x8fa   :  { %9975 = vrcp.f32 %v921_v16 }
 0x8fd   :  { %v1016_v30 = vpop.permute.xlu0 %1015 }
 0x8fe   :  { %v1037_v50 = vsel %vm203_vm5, %v10442_v10, %v1016_v30  ;;  %v7965_v10 = vld [vmem:[%s11809_s8] ss:$0 sm:$0xff]  ;;  %v7970_v30 = vld [vmem:[%s11809_s8 + $0xc] ss:$0 sm:$0xff] }
 0x8ff   :  { %v1039_v33 = vsel %vm291_vm7, %v1037_v50, %v1024_v29  ;;  %v7971_v50 = vld [vmem:[%s11809_s8 + $0xd] ss:$0 sm:$0xff] }
 0x900   :  { %v9974_v17 = vpop.eup %9973 }
 0x901   :  { %v924_v18 = vmul.f32 %v9974_v17, %v9970_v8  ;;  %v1296_v8 = vld [vmem:[%s11807_s6 + $0x20] sm:$0xff] }
 0x903   :  { %8687 = vmatprep.mubr.msk.f32.mxu0 %vm291_vm7, %v924_v18 }
 0x904   :  { %v9976_v19 = vpop.eup %9975 }
 0x905   :  { %v925_v20 = vmul.f32 %v9976_v19, %v9972_v13  ;;  %v9305_v13 = vpack.c.bf16 %v1297_v11, %v1296_v8  ;;  %v7986_v11 = vld [vmem:[%s11803_s2 + $0x38] sm:$0xff] }
 0x907   :  { %8688 = vmatmul.mubr.msk.f32.vlgmr.msra.gmra.mrb[6].mxu0 %vm291_vm7, %v925_v20 }
 0x908   :  { %9284 = vmatpush3.bf16.msra.mxu0 %v9281_v23 }
 0x909   :  { %9286 = vmatprep.subr.bf16.mxu0 %v9285_v25 }
 0x90c   :  { %9288 = vmatpush3.bf16.msra.mxu0 %v9285_v25 }
 0x90d   :  { %9298 = vmatprep.subr.bf16.mxu0 %v9297_v6 }
 0x9da   :  { %v8689_v26 = vpop.f32.mrb[6].mxu0 }
 0x9db   :  { %1033 = vrot.lane.b32.xlu1 %v8689_v26, %s11811_s23  ;;  %v1004_v27 = vpop.f32.mrb[7].mxu0 }
 0x9dc   :  { %1031 = vrot.lane.b32.xlu0 %v1004_v27, %s11811_s23 }
 0xa4d   :  { %v1034_v32 = vpop.permute.xlu1 %1033 }
 0xa4e   :  { %v1032_v34 = vpop.permute.xlu0 %1031  ;;  %v1043_v37 = vsel %vm1041_vm8, %v1040_v35, %v1034_v32 }
 0xa4f   :  { %v1042_v36 = vsel %vm1041_vm8, %v1039_v33, %v1032_v34 }
 0xa50   :  { %8698 = vmatprep.mubr.msk.f32.mxu0 %vm47_vm0, %v1042_v36 }
 0xa51   :  { %8699 = vmatmul.mubr.msk.f32.vlgmr.msra.gmra.mrb[8].mxu0 %vm47_vm0, %v1043_v37  ;;  %v1298_v37 = vld [vmem:[%s11807_s6 + $0x30] sm:$0xff] }
 0xa52   :  { %9300 = vmatpush3.bf16.msra.mxu0 %v9297_v6  ;;  %v7983_v6 = vld [vmem:[%s11803_s2 + $0x20] sm:$0xff] }
 0xa53   :  { %9302 = vmatprep.subr.bf16.mxu0 %v9301_v51  ;;  %v9313_v8 = vpack.c.bf16 %v7984_v7, %v7983_v6 }
 0xa55   :  { %9314 = vmatprep.subr.bf16.mxu1 %v9313_v8 }
 0xa56   :  { %9304 = vmatpush3.bf16.msra.mxu0 %v9301_v51  ;;  %v7985_v51 = vld [vmem:[%s11803_s2 + $0x30] sm:$0xff] }
 0xa57   :  { %9306 = vmatprep.subr.bf16.mxu0 %v9305_v13 }
 0xa5a   :  { %9308 = vmatpush3.bf16.msra.mxu0 %v9305_v13  ;;  %v9317_v13 = vpack.c.bf16 %v7986_v11, %v7985_v51 }
 0xb24   :  { %v8700_v38 = vpop.f32.mrb[8].mxu0 }
 0xb25   :  { %v1133_v39 = vadd.f32 %v8700_v38, %v7965_v10  ;;  %v1127_v9 = vpop.f32.mrb[9].mxu0 }
 0xb26   :  { %v1128_v40 = vadd.f32 %v7965_v10, %v1127_v9  ;;  %v1299_v10 = vld [vmem:[%s11807_s6 + $0x38] sm:$0xff] }
 0xb27   :  { %v10514_v41 = vadd.f32 %v1133_v39, %v10329_v1  ;;  %v9309_v38 = vpack.c.bf16 %v1299_v10, %v1298_v37  ;;  %v7972_v39 = vld [vmem:[%s11808_s7] ss:$0 sm:$0xff]  ;;  %v7988_v37 = vld [vmem:[%s11804_s3 + $0x1] ss:$0 sm:$0xff] }
 0xb28   :  { %v10517_v42 = vadd.f32 %v1128_v40, %v10324_v0 }
 0xb29   :  { %v1145_v43 = vsel %vm47_vm0, %v10514_v41, 0.0  ;;  %9310 = vmatprep.subr.bf16.mxu0 %v9309_v38 }
 0xb2a   :  { %1146 = vadd.xlane.f32.xlu1 %v1145_v43  ;;  %v1142_v44 = vsel %vm47_vm0, %v10517_v42, 0.0  ;;  %9312 = vmatpush3.bf16.msra.mxu0 %v9309_v38 }
 0xb2b   :  { %1143 = vadd.xlane.f32.xlu0 %v1142_v44 }
 0xbb7   :  { %v1147_v45 = vpop.xlane.xlu1 %1146 }
 0xbb8   :  { %v1149_v46 = vmul.f32 0.03125, %v1147_v45  ;;  %v1144_v47 = vpop.xlane.xlu0 %1143 }
 0xbb9   :  { %v1148_v49 = vmul.f32 0.03125, %v1144_v47  ;;  %v7976_v47 = vld [vmem:[%s11809_s8 + $0x6] ss:$0 sm:$0xff] }
 0xbba   :  { %v10524_v52 = vsub.f32 %v10514_v41, %v1149_v46 }
 0xbbb   :  { %v1150_v1 = vsub.f32 %v10517_v42, %v1148_v49 }
 0xbbc   :  { %v1153_v54 = vmul.f32 %v10524_v52, %v10524_v52 }
 0xbbd   :  { %v1152_v53 = vmul.f32 %v1150_v1, %v1150_v1 }
 0xbbe   :  { %v1157_v55 = vsel %vm47_vm0, %v1153_v54, 0.0 }
 0xbbf   :  { %v1154_v0 = vsel %vm47_vm0, %v1152_v53, 0.0 }
 0xbc0   :  { %1155 = vadd.xlane.f32.xlu0 %v1154_v0 }
 0xbc4   :  { %1158 = vadd.xlane.f32.xlu0 %v1157_v55 }
 0xc4d   :  { %v1156_v14 = vpop.xlane.xlu0 %1155 }
 0xc4e   :  { %v1160_v15 = vmul.f32 0.032258064, %v1156_v14 }
 0xc50   :  { %9977 = vrsqrt.f32 %v1160_v15  ;;  %vm1164_vm9 = vcmp.eq.f32.partialorder %v1160_v15, inf  ;;  %v1167_v20 = vand.u32 2147483648, %v1160_v15  ;;  %vm1166_vm10 = vcmp.eq.f32.partialorder %v1160_v15, 0.0 }
 0xc51   :  { %v1159_v16 = vpop.xlane.xlu0 %1158 }
 0xc52   :  { %v1161_v17 = vmul.f32 0.032258064, %v1159_v16 }
 0xc54   :  { %9979 = vrsqrt.f32 %v1161_v17  ;;  %vm1171_vm11 = vcmp.eq.f32.partialorder %v1161_v17, inf  ;;  %v1174_v25 = vand.u32 2147483648, %v1161_v17  ;;  %vm1173_vm12 = vcmp.eq.f32.partialorder %v1161_v17, 0.0 }
 0xc5a   :  { %v9978_v18 = vpop.eup %9977 }
 0xc5b   :  { %v1163_v19 = vmul.f32 %v9978_v18, %v1160_v15 }
 0xc5d   :  { %v1165_v21 = vsel %vm1164_vm9, %v1160_v15, %v1163_v19 }
 0xc5e   :  { %v9980_v12 = vpop.eup %9979  ;;  %v1168_v22 = vsel %vm1166_vm10, %v1167_v20, %v1165_v21 }
 0xc5f   :  { %v1176_v23 = vadd.f32 1e-06, %v1168_v22  ;;  %v1170_v24 = vmul.f32 %v9980_v12, %v1161_v17 }
 0xc61   :  { %v1172_v26 = vsel %vm1171_vm11, %v1161_v17, %v1170_v24  ;;  %9981 = vrcp.f32 %v1176_v23 }
 0xc62   :  { %v1175_v27 = vsel %vm1173_vm12, %v1174_v25, %v1172_v26 }
 0xc63   :  { %v1177_v28 = vadd.f32 1e-06, %v1175_v27 }
 0xc65   :  { %9983 = vrcp.f32 %v1177_v28 }
 0xc6b   :  { %v9982_v29 = vpop.eup %9981 }
 0xc6c   :  { %v1180_v31 = vmul.f32 %v9982_v29, %v1150_v1 }
 0xc6e   :  { %v1188_v32 = vmul.f32 %v7970_v30, %v1180_v31 }
 0xc6f   :  { %v9984_v48 = vpop.eup %9983 }
 0xc70   :  { %v1181_v33 = vmul.f32 %v9984_v48, %v10524_v52  ;;  %v1196_v34 = vadd.f32 %v7971_v50, %v1188_v32  ;;  %v7982_v48 = vld [vmem:[%s11809_s8 + $0xf] ss:$0 sm:$0xff] }
 0xc72   :  { %v1189_v35 = vmul.f32 %v7970_v30, %v1181_v33  ;;  %8709 = vmatprep.mubr.msk.f32.mxu1 %vm47_vm0, %v1196_v34  ;;  %v7981_v30 = vld [vmem:[%s11809_s8 + $0xe] ss:$0 sm:$0xff] }
 0xc74   :  { %v1197_v36 = vadd.f32 %v7971_v50, %v1189_v35 }
 0xc76   :  { %8710 = vmatmul.mubr.msk.f32.vlgmr.msra.gmra.mrb[10].mxu1 %vm47_vm0, %v1197_v36 }
 0xc77   :  { %9316 = vmatpush3.bf16.msra.mxu1 %v9313_v8 }
 0xc78   :  { %9318 = vmatprep.subr.bf16.mxu1 %v9317_v13 }
 0xc7b   :  { %9320 = vmatpush3.bf16.msra.mxu1 %v9317_v13 }
 0xd49   :  { %v8711_v9 = vpop.f32.mrb[10].mxu1 }
 0xd4a   :  { %v1287_v40 = vadd.f32 %v8711_v9, %v7972_v39  ;;  %v1281_v43 = vpop.f32.mrb[11].mxu1 }
 0xd4b   :  { %v1282_v44 = vadd.f32 %v7972_v39, %v1281_v43 }
 0xd4c   :  { %v1291_v46 = vmax.f32 %v1287_v40, 0.0 }
 0xd4d   :  { %v1290_v45 = vmax.f32 %v1282_v44, 0.0 }
 0xd4f   :  { %8728 = vmatprep.mubr.msk.f32.mxu0 %vm1308_vm13, %v1290_v45 }
 0xd50   :  { %8729 = vmatmul.mubr.msk.f32.vlgmr.msra.gmra.mrb[10].mxu0 %vm1308_vm13, %v1291_v46 }
 0xe23   :  { %v8730_v49 = vpop.f32.mrb[10].mxu0 }
 0xe24   :  { %v1387_v52 = vadd.f32 %v8730_v49, %v7976_v47  ;;  %v1381_v1 = vpop.f32.mrb[11].mxu0 }
 0xe25   :  { %v1382_v53 = vadd.f32 %v7976_v47, %v1381_v1 }
 0xe26   :  { %v10585_v0 = vadd.f32 %v1387_v52, %v10514_v41 }
 0xe27   :  { %v10588_v54 = vadd.f32 %v1382_v53, %v10517_v42 }
 0xe28   :  { %v1399_v55 = vsel %vm47_vm0, %v10585_v0, 0.0 }
 0xe29   :  { %1400 = vadd.xlane.f32.xlu1 %v1399_v55  ;;  %v1396_v56 = vsel %vm47_vm0, %v10588_v54, 0.0 }
 0xe2a   :  { %1397 = vadd.xlane.f32.xlu0 %v1396_v56 }
 0xeb6   :  { %v1401_v57 = vpop.xlane.xlu1 %1400 }
 0xeb7   :  { %v1403_v59 = vmul.f32 0.03125, %v1401_v57  ;;  %v1398_v60 = vpop.xlane.xlu0 %1397 }
 0xeb8   :  { %v1402_v61 = vmul.f32 0.03125, %v1398_v60 }
 0xeb9   :  { %v1405_v62 = vsub.f32 %v10585_v0, %v1403_v59 }
 0xeba   :  { %v1404_v41 = vsub.f32 %v10588_v54, %v1402_v61 }
 0xebb   :  { %v1407_v63 = vmul.f32 %v1405_v62, %v1405_v62 }
 0xebc   :  { %v1406_v3 = vmul.f32 %v1404_v41, %v1404_v41 }
 0xebd   :  { %v1411_v42 = vsel %vm47_vm0, %v1407_v63, 0.0 }
 0xebe   :  { %1412 = vadd.xlane.f32.xlu1 %v1411_v42  ;;  %v1408_v4 = vsel %vm47_vm0, %v1406_v3, 0.0 }
 0xebf   :  { %1409 = vadd.xlane.f32.xlu0 %v1408_v4 }
 0xf4b   :  { %v1413_v14 = vpop.xlane.xlu1 %1412 }
 0xf4c   :  { %v1415_v15 = vmul.f32 0.032258064, %v1413_v14  ;;  %v1410_v16 = vpop.xlane.xlu0 %1409 }
 0xf4d   :  { %v1414_v17 = vmul.f32 0.032258064, %v1410_v16 }
 0xf4e   :  { %9985 = vrsqrt.f32 %v1415_v15  ;;  %vm1425_vm14 = vcmp.eq.f32.partialorder %v1415_v15, inf  ;;  %v1428_v21 = vand.u32 2147483648, %v1415_v15  ;;  %vm1427_vm15 = vcmp.eq.f32.partialorder %v1415_v15, 0.0 }
 0xf4f   :  { %9987 = vrsqrt.f32 %v1414_v17  ;;  %vm1418_vm1 = vcmp.eq.f32.partialorder %v1414_v17, inf  ;;  %v1421_v23 = vand.u32 2147483648, %v1414_v17  ;;  %vm1420_vm2 = vcmp.eq.f32.partialorder %v1414_v17, 0.0 }
 0xf58   :  { %v9986_v18 = vpop.eup %9985 }
 0xf59   :  { %v9988_v19 = vpop.eup %9987  ;;  %v1424_v20 = vmul.f32 %v9986_v18, %v1415_v15 }
 0xf5a   :  { %v1417_v12 = vmul.f32 %v9988_v19, %v1414_v17 }
 0xf5b   :  { %v1426_v22 = vsel %vm1425_vm14, %v1415_v15, %v1424_v20 }
 0xf5c   :  { %v1429_v24 = vsel %vm1427_vm15, %v1428_v21, %v1426_v22  ;;  %v1419_v25 = vsel %vm1418_vm1, %v1414_v17, %v1417_v12 }
 0xf5d   :  { %v1431_v26 = vadd.f32 1e-06, %v1429_v24  ;;  %v1422_v27 = vsel %vm1420_vm2, %v1421_v23, %v1419_v25 }
 0xf5e   :  { %v1430_v28 = vadd.f32 1e-06, %v1422_v27 }
 0xf5f   :  { %9989 = vrcp.f32 %v1431_v26 }
 0xf60   :  { %9991 = vrcp.f32 %v1430_v28 }
 0xf69   :  { %v9990_v29 = vpop.eup %9989 }
 0xf6a   :  { %v9992_v31 = vpop.eup %9991  ;;  %v1435_v50 = vmul.f32 %v9990_v29, %v1405_v62 }
 0xf6b   :  { %v1434_v32 = vmul.f32 %v9992_v31, %v1404_v41 }
 0xf6c   :  { %v1443_v33 = vmul.f32 %v7981_v30, %v1435_v50 }
 0xf6d   :  { %v1442_v34 = vmul.f32 %v7981_v30, %v1434_v32 }
 0xf6e   :  { %v1451_v36 = vadd.f32 %v7982_v48, %v1443_v33 }
 0xf6f   :  { %v1450_v35 = vadd.f32 %v7982_v48, %v1442_v34 }
 0xf71   :  { %8739 = vmatprep.mubr.msk.f32.mxu1 %vm47_vm0, %v1450_v35 }
 0xf72   :  { %8740 = vmatmul.mubr.msk.f32.vlgmr.msra.gmra.mrb[12].mxu1 %vm47_vm0, %v1451_v36 }
0x1045   :  { %v8741_v10 = vpop.f32.mrb[12].mxu1 }
0x1046   :  { %v10621_v38 = vadd.f32 %v8741_v10, %v7988_v37  ;;  %v1537_v39 = vpop.f32.mrb[13].mxu1 }
0x1047   :  { %v10623_v9 = vadd.f32 %v7988_v37, %v1537_v39 }
0x1049   :  { %8746 = vmatprep.mubr.msk.f32.mxu1 %vm203_vm5, %v10623_v9  ;;  %v10629_v40 = vpack.i.bf16 %v10621_v38, %v10623_v9 }
0x104b   :  { %9743 = vrot.lane.b32.xlu1 %v10629_v40, %s10255_s27  ;;  %9738 = vrot.lane.b32.xlu0 %v10629_v40, %s10256_s28 }
0x104f   :  { %1748 = vrot.lane.b32.xlu1 %v10623_v9, %s10257_s29 }
0x1053   :  { %1750 = vrot.lane.b32.xlu1 %v10621_v38, %s10257_s29 }
0x10bd   :  { %v9744_v43 = vpop.permute.xlu1 %9743  ;;  %v9739_v44 = vpop.permute.xlu0 %9738 }
0x10be   :  { %v9746_v45 = vunpack.i.h.bf16 %v9744_v43  ;;  %v9745_v46 = vunpack.i.l.bf16 %v9744_v43  ;;  %v9741_v47 = vunpack.i.h.bf16 %v9739_v44  ;;  %v9740_v49 = vunpack.i.l.bf16 %v9739_v44 }
0x10c0   :  { %v9321_v52 = vpack.c.bf16 %v9741_v47, %v9740_v49  ;;  %v9331_v1 = vpack.c.bf16 %v9746_v45, %v9745_v46 }
0x10c1   :  { %v1749_v53 = vpop.permute.xlu1 %1748 }
0x10c2   :  { %9323 = vmatprep.subr.msk.bf16.mxu1 %vm10382_vm6, %v9321_v52 }
0x10c3   :  { %9326 = vmatpush3.bf16.xpose.msk.msra.mxu1 %vm10382_vm6, %v9321_v52 }
0x10c4   :  { %9333 = vmatprep.subr.msk.bf16.mxu1 %vm10382_vm6, %v9331_v1 }
0x10c5   :  { %v1751_v55 = vpop.permute.xlu1 %1750 }
0x10ca   :  { %8747 = vmatmul.mubr.msk.f32.vlgmr.msra.gmra.mrb[14].mxu1 %vm203_vm5, %v10621_v38 }
0x10cb   :  { %9336 = vmatpush3.bf16.xpose.msk.msra.mxu1 %vm10382_vm6, %v9331_v1  ;;  %8760 = vmatprep.mubr.msk.f32.mxu1 %vm203_vm5, %v1749_v53 }
0x10d2   :  { %8761 = vmatmul.mubr.msk.f32.vlgmr.msra.gmra.mrb[16].mxu1 %vm203_vm5, %v1751_v55 }
0x119d   :  { %v8748_v56 = vpop.f32.mrb[14].mxu1 }
0x119e   :  { %v1636_v57 = vmul.f32 0.35355338, %v8748_v56  ;;  %v1626_v59 = vpop.f32.mrb[15].mxu1 }
0x119f   :  { %v1635_v60 = vmul.f32 0.35355338, %v1626_v59 }
0x11a0   :  { %v1638_v61 = vadd.f32 %v1636_v57, %v10401_v2 }
0x11a1   :  { %v1637_v62 = vadd.f32 %v1635_v60, %v10406_v5 }
0x11a2   :  { %v1642_v41 = vsel %vm291_vm7, %v1638_v61, -inf }
0x11a3   :  { %1643 = vmax.xlane.f32.xlu1 %v1642_v41  ;;  %v1639_v63 = vsel %vm291_vm7, %v1637_v62, -inf }
0x11a4   :  { %1640 = vmax.xlane.f32.xlu0 %v1639_v63 }
0x11a5   :  { %v8762_v3 = vpop.f32.mrb[16].mxu1 }
0x11a6   :  { %v1830_v42 = vpop.f32.mrb[17].mxu1  ;;  %v1840_v4 = vmul.f32 0.35355338, %v8762_v3 }
0x11a7   :  { %v1839_v6 = vmul.f32 0.35355338, %v1830_v42 }
0x11a8   :  { %v1842_v8 = vadd.f32 %v1840_v4, %v10401_v2 }
0x11a9   :  { %v1841_v7 = vadd.f32 %v1839_v6, %v10406_v5 }
0x11aa   :  { %v1846_v11 = vsel %vm291_vm7, %v1842_v8, -inf }
0x11ab   :  { %v1843_v51 = vsel %vm291_vm7, %v1841_v7, -inf }
0x11ac   :  { %1844 = vmax.xlane.f32.xlu0 %v1843_v51 }
0x11b0   :  { %1847 = vmax.xlane.f32.xlu0 %v1846_v11 }
0x1230   :  { %v1644_v13 = vpop.xlane.xlu1 %1643 }
0x1231   :  { %v1646_v14 = vsub.f32 %v1638_v61, %v1644_v13  ;;  %v1641_v15 = vpop.xlane.xlu0 %1640 }
0x1232   :  { %v1645_v16 = vsub.f32 %v1637_v62, %v1641_v15 }
0x1233   :  { %v1649_v17 = vmul.f32 1.442695, %v1646_v14 }
0x1234   :  { %v1647_v18 = vmul.f32 1.442695, %v1645_v16 }
0x1235   :  { %9993 = vpow2.f32 %v1649_v17 }
0x1236   :  { %9995 = vpow2.f32 %v1647_v18 }
0x1239   :  { %v1845_v19 = vpop.xlane.xlu0 %1844 }
0x123a   :  { %v1849_v20 = vsub.f32 %v1841_v7, %v1845_v19  ;;  %v10225_v7 = vld [vmem:[%s11802_s1 + $0x8] sm:$0xff] }
0x123c   :  { %v1851_v21 = vmul.f32 1.442695, %v1849_v20 }
0x123d   :  { %v1848_v5 = vpop.xlane.xlu0 %1847 }
0x123e   :  { %9997 = vpow2.f32 %v1851_v21  ;;  %v1850_v12 = vsub.f32 %v1842_v8, %v1848_v5  ;;  %v10226_v8 = vld [vmem:[%s11802_s1] sm:$0xff] }
0x123f   :  { %v9994_v22 = vpop.eup %9993 }
0x1240   :  { %v9996_v2 = vpop.eup %9995  ;;  %v1853_v23 = vmul.f32 1.442695, %v1850_v12  ;;  %v1654_v24 = vsel %vm291_vm7, %v9994_v22, 0.0 }
0x1241   :  { %1655 = vadd.xlane.f32.xlu1 %v1654_v24  ;;  %v1651_v25 = vsel %vm291_vm7, %v9996_v2, 0.0 }
0x1242   :  { %9999 = vpow2.f32 %v1853_v23  ;;  %1652 = vadd.xlane.f32.xlu0 %v1651_v25 }
0x1248   :  { %v9998_v26 = vpop.eup %9997 }
0x1249   :  { %v1855_v27 = vsel %vm291_vm7, %v9998_v26, 0.0 }
0x124a   :  { %1856 = vadd.xlane.f32.xlu0 %v1855_v27 }
0x124c   :  { %v10000_v28 = vpop.eup %9999 }
0x124d   :  { %v1858_v29 = vsel %vm291_vm7, %v10000_v28, 0.0 }
0x124e   :  { %1859 = vadd.xlane.f32.xlu1 %v1858_v29 }
0x125f   :  { %9753 = vrot.lane.b32.xlu1 %v10629_v40, %s10258_s13 }
0x1260   :  { %9748 = vrot.lane.b32.xlu0 %v10629_v40, %s10259_s14 }
0x1263   :  { %9758 = vrot.lane.b32.xlu1 %v10629_v40, %s10260_s15 }
0x1264   :  { %1954 = vrot.lane.b32.xlu0 %v10621_v38, %s10261_s16 }
0x1267   :  { %1952 = vrot.lane.b32.xlu1 %v10623_v9, %s10261_s16 }
0x12ce   :  { %v1656_v31 = vpop.xlane.xlu1 %1655 }
0x12cf   :  { %v1653_v30 = vpop.xlane.xlu0 %1652 }
0x12d0   :  { %10001 = vrcp.f32 %v1653_v30 }
0x12d1   :  { %10003 = vrcp.f32 %v1656_v31 }
0x12d7   :  { %v1857_v50 = vpop.xlane.xlu0 %1856 }
0x12d8   :  { %10005 = vrcp.f32 %v1857_v50 }
0x12da   :  { %v10002_v32 = vpop.eup %10001 }
0x12db   :  { %v1860_v48 = vpop.xlane.xlu1 %1859  ;;  %v9749_v33 = vpop.permute.xlu0 %9748  ;;  %v1659_v34 = vmul.f32 %v10002_v32, %v9996_v2 }
0x12dc   :  { %10007 = vrcp.f32 %v1860_v48  ;;  %v9751_v35 = vunpack.i.h.bf16 %v9749_v33  ;;  %v9750_v36 = vunpack.i.l.bf16 %v9749_v33  ;;  %v10004_v10 = vpop.eup %10003 }
0x12dd   :  { %8753 = vmatprep.mubr.msk.f32.mxu0 %vm291_vm7, %v1659_v34  ;;  %v1660_v46 = vmul.f32 %v10004_v10, %v9994_v22 }
0x12de   :  { %v9327_v37 = vpack.c.bf16 %v9751_v35, %v9750_v36 }
0x12df   :  { %v9754_v39 = vpop.permute.xlu1 %9753  ;;  %v1955_v60 = vpop.permute.xlu0 %1954 }
0x12e0   :  { %v9756_v43 = vunpack.i.h.bf16 %v9754_v39  ;;  %v9755_v44 = vunpack.i.l.bf16 %v9754_v39  ;;  %9328 = vmatprep.subr.bf16.mxu0 %v9327_v37 }
0x12e1   :  { %9330 = vmatpush3.bf16.msra.mxu0 %v9327_v37 }
0x12e2   :  { %v10006_v45 = vpop.eup %10005  ;;  %v9337_v47 = vpack.c.bf16 %v9756_v43, %v9755_v44 }
0x12e3   :  { %v9759_v49 = vpop.permute.xlu1 %9758  ;;  %v1863_v52 = vmul.f32 %v10006_v45, %v9998_v26 }
0x12e4   :  { %v9761_v1 = vunpack.i.h.bf16 %v9759_v49  ;;  %v9760_v53 = vunpack.i.l.bf16 %v9759_v49  ;;  %8754 = vmatmul.mubr.msk.f32.vlgmr.msra.gmra.mrb[12].mxu0 %vm291_vm7, %v1660_v46  ;;  %9338 = vmatprep.subr.bf16.mxu0 %v9337_v47 }
0x12e5   :  { %9340 = vmatpush3.bf16.msra.mxu0 %v9337_v47  ;;  %8767 = vmatprep.mubr.msk.f32.mxu0 %vm291_vm7, %v1863_v52 }
0x12e6   :  { %v10008_v55 = vpop.eup %10007  ;;  %v9341_v56 = vpack.c.bf16 %v9761_v1, %v9760_v53 }
0x12e7   :  { %v1864_v57 = vmul.f32 %v10008_v55, %v10000_v28  ;;  %v1953_v59 = vpop.permute.xlu1 %1952 }
0x12e8   :  { %9343 = vmatprep.subr.msk.bf16.mxu0 %vm10382_vm6, %v9341_v56 }
0x12e9   :  { %8768 = vmatmul.mubr.msk.f32.vlgmr.msra.gmra.mrb[14].mxu0 %vm291_vm7, %v1864_v57 }
0x12ea   :  { %8774 = vmatprep.mubr.msk.f32.mxu0 %vm203_vm5, %v1953_v59 }
0x12ee   :  { %9346 = vmatpush3.bf16.xpose.msk.msra.mxu0 %vm10382_vm6, %v9341_v56 }
0x12f5   :  { %8775 = vmatmul.mubr.msk.f32.vlgmr.msra.gmra.mrb[16].mxu0 %vm203_vm5, %v1955_v60 }
0x13b7   :  { %v10683_v61 = vpop.f32.mrb[12].mxu0 }
0x13b8   :  { %v10685_v62 = vpop.f32.mrb[13].mxu0 }
0x13bc   :  { %v10687_v41 = vpop.f32.mrb[14].mxu0 }
0x13bd   :  { %v10689_v63 = vpop.f32.mrb[15].mxu0 }
0x13c8   :  { %v8776_v3 = vpop.f32.mrb[16].mxu0 }
0x13c9   :  { %v2044_v42 = vmul.f32 0.35355338, %v8776_v3  ;;  %v2034_v4 = vpop.f32.mrb[17].mxu0 }
0x13ca   :  { %v2043_v6 = vmul.f32 0.35355338, %v2034_v4 }
0x13cb   :  { %v2046_v51 = vadd.f32 %v10225_v7, %v2044_v42 }
0x13cc   :  { %v2045_v11 = vadd.f32 %v10226_v8, %v2043_v6 }
0x13cd   :  { %v2050_v13 = vsel %vm291_vm7, %v2046_v51, -inf }
0x13ce   :  { %2051 = vmax.xlane.f32.xlu0 %v2050_v13  ;;  %v2047_v14 = vsel %vm291_vm7, %v2045_v11, -inf  ;;  %v8015_v13 = vld [vmem:[%s11805_s4 + $0x20] sm:$0xff] }
0x13cf   :  { %2048 = vmax.xlane.f32.xlu1 %v2047_v14  ;;  %v8017_v14 = vld [vmem:[%s11805_s4 + $0x30] sm:$0xff] }
0x13e0   :  { %9763 = vrot.lane.b32.xlu1 %v10629_v40, %s11823_s17 }
0x13e4   :  { %2156 = vrot.lane.b32.xlu1 %v10623_v9, %s11821_s18 }
0x13e8   :  { %2158 = vrot.lane.b32.xlu1 %v10621_v38, %s11821_s18 }
0x145b   :  { %v2052_v15 = vpop.xlane.xlu0 %2051 }
0x145c   :  { %v2054_v16 = vsub.f32 %v2046_v51, %v2052_v15  ;;  %v2049_v17 = vpop.xlane.xlu1 %2048 }
0x145d   :  { %v2053_v18 = vsub.f32 %v2045_v11, %v2049_v17 }
0x145e   :  { %v2057_v19 = vmul.f32 1.442695, %v2054_v16  ;;  %v8018_v16 = vld [vmem:[%s11805_s4 + $0x38] sm:$0xff] }
0x145f   :  { %v2055_v20 = vmul.f32 1.442695, %v2053_v18  ;;  %v9365_v17 = vpack.c.bf16 %v8018_v16, %v8017_v14 }
0x1460   :  { %10009 = vpow2.f32 %v2057_v19  ;;  %v9764_v21 = vpop.permute.xlu1 %9763 }
0x1461   :  { %v9766_v5 = vunpack.i.h.bf16 %v9764_v21  ;;  %v9765_v12 = vunpack.i.l.bf16 %v9764_v21  ;;  %10011 = vpow2.f32 %v2055_v20 }
0x1463   :  { %v9347_v22 = vpack.c.bf16 %v9766_v5, %v9765_v12 }
0x1464   :  { %v2157_v48 = vpop.permute.xlu1 %2156 }
0x1465   :  { %9348 = vmatprep.subr.bf16.mxu1 %v9347_v22 }
0x1466   :  { %9350 = vmatpush3.bf16.msra.mxu1 %v9347_v22 }
0x1468   :  { %v2159_v33 = vpop.permute.xlu1 %2158 }
0x146a   :  { %v10010_v2 = vpop.eup %10009 }
0x146b   :  { %v2062_v9 = vsel %vm291_vm7, %v10010_v2, 0.0  ;;  %v10012_v23 = vpop.eup %10011 }
0x146c   :  { %2063 = vadd.xlane.f32.xlu0 %v2062_v9  ;;  %v2059_v38 = vsel %vm291_vm7, %v10012_v23, 0.0 }
0x1470   :  { %2060 = vadd.xlane.f32.xlu0 %v2059_v38 }
0x1486   :  { %9768 = vrot.lane.b32.xlu0 %v10629_v40, %s11819_s19 }
0x14f9   :  { %v2064_v24 = vpop.xlane.xlu0 %2063 }
0x14fa   :  { %10013 = vrcp.f32 %v2064_v24 }
0x14fd   :  { %v2061_v25 = vpop.xlane.xlu0 %2060 }
0x14fe   :  { %10015 = vrcp.f32 %v2061_v25 }
0x1501   :  { %v9769_v26 = vpop.permute.xlu0 %9768 }
0x1502   :  { %v9771_v27 = vunpack.i.h.bf16 %v9769_v26  ;;  %v9770_v28 = vunpack.i.l.bf16 %v9769_v26 }
0x1504   :  { %v9351_v29 = vpack.c.bf16 %v9771_v27, %v9770_v28  ;;  %v10014_v30 = vpop.eup %10013 }
0x1505   :  { %v2068_v32 = vmul.f32 %v10014_v30, %v10010_v2 }
0x1506   :  { %9353 = vmatprep.subr.msk.bf16.mxu1 %vm10382_vm6, %v9351_v29 }
0x1508   :  { %v10016_v31 = vpop.eup %10015 }
0x1509   :  { %v2067_v50 = vmul.f32 %v10016_v31, %v10012_v23 }
0x150b   :  { %8781 = vmatprep.mubr.msk.f32.mxu1 %vm291_vm7, %v2067_v50 }
0x150c   :  { %8782 = vmatmul.mubr.msk.f32.vlgmr.msra.gmra.mrb[18].mxu1 %vm291_vm7, %v2068_v32  ;;  %v10769_v32 = vld [vmem:[%s11801_s0 + $0x10] sm:$0xff] }
0x150d   :  { %9356 = vmatpush3.bf16.xpose.msk.msra.mxu1 %vm10382_vm6, %v9351_v29  ;;  %8788 = vmatprep.mubr.msk.f32.mxu1 %vm203_vm5, %v2157_v48 }
0x1514   :  { %8789 = vmatmul.mubr.msk.f32.vlgmr.msra.gmra.mrb[20].mxu1 %vm203_vm5, %v2159_v33 }
0x15df   :  { %v8783_v34 = vpop.f32.mrb[18].mxu1 }
0x15e0   :  { %v2147_v35 = vpop.f32.mrb[19].mxu1 }
0x15e7   :  { %v8790_v36 = vpop.f32.mrb[20].mxu1 }
0x15e8   :  { %v2248_v37 = vmul.f32 0.35355338, %v8790_v36  ;;  %v2238_v10 = vpop.f32.mrb[21].mxu1 }
0x15e9   :  { %v2247_v39 = vmul.f32 0.35355338, %v2238_v10 }
0x15ea   :  { %v2250_v43 = vadd.f32 %v10225_v7, %v2248_v37 }
0x15eb   :  { %v2249_v44 = vadd.f32 %v10226_v8, %v2247_v39 }
0x15ec   :  { %v2254_v45 = vsel %vm291_vm7, %v2250_v43, -inf }
0x15ed   :  { %2255 = vmax.xlane.f32.xlu0 %v2254_v45  ;;  %v2251_v46 = vsel %vm291_vm7, %v2249_v44, -inf }
0x15ee   :  { %2252 = vmax.xlane.f32.xlu1 %v2251_v46 }
0x15ff   :  { %9773 = vrot.lane.b32.xlu1 %v10629_v40, %s11817_s20 }
0x1603   :  { %2364 = vrot.lane.b32.xlu1 %v10687_v41, %s11827_s21 }
0x1607   :  { %2370 = vrot.lane.b32.xlu1 %v2147_v35, %s11828_s22 }
0x160b   :  { %2372 = vrot.lane.b32.xlu1 %v8783_v34, %s11828_s22 }
0x167a   :  { %v2256_v47 = vpop.xlane.xlu0 %2255 }
0x167b   :  { %v2258_v49 = vsub.f32 %v2250_v43, %v2256_v47  ;;  %v2253_v52 = vpop.xlane.xlu1 %2252 }
0x167c   :  { %v2257_v1 = vsub.f32 %v2249_v44, %v2253_v52 }
0x167d   :  { %v2261_v53 = vmul.f32 1.442695, %v2258_v49 }
0x167e   :  { %v2259_v55 = vmul.f32 1.442695, %v2257_v1 }
0x167f   :  { %v9774_v56 = vpop.permute.xlu1 %9773 }
0x1680   :  { %10017 = vpow2.f32 %v2259_v55  ;;  %v9776_v57 = vunpack.i.h.bf16 %v9774_v56  ;;  %v9775_v59 = vunpack.i.l.bf16 %v9774_v56 }
0x1681   :  { %10019 = vpow2.f32 %v2261_v53 }
0x1682   :  { %v9357_v60 = vpack.c.bf16 %v9776_v57, %v9775_v59 }
0x1683   :  { %v2365_v20 = vpop.permute.xlu1 %2364 }
0x1684   :  { %9358 = vmatprep.subr.bf16.mxu0 %v9357_v60  ;;  %v2385_v9 = vsel %vm203_vm5, %v10683_v61, %v2365_v20 }
0x1685   :  { %9360 = vmatpush3.bf16.msra.mxu0 %v9357_v60 }
0x1687   :  { %v2371_v21 = vpop.permute.xlu1 %2370 }
0x168a   :  { %v10018_v40 = vpop.eup %10017 }
0x168b   :  { %v2263_v41 = vsel %vm291_vm7, %v10018_v40, 0.0  ;;  %v10020_v3 = vpop.eup %10019  ;;  %v2373_v12 = vpop.permute.xlu1 %2372 }
0x168c   :  { %2264 = vadd.xlane.f32.xlu0 %v2263_v41  ;;  %v2266_v42 = vsel %vm291_vm7, %v10020_v3, 0.0  ;;  %v2387_v24 = vsel %vm291_vm7, %v2385_v9, %v2373_v12  ;;  %v8028_v41 = vld [vmem:[%s11806_s5 + $0x28] sm:$0xff] }
0x1690   :  { %2267 = vadd.xlane.f32.xlu0 %v2266_v42  ;;  %v8029_v42 = vld [vmem:[%s11806_s5 + $0x30] sm:$0xff] }
0x16a6   :  { %2362 = vrot.lane.b32.xlu0 %v10689_v63, %s11827_s21  ;;  %v8016_v63 = vld [vmem:[%s11805_s4 + $0x28] sm:$0xff] }
0x16a7   :  { %v9361_v15 = vpack.c.bf16 %v8016_v63, %v8015_v13  ;;  %v8036_v13 = vld [vmem:[%s11807_s6 + $0x48] sm:$0xff]  ;;  %v8037_v63 = vld [vmem:[%s11807_s6 + $0x50] sm:$0xff] }
0x16a9   :  { %9362 = vmatprep.subr.bf16.mxu0 %v9361_v15 }
0x1719   :  { %v2265_v4 = vpop.xlane.xlu0 %2264 }
0x171a   :  { %10021 = vrcp.f32 %v2265_v4  ;;  %v8030_v4 = vld [vmem:[%s11806_s5 + $0x38] sm:$0xff] }
0x171d   :  { %v2268_v6 = vpop.xlane.xlu0 %2267 }
0x171e   :  { %10023 = vrcp.f32 %v2268_v6  ;;  %v9373_v6 = vpack.c.bf16 %v8030_v4, %v8029_v42  ;;  %v8057_v42 = vld [vmem:[%s11803_s2 + $0x50] sm:$0xff]  ;;  %v8058_v4 = vld [vmem:[%s11803_s2 + $0x58] sm:$0xff] }
0x1721   :  { %v2363_v5 = vpop.permute.xlu0 %2362 }
0x1722   :  { %v2384_v22 = vsel %vm203_vm5, %v10685_v62, %v2363_v5  ;;  %v8020_v62 = vld [vmem:[%s11809_s8 + $0x1] ss:$0 sm:$0xff] }
0x1723   :  { %v2386_v23 = vsel %vm291_vm7, %v2384_v22, %v2371_v21 }
0x1724   :  { %v10022_v7 = vpop.eup %10021 }
0x1725   :  { %v2271_v51 = vmul.f32 %v10022_v7, %v10018_v40  ;;  %v8027_v40 = vld [vmem:[%s11806_s5 + $0x20] sm:$0xff] }
0x1726   :  { %v8055_v7 = vld [vmem:[%s11803_s2 + $0x40] sm:$0xff] }
0x1727   :  { %8795 = vmatprep.mubr.msk.f32.mxu0 %vm291_vm7, %v2271_v51  ;;  %v8056_v51 = vld [vmem:[%s11803_s2 + $0x48] sm:$0xff] }
0x1728   :  { %v10024_v8 = vpop.eup %10023 }
0x1729   :  { %v2272_v11 = vmul.f32 %v10024_v8, %v10020_v3  ;;  %v9369_v3 = vpack.c.bf16 %v8028_v41, %v8027_v40  ;;  %v10824_v8 = vpack.c.bf16 %v8056_v51, %v8055_v7  ;;  %v8026_v40 = vld [vmem:[%s11809_s8 + $0x11] ss:$0 sm:$0xff] }
0x172b   :  { %8796 = vmatmul.mubr.msk.f32.vlgmr.msra.gmra.mrb[18].mxu0 %vm291_vm7, %v2272_v11  ;;  %9370 = vmatprep.subr.bf16.mxu1 %v9369_v3  ;;  %v8035_v11 = vld [vmem:[%s11807_s6 + $0x40] sm:$0xff] }
0x172c   :  { %9364 = vmatpush3.bf16.msra.mxu0 %v9361_v15  ;;  %9372 = vmatpush3.bf16.msra.mxu1 %v9369_v3  ;;  %v9377_v14 = vpack.c.bf16 %v8036_v13, %v8035_v11  ;;  %v8038_v15 = vld [vmem:[%s11807_s6 + $0x58] sm:$0xff]  ;;  %v9397_v11 = vpack.c.bf16 %v8058_v4, %v8057_v42  ;;  %v8054_v13 = vld [vmem:[%s11809_s8 + $0x15] ss:$0 sm:$0xff] }
0x172d   :  { %9366 = vmatprep.subr.bf16.mxu0 %v9365_v17  ;;  %9374 = vmatprep.subr.bf16.mxu1 %v9373_v6  ;;  %v9381_v16 = vpack.c.bf16 %v8038_v15, %v8037_v63 }
0x1730   :  { %9368 = vmatpush3.bf16.msra.mxu0 %v9365_v17  ;;  %9376 = vmatpush3.bf16.msra.mxu1 %v9373_v6  ;;  %v8039_v17 = vld [vmem:[%s11807_s6 + $0x60] sm:$0xff] }
0x1731   :  { %9394 = vmatprep.subr.bf16.mxu1 %v10824_v8  ;;  %9378 = vmatprep.subr.bf16.mxu0 %v9377_v14 }
0x17fe   :  { %v8797_v18 = vpop.f32.mrb[18].mxu0 }
0x17ff   :  { %2380 = vrot.lane.b32.xlu1 %v8797_v18, %s11829_s10  ;;  %v2351_v19 = vpop.f32.mrb[19].mxu0  ;;  %v8040_v18 = vld [vmem:[%s11807_s6 + $0x68] sm:$0xff] }
0x1800   :  { %2378 = vrot.lane.b32.xlu0 %v2351_v19, %s11829_s10  ;;  %v9385_v19 = vpack.c.bf16 %v8040_v18, %v8039_v17  ;;  %v8041_v18 = vld [vmem:[%s11807_s6 + $0x70] sm:$0xff] }
0x1871   :  { %v2381_v2 = vpop.permute.xlu1 %2380 }
0x1872   :  { %v2379_v38 = vpop.permute.xlu0 %2378  ;;  %v2389_v26 = vsel %vm1041_vm8, %v2387_v24, %v2381_v2 }
0x1873   :  { %v2388_v25 = vsel %vm1041_vm8, %v2386_v23, %v2379_v38 }
0x1874   :  { %8806 = vmatprep.mubr.msk.f32.mxu0 %vm47_vm0, %v2388_v25 }
0x1875   :  { %8807 = vmatmul.mubr.msk.f32.vlgmr.msra.gmra.mrb[20].mxu0 %vm47_vm0, %v2389_v26 }
0x1876   :  { %9380 = vmatpush3.bf16.msra.mxu0 %v9377_v14 }
0x1877   :  { %9382 = vmatprep.subr.bf16.mxu0 %v9381_v16 }
0x187a   :  { %9384 = vmatpush3.bf16.msra.mxu0 %v9381_v16 }
0x187b   :  { %9386 = vmatprep.subr.bf16.mxu0 %v9385_v19 }
0x187e   :  { %9388 = vmatpush3.bf16.msra.mxu0 %v9385_v19  ;;  %v8042_v19 = vld [vmem:[%s11807_s6 + $0x78] sm:$0xff] }
0x1948   :  { %v8808_v27 = vpop.f32.mrb[20].mxu0 }
0x1949   :  { %v2481_v28 = vadd.f32 %v8808_v27, %v8020_v62  ;;  %v2475_v61 = vpop.f32.mrb[21].mxu0 }
0x194a   :  { %v2476_v29 = vadd.f32 %v8020_v62, %v2475_v61 }
0x194b   :  { %v10759_v30 = vadd.f32 %v2481_v28, %v10585_v0  ;;  %v2808_v0 = vsel %vm47_vm0, %v10769_v32, 0.0 }
0x194c   :  { %v10762_v31 = vadd.f32 %v2476_v29, %v10588_v54  ;;  %v10778_v54 = vld [vmem:[%s11801_s0 + $0x18] sm:$0xff]  ;;  %s11830_s0 = smov 72  }
0x194d   :  { %v2493_v50 = vsel %vm47_vm0, %v10759_v30, 0.0  ;;  %v2811_v33 = vsel %vm47_vm0, %v10778_v54, 0.0 }
0x194e   :  { %2494 = vadd.xlane.f32.xlu1 %v2493_v50  ;;  %v2490_v48 = vsel %vm47_vm0, %v10762_v31, 0.0 }
0x194f   :  { %2491 = vadd.xlane.f32.xlu0 %v2490_v48 }
0x1953   :  { %2809 = vadd.xlane.f32.xlu0 %v2808_v0 }
0x1957   :  { %2812 = vadd.xlane.f32.xlu0 %v2811_v33 }
0x19db   :  { %v2495_v34 = vpop.xlane.xlu1 %2494 }
0x19dc   :  { %v2497_v35 = vmul.f32 0.03125, %v2495_v34  ;;  %v2492_v36 = vpop.xlane.xlu0 %2491 }
0x19dd   :  { %v2496_v37 = vmul.f32 0.03125, %v2492_v36 }
0x19de   :  { %v10783_v10 = vsub.f32 %v10759_v30, %v2497_v35 }
0x19df   :  { %v10786_v39 = vsub.f32 %v10762_v31, %v2496_v37 }
0x19e0   :  { %v2810_v43 = vpop.xlane.xlu0 %2809  ;;  %v2501_v44 = vmul.f32 %v10783_v10, %v10783_v10 }
0x19e1   :  { %v2814_v45 = vmul.f32 0.03125, %v2810_v43  ;;  %v2500_v46 = vmul.f32 %v10786_v39, %v10786_v39 }
0x19e2   :  { %v2505_v47 = vsel %vm47_vm0, %v2501_v44, 0.0 }
0x19e3   :  { %v10794_v49 = vsub.f32 %v10769_v32, %v2814_v45  ;;  %2506 = vadd.xlane.f32.xlu1 %v2505_v47  ;;  %v2502_v52 = vsel %vm47_vm0, %v2500_v46, 0.0 }
0x19e4   :  { %2503 = vadd.xlane.f32.xlu0 %v2502_v52  ;;  %v2813_v1 = vpop.xlane.xlu0 %2812 }
0x19e5   :  { %v2815_v53 = vmul.f32 0.03125, %v2813_v1  ;;  %v2818_v55 = vmul.f32 %v10794_v49, %v10794_v49 }
0x19e7   :  { %v10800_v56 = vsub.f32 %v10778_v54, %v2815_v53  ;;  %v2820_v57 = vsel %vm47_vm0, %v2818_v55, 0.0  ;;  %v8025_v55 = vld [vmem:[%s11809_s8 + $0x10] ss:$0 sm:$0xff] }
0x19e8   :  { %2821 = vadd.xlane.f32.xlu0 %v2820_v57 }
0x19e9   :  { %v2819_v59 = vmul.f32 %v10800_v56, %v10800_v56 }
0x19eb   :  { %v2823_v60 = vsel %vm47_vm0, %v2819_v59, 0.0 }
0x19ec   :  { %2824 = vadd.xlane.f32.xlu1 %v2823_v60 }
0x1a70   :  { %v2507_v20 = vpop.xlane.xlu1 %2506 }
0x1a71   :  { %v2509_v21 = vmul.f32 0.032258064, %v2507_v20  ;;  %v2504_v5 = vpop.xlane.xlu0 %2503 }
0x1a72   :  { %v2508_v12 = vmul.f32 0.032258064, %v2504_v5 }
0x1a73   :  { %10025 = vrsqrt.f32 %v2509_v21  ;;  %vm2519_vm3 = vcmp.eq.f32.partialorder %v2509_v21, inf  ;;  %v2522_v26 = vand.u32 2147483648, %v2509_v21  ;;  %vm2521_vm4 = vcmp.eq.f32.partialorder %v2509_v21, 0.0 }
0x1a74   :  { %10027 = vrsqrt.f32 %v2508_v12  ;;  %vm2512_vm9 = vcmp.eq.f32.partialorder %v2508_v12, inf  ;;  %v2515_v28 = vand.u32 2147483648, %v2508_v12  ;;  %vm2514_vm10 = vcmp.eq.f32.partialorder %v2508_v12, 0.0 }
0x1a75   :  { %v2822_v22 = vpop.xlane.xlu0 %2821 }
0x1a76   :  { %v2826_v2 = vmul.f32 0.032258064, %v2822_v22 }
0x1a78   :  { %10029 = vrsqrt.f32 %v2826_v2  ;;  %vm2830_vm11 = vcmp.eq.f32.partialorder %v2826_v2, inf  ;;  %v2833_v35 = vand.u32 2147483648, %v2826_v2  ;;  %vm2832_vm12 = vcmp.eq.f32.partialorder %v2826_v2, 0.0 }
0x1a79   :  { %v2825_v9 = vpop.xlane.xlu1 %2824 }
0x1a7a   :  { %v2827_v23 = vmul.f32 0.032258064, %v2825_v9  ;;  %v8060_v9 = vld [vmem:[%s11804_s3 + $0x2] ss:$0 sm:$0xff] }
0x1a7c   :  { %10031 = vrsqrt.f32 %v2827_v23  ;;  %vm2837_vm14 = vcmp.eq.f32.partialorder %v2827_v23, inf  ;;  %v2840_v46 = vand.u32 2147483648, %v2827_v23  ;;  %vm2839_vm15 = vcmp.eq.f32.partialorder %v2827_v23, 0.0 }
0x1a7d   :  { %v10026_v38 = vpop.eup %10025 }
0x1a7e   :  { %v10028_v24 = vpop.eup %10027  ;;  %v2518_v25 = vmul.f32 %v10026_v38, %v2509_v21 }
0x1a7f   :  { %v2511_v62 = vmul.f32 %v10028_v24, %v2508_v12 }
0x1a80   :  { %v2520_v27 = vsel %vm2519_vm3, %v2509_v21, %v2518_v25 }
0x1a81   :  { %v2523_v61 = vsel %vm2521_vm4, %v2522_v26, %v2520_v27  ;;  %v2513_v29 = vsel %vm2512_vm9, %v2508_v12, %v2511_v62 }
0x1a82   :  { %v10030_v50 = vpop.eup %10029  ;;  %v2525_v48 = vadd.f32 1e-06, %v2523_v61  ;;  %v2516_v0 = vsel %vm2514_vm10, %v2515_v28, %v2513_v29 }
0x1a83   :  { %v2524_v33 = vadd.f32 1e-06, %v2516_v0  ;;  %v2829_v34 = vmul.f32 %v10030_v50, %v2826_v2 }
0x1a84   :  { %10033 = vrcp.f32 %v2525_v48 }
0x1a85   :  { %v2831_v36 = vsel %vm2830_vm11, %v2826_v2, %v2829_v34  ;;  %10035 = vrcp.f32 %v2524_v33 }
0x1a86   :  { %v10032_v37 = vpop.eup %10031  ;;  %v2834_v43 = vsel %vm2832_vm12, %v2833_v35, %v2831_v36 }
0x1a87   :  { %v2842_v44 = vadd.f32 1e-06, %v2834_v43  ;;  %v2836_v45 = vmul.f32 %v10032_v37, %v2827_v23  ;;  %v10923_v37 = vld [vmem:[%s11802_s1 + $0x18] sm:$0xff] }
0x1a89   :  { %v2838_v47 = vsel %vm2837_vm14, %v2827_v23, %v2836_v45  ;;  %10037 = vrcp.f32 %v2842_v44 }
0x1a8a   :  { %v2841_v52 = vsel %vm2839_vm15, %v2840_v46, %v2838_v47  ;;  %v10928_v46 = vld [vmem:[%s11802_s1 + $0x10] sm:$0xff] }
0x1a8b   :  { %v2843_v1 = vadd.f32 1e-06, %v2841_v52 }
0x1a8d   :  { %10039 = vrcp.f32 %v2843_v1 }
0x1a8e   :  { %v10034_v53 = vpop.eup %10033 }
0x1a8f   :  { %v10036_v57 = vpop.eup %10035  ;;  %v2529_v59 = vmul.f32 %v10034_v53, %v10783_v10  ;;  %v8053_v10 = vld [vmem:[%s11809_s8 + $0x14] ss:$0 sm:$0xff] }
0x1a90   :  { %v2528_v60 = vmul.f32 %v10036_v57, %v10786_v39 }
0x1a91   :  { %v2537_v41 = vmul.f32 %v8025_v55, %v2529_v59 }
0x1a92   :  { %v2536_v3 = vmul.f32 %v8025_v55, %v2528_v60 }
0x1a93   :  { %v10038_v6 = vpop.eup %10037  ;;  %v2545_v51 = vadd.f32 %v8026_v40, %v2537_v41 }
0x1a94   :  { %v2544_v39 = vadd.f32 %v8026_v40, %v2536_v3  ;;  %v2846_v7 = vmul.f32 %v10038_v6, %v10794_v49 }
0x1a96   :  { %8817 = vmatprep.mubr.msk.f32.mxu1 %vm47_vm0, %v2544_v39  ;;  %v2854_v63 = vmul.f32 %v8053_v10, %v2846_v7 }
0x1a97   :  { %v10040_v14 = vpop.eup %10039  ;;  %8818 = vmatmul.mubr.msk.f32.vlgmr.msra.gmra.mrb[22].mxu1 %vm47_vm0, %v2545_v51 }
0x1a98   :  { %9396 = vmatpush3.bf16.msra.mxu1 %v10824_v8  ;;  %v2847_v15 = vmul.f32 %v10040_v14, %v10800_v56  ;;  %v2862_v16 = vadd.f32 %v8054_v13, %v2854_v63  ;;  %v9389_v8 = vpack.c.bf16 %v8042_v19, %v8041_v18  ;;  %v8032_v56 = vld [vmem:[%s11808_s7 + $0x1] ss:$0 sm:$0xff] }
0x1a99   :  { %9398 = vmatprep.subr.bf16.mxu1 %v9397_v11 }
0x1a9a   :  { %v2855_v17 = vmul.f32 %v8053_v10, %v2847_v15  ;;  %8847 = vmatprep.mubr.msk.f32.mxu1 %vm47_vm0, %v2862_v16  ;;  %9390 = vmatprep.subr.bf16.mxu0 %v9389_v8 }
0x1a9b   :  { %9392 = vmatpush3.bf16.msra.mxu0 %v9389_v8 }
0x1a9c   :  { %v2863_v49 = vadd.f32 %v8054_v13, %v2855_v17  ;;  %9400 = vmatpush3.bf16.msra.mxu1 %v9397_v11 }
0x1a9f   :  { %8848 = vmatmul.mubr.msk.f32.vlgmr.msra.gmra.mrb[24].mxu1 %vm47_vm0, %v2863_v49 }
0x1b6a   :  { %v8819_v20 = vpop.f32.mrb[22].mxu1 }
0x1b6b   :  { %v2637_v21 = vadd.f32 %v8819_v20, %v8032_v56  ;;  %v2631_v5 = vpop.f32.mrb[23].mxu1 }
0x1b6c   :  { %v2632_v12 = vadd.f32 %v8032_v56, %v2631_v5 }
0x1b6d   :  { %v2641_v2 = vmax.f32 %v2637_v21, 0.0 }
0x1b6e   :  { %v2640_v22 = vmax.f32 %v2632_v12, 0.0 }
0x1b70   :  { %8836 = vmatprep.mubr.msk.f32.mxu0 %vm1308_vm13, %v2640_v22 }
0x1b71   :  { %8837 = vmatmul.mubr.msk.f32.vlgmr.msra.gmra.mrb[22].mxu0 %vm1308_vm13, %v2641_v2 }
0x1b72   :  { %v8849_v23 = vpop.f32.mrb[24].mxu1 }
0x1b73   :  { %v10886_v38 = vadd.f32 %v8849_v23, %v8060_v9  ;;  %v2949_v24 = vpop.f32.mrb[25].mxu1 }
0x1b74   :  { %v10888_v25 = vadd.f32 %v8060_v9, %v2949_v24 }
0x1b76   :  { %8854 = vmatprep.mubr.msk.f32.mxu1 %vm203_vm5, %v10888_v25  ;;  %v10894_v26 = vpack.i.bf16 %v10886_v38, %v10888_v25 }
0x1b78   :  { %9783 = vrot.lane.b32.xlu1 %v10894_v26, %s10255_s27  ;;  %9778 = vrot.lane.b32.xlu0 %v10894_v26, %s10256_s28 }
0x1b7c   :  { %3160 = vrot.lane.b32.xlu1 %v10888_v25, %s10257_s29 }
0x1b80   :  { %3162 = vrot.lane.b32.xlu1 %v10886_v38, %s10257_s29 }
0x1bea   :  { %v9784_v62 = vpop.permute.xlu1 %9783  ;;  %v9779_v27 = vpop.permute.xlu0 %9778 }
0x1beb   :  { %v9786_v28 = vunpack.i.h.bf16 %v9784_v62  ;;  %v9785_v61 = vunpack.i.l.bf16 %v9784_v62  ;;  %v9781_v29 = vunpack.i.h.bf16 %v9779_v27  ;;  %v9780_v50 = vunpack.i.l.bf16 %v9779_v27 }
0x1bed   :  { %v9401_v48 = vpack.c.bf16 %v9781_v29, %v9780_v50  ;;  %v9411_v0 = vpack.c.bf16 %v9786_v28, %v9785_v61 }
0x1bee   :  { %v3161_v33 = vpop.permute.xlu1 %3160 }
0x1bef   :  { %9403 = vmatprep.subr.msk.bf16.mxu1 %vm10382_vm6, %v9401_v48 }
0x1bf0   :  { %9406 = vmatpush3.bf16.xpose.msk.msra.mxu1 %vm10382_vm6, %v9401_v48 }
0x1bf1   :  { %9413 = vmatprep.subr.msk.bf16.mxu1 %vm10382_vm6, %v9411_v0 }
0x1bf2   :  { %v3163_v34 = vpop.permute.xlu1 %3162 }
0x1bf7   :  { %8855 = vmatmul.mubr.msk.f32.vlgmr.msra.gmra.mrb[26].mxu1 %vm203_vm5, %v10886_v38 }
0x1bf8   :  { %9416 = vmatpush3.bf16.xpose.msk.msra.mxu1 %vm10382_vm6, %v9411_v0  ;;  %8868 = vmatprep.mubr.msk.f32.mxu1 %vm203_vm5, %v3161_v33 }
0x1bff   :  { %8869 = vmatmul.mubr.msk.f32.vlgmr.msra.gmra.mrb[28].mxu1 %vm203_vm5, %v3163_v34 }
0x1c44   :  { %v10916_v35 = vpop.f32.mrb[22].mxu0 }
0x1c45   :  { %v10918_v36 = vpop.f32.mrb[23].mxu0 }
0x1cca   :  { %v8856_v43 = vpop.f32.mrb[26].mxu1 }
0x1ccb   :  { %v3048_v44 = vmul.f32 0.35355338, %v8856_v43  ;;  %v3038_v45 = vpop.f32.mrb[27].mxu1 }
0x1ccc   :  { %v3047_v47 = vmul.f32 0.35355338, %v3038_v45 }
0x1ccd   :  { %v3050_v52 = vadd.f32 %v10923_v37, %v3048_v44 }
0x1cce   :  { %v3049_v1 = vadd.f32 %v10928_v46, %v3047_v47 }
0x1ccf   :  { %v3054_v53 = vsel %vm291_vm7, %v3050_v52, -inf }
0x1cd0   :  { %3055 = vmax.xlane.f32.xlu1 %v3054_v53  ;;  %v3051_v55 = vsel %vm291_vm7, %v3049_v1, -inf }
0x1cd1   :  { %3052 = vmax.xlane.f32.xlu0 %v3051_v55 }
0x1cd2   :  { %v8870_v57 = vpop.f32.mrb[28].mxu1 }
0x1cd3   :  { %v3242_v59 = vpop.f32.mrb[29].mxu1  ;;  %v3252_v60 = vmul.f32 0.35355338, %v8870_v57 }
0x1cd4   :  { %v3251_v40 = vmul.f32 0.35355338, %v3242_v59 }
0x1cd5   :  { %v3254_v3 = vadd.f32 %v10923_v37, %v3252_v60 }
0x1cd6   :  { %v3253_v41 = vadd.f32 %v10928_v46, %v3251_v40 }
0x1cd7   :  { %v3258_v4 = vsel %vm291_vm7, %v3254_v3, -inf }
0x1cd8   :  { %v3255_v42 = vsel %vm291_vm7, %v3253_v41, -inf }
0x1cd9   :  { %3256 = vmax.xlane.f32.xlu0 %v3255_v42 }
0x1cdd   :  { %3259 = vmax.xlane.f32.xlu0 %v3258_v4 }
0x1d5d   :  { %v3056_v6 = vpop.xlane.xlu1 %3055 }
0x1d5e   :  { %v3058_v10 = vsub.f32 %v3050_v52, %v3056_v6  ;;  %v3053_v39 = vpop.xlane.xlu0 %3052 }
0x1d5f   :  { %v3057_v7 = vsub.f32 %v3049_v1, %v3053_v39 }
0x1d60   :  { %v3061_v51 = vmul.f32 1.442695, %v3058_v10 }
0x1d61   :  { %v3059_v11 = vmul.f32 1.442695, %v3057_v7 }
0x1d62   :  { %10041 = vpow2.f32 %v3061_v51 }
0x1d63   :  { %10043 = vpow2.f32 %v3059_v11 }
0x1d66   :  { %v3257_v13 = vpop.xlane.xlu0 %3256 }
0x1d67   :  { %v3261_v63 = vsub.f32 %v3253_v41, %v3257_v13 }
0x1d69   :  { %v3263_v14 = vmul.f32 1.442695, %v3261_v63 }
0x1d6a   :  { %v3260_v15 = vpop.xlane.xlu0 %3259 }
0x1d6b   :  { %10045 = vpow2.f32 %v3263_v14  ;;  %v3262_v16 = vsub.f32 %v3254_v3, %v3260_v15 }
0x1d6c   :  { %v10042_v17 = vpop.eup %10041 }
0x1d6d   :  { %v10044_v49 = vpop.eup %10043  ;;  %v3265_v18 = vmul.f32 1.442695, %v3262_v16  ;;  %v3066_v19 = vsel %vm291_vm7, %v10042_v17, 0.0 }
0x1d6e   :  { %3067 = vadd.xlane.f32.xlu1 %v3066_v19  ;;  %v3063_v8 = vsel %vm291_vm7, %v10044_v49, 0.0 }
0x1d6f   :  { %10047 = vpow2.f32 %v3265_v18  ;;  %3064 = vadd.xlane.f32.xlu0 %v3063_v8 }
0x1d75   :  { %v10046_v56 = vpop.eup %10045 }
0x1d76   :  { %v3267_v20 = vsel %vm291_vm7, %v10046_v56, 0.0 }
0x1d77   :  { %3268 = vadd.xlane.f32.xlu0 %v3267_v20 }
0x1d79   :  { %v10048_v21 = vpop.eup %10047 }
0x1d7a   :  { %v3270_v5 = vsel %vm291_vm7, %v10048_v21, 0.0 }
0x1d7b   :  { %3271 = vadd.xlane.f32.xlu1 %v3270_v5 }
0x1d8c   :  { %9793 = vrot.lane.b32.xlu1 %v10894_v26, %s10258_s13 }
0x1d8d   :  { %9788 = vrot.lane.b32.xlu0 %v10894_v26, %s10259_s14 }
0x1d90   :  { %9798 = vrot.lane.b32.xlu1 %v10894_v26, %s10260_s15 }
0x1d91   :  { %3366 = vrot.lane.b32.xlu0 %v10886_v38, %s10261_s16 }
0x1d94   :  { %3364 = vrot.lane.b32.xlu1 %v10888_v25, %s10261_s16 }
0x1dfb   :  { %v3068_v22 = vpop.xlane.xlu1 %3067 }
0x1dfc   :  { %v3065_v12 = vpop.xlane.xlu0 %3064 }
0x1dfd   :  { %10049 = vrcp.f32 %v3065_v12 }
0x1dfe   :  { %10051 = vrcp.f32 %v3068_v22 }
0x1e04   :  { %v3269_v2 = vpop.xlane.xlu0 %3268 }
0x1e05   :  { %10053 = vrcp.f32 %v3269_v2 }
0x1e07   :  { %v10050_v9 = vpop.eup %10049 }
0x1e08   :  { %v3272_v23 = vpop.xlane.xlu1 %3271  ;;  %v9789_v24 = vpop.permute.xlu0 %9788  ;;  %v3071_v62 = vmul.f32 %v10050_v9, %v10044_v49 }
0x1e09   :  { %10055 = vrcp.f32 %v3272_v23  ;;  %v9791_v27 = vunpack.i.h.bf16 %v9789_v24  ;;  %v9790_v28 = vunpack.i.l.bf16 %v9789_v24  ;;  %v10052_v29 = vpop.eup %10051 }
0x1e0a   :  { %8861 = vmatprep.mubr.msk.f32.mxu0 %vm291_vm7, %v3071_v62  ;;  %v3072_v34 = vmul.f32 %v10052_v29, %v10042_v17 }
0x1e0b   :  { %v9407_v61 = vpack.c.bf16 %v9791_v27, %v9790_v28 }
0x1e0c   :  { %v9794_v50 = vpop.permute.xlu1 %9793  ;;  %v3367_v59 = vpop.permute.xlu0 %3366 }
0x1e0d   :  { %v9796_v48 = vunpack.i.h.bf16 %v9794_v50  ;;  %v9795_v0 = vunpack.i.l.bf16 %v9794_v50  ;;  %9408 = vmatprep.subr.bf16.mxu0 %v9407_v61 }
0x1e0e   :  { %9410 = vmatpush3.bf16.msra.mxu0 %v9407_v61 }
0x1e0f   :  { %v10054_v33 = vpop.eup %10053  ;;  %v9417_v43 = vpack.c.bf16 %v9796_v48, %v9795_v0 }
0x1e10   :  { %v9799_v44 = vpop.permute.xlu1 %9798  ;;  %v3275_v45 = vmul.f32 %v10054_v33, %v10046_v56 }
0x1e11   :  { %v9801_v47 = vunpack.i.h.bf16 %v9799_v44  ;;  %v9800_v52 = vunpack.i.l.bf16 %v9799_v44  ;;  %8862 = vmatmul.mubr.msk.f32.vlgmr.msra.gmra.mrb[24].mxu0 %vm291_vm7, %v3072_v34  ;;  %9418 = vmatprep.subr.bf16.mxu0 %v9417_v43 }
0x1e12   :  { %9420 = vmatpush3.bf16.msra.mxu0 %v9417_v43  ;;  %8875 = vmatprep.mubr.msk.f32.mxu0 %vm291_vm7, %v3275_v45 }
0x1e13   :  { %v10056_v1 = vpop.eup %10055  ;;  %v9421_v53 = vpack.c.bf16 %v9801_v47, %v9800_v52 }
0x1e14   :  { %v3276_v55 = vmul.f32 %v10056_v1, %v10048_v21  ;;  %v3365_v57 = vpop.permute.xlu1 %3364 }
0x1e15   :  { %9423 = vmatprep.subr.msk.bf16.mxu0 %vm10382_vm6, %v9421_v53 }
0x1e16   :  { %8876 = vmatmul.mubr.msk.f32.vlgmr.msra.gmra.mrb[26].mxu0 %vm291_vm7, %v3276_v55 }
0x1e17   :  { %8882 = vmatprep.mubr.msk.f32.mxu0 %vm203_vm5, %v3365_v57 }
0x1e1b   :  { %9426 = vmatpush3.bf16.xpose.msk.msra.mxu0 %vm10382_vm6, %v9421_v53 }
0x1e22   :  { %8883 = vmatmul.mubr.msk.f32.vlgmr.msra.gmra.mrb[28].mxu0 %vm203_vm5, %v3367_v59 }
0x1ee4   :  { %v10962_v60 = vpop.f32.mrb[24].mxu0 }
0x1ee5   :  { %v10964_v40 = vpop.f32.mrb[25].mxu0 }
0x1ee9   :  { %v10966_v41 = vpop.f32.mrb[26].mxu0 }
0x1eea   :  { %v10968_v3 = vpop.f32.mrb[27].mxu0 }
0x1ef5   :  { %v8884_v42 = vpop.f32.mrb[28].mxu0 }
0x1ef6   :  { %v3456_v4 = vmul.f32 0.35355338, %v8884_v42  ;;  %v3446_v6 = vpop.f32.mrb[29].mxu0 }
0x1ef7   :  { %v3455_v10 = vmul.f32 0.35355338, %v3446_v6 }
0x1ef8   :  { %v3458_v39 = vadd.f32 %v10923_v37, %v3456_v4 }
0x1ef9   :  { %v3457_v7 = vadd.f32 %v10928_v46, %v3455_v10 }
0x1efa   :  { %v3462_v51 = vsel %vm291_vm7, %v3458_v39, -inf }
0x1efb   :  { %3463 = vmax.xlane.f32.xlu0 %v3462_v51  ;;  %v3459_v11 = vsel %vm291_vm7, %v3457_v7, -inf }
0x1efc   :  { %3460 = vmax.xlane.f32.xlu1 %v3459_v11 }
0x1f0d   :  { %9803 = vrot.lane.b32.xlu1 %v10894_v26, %s11823_s17 }
0x1f11   :  { %3568 = vrot.lane.b32.xlu1 %v10888_v25, %s11821_s18 }
0x1f15   :  { %3570 = vrot.lane.b32.xlu1 %v10886_v38, %s11821_s18 }
0x1f88   :  { %v3464_v13 = vpop.xlane.xlu0 %3463 }
0x1f89   :  { %v3466_v63 = vsub.f32 %v3458_v39, %v3464_v13  ;;  %v3461_v14 = vpop.xlane.xlu1 %3460 }
0x1f8a   :  { %v3465_v15 = vsub.f32 %v3457_v7, %v3461_v14  ;;  %v8087_v14 = vld [vmem:[%s11805_s4 + $0x40] sm:$0xff] }
0x1f8b   :  { %v3469_v16 = vmul.f32 1.442695, %v3466_v63 }
0x1f8c   :  { %v3467_v17 = vmul.f32 1.442695, %v3465_v15  ;;  %v8089_v15 = vld [vmem:[%s11805_s4 + $0x50] sm:$0xff] }
0x1f8d   :  { %10057 = vpow2.f32 %v3469_v16  ;;  %v9804_v49 = vpop.permute.xlu1 %9803 }
0x1f8e   :  { %v9806_v18 = vunpack.i.h.bf16 %v9804_v49  ;;  %v9805_v19 = vunpack.i.l.bf16 %v9804_v49  ;;  %10059 = vpow2.f32 %v3467_v17  ;;  %v8090_v17 = vld [vmem:[%s11805_s4 + $0x58] sm:$0xff] }
0x1f8f   :  { %v9445_v49 = vpack.c.bf16 %v8090_v17, %v8089_v15 }
0x1f90   :  { %v9427_v8 = vpack.c.bf16 %v9806_v18, %v9805_v19 }
0x1f91   :  { %v3569_v28 = vpop.permute.xlu1 %3568 }
0x1f92   :  { %9428 = vmatprep.subr.bf16.mxu1 %v9427_v8 }
0x1f93   :  { %9430 = vmatpush3.bf16.msra.mxu1 %v9427_v8  ;;  %v8044_v8 = vld [vmem:[%s11809_s8 + $0x7] ss:$0 sm:$0xff] }
0x1f95   :  { %v3571_v61 = vpop.permute.xlu1 %3570 }
0x1f97   :  { %v10058_v56 = vpop.eup %10057 }
0x1f98   :  { %v3474_v25 = vsel %vm291_vm7, %v10058_v56, 0.0  ;;  %v10060_v20 = vpop.eup %10059 }
0x1f99   :  { %3475 = vadd.xlane.f32.xlu0 %v3474_v25  ;;  %v3471_v38 = vsel %vm291_vm7, %v10060_v20, 0.0  ;;  %v2737_v25 = vadd.f32 %v10916_v35, %v8044_v8 }
0x1f9d   :  { %3472 = vadd.xlane.f32.xlu0 %v3471_v38  ;;  %v2741_v38 = vadd.f32 %v2737_v25, %v10759_v30 }
0x1fb3   :  { %9808 = vrot.lane.b32.xlu0 %v10894_v26, %s11830_s0 }
0x2026   :  { %v3476_v21 = vpop.xlane.xlu0 %3475 }
0x2027   :  { %10061 = vrcp.f32 %v3476_v21 }
0x202a   :  { %v3473_v5 = vpop.xlane.xlu0 %3472 }
0x202b   :  { %10063 = vrcp.f32 %v3473_v5  ;;  %v2749_v5 = vsel %vm47_vm0, %v2741_v38, 0.0 }
0x202e   :  { %v9809_v12 = vpop.permute.xlu0 %9808 }
0x202f   :  { %v9811_v22 = vunpack.i.h.bf16 %v9809_v12  ;;  %v9810_v2 = vunpack.i.l.bf16 %v9809_v12 }
0x2031   :  { %v9431_v9 = vpack.c.bf16 %v9811_v22, %v9810_v2  ;;  %v10062_v23 = vpop.eup %10061 }
0x2032   :  { %v3480_v27 = vmul.f32 %v10062_v23, %v10058_v56  ;;  %v2732_v56 = vadd.f32 %v8044_v8, %v10918_v36 }
0x2033   :  { %9433 = vmatprep.subr.msk.bf16.mxu1 %vm10382_vm6, %v9431_v9 }
0x2035   :  { %v10064_v24 = vpop.eup %10063 }
0x2036   :  { %v3479_v62 = vmul.f32 %v10064_v24, %v10060_v20  ;;  %v2740_v20 = vadd.f32 %v2732_v56, %v10762_v31 }
0x2038   :  { %8889 = vmatprep.mubr.msk.f32.mxu1 %vm291_vm7, %v3479_v62  ;;  %v2746_v21 = vsel %vm47_vm0, %v2740_v20, 0.0 }
0x2039   :  { %8890 = vmatmul.mubr.msk.f32.vlgmr.msra.gmra.mrb[30].mxu1 %vm291_vm7, %v3480_v27 }
0x203a   :  { %9436 = vmatpush3.bf16.xpose.msk.msra.mxu1 %vm10382_vm6, %v9431_v9  ;;  %8896 = vmatprep.mubr.msk.f32.mxu1 %vm203_vm5, %v3569_v28 }
0x2041   :  { %8897 = vmatmul.mubr.msk.f32.vlgmr.msra.gmra.mrb[32].mxu1 %vm203_vm5, %v3571_v61 }
0x210c   :  { %v8891_v29 = vpop.f32.mrb[30].mxu1 }
0x210d   :  { %v3559_v50 = vpop.f32.mrb[31].mxu1 }
0x2114   :  { %v8898_v48 = vpop.f32.mrb[32].mxu1 }
0x2115   :  { %v3660_v0 = vmul.f32 0.35355338, %v8898_v48  ;;  %v3650_v33 = vpop.f32.mrb[33].mxu1  ;;  %v8092_v48 = vld [vmem:[%s11809_s8 + $0x2] ss:$0 sm:$0xff] }
0x2116   :  { %v3659_v34 = vmul.f32 0.35355338, %v3650_v33 }
0x2117   :  { %v3662_v43 = vadd.f32 %v10923_v37, %v3660_v0 }
0x2118   :  { %v3661_v44 = vadd.f32 %v10928_v46, %v3659_v34 }
0x2119   :  { %v3666_v45 = vsel %vm291_vm7, %v3662_v43, -inf }
0x211a   :  { %3667 = vmax.xlane.f32.xlu0 %v3666_v45  ;;  %v3663_v47 = vsel %vm291_vm7, %v3661_v44, -inf }
0x211b   :  { %3664 = vmax.xlane.f32.xlu1 %v3663_v47 }
0x212c   :  { %9813 = vrot.lane.b32.xlu1 %v10894_v26, %s11831_s30 }
0x2130   :  { %3776 = vrot.lane.b32.xlu1 %v10966_v41, %s11827_s21 }
0x2134   :  { %3782 = vrot.lane.b32.xlu1 %v3559_v50, %s11828_s22 }
0x2138   :  { %3784 = vrot.lane.b32.xlu1 %v8891_v29, %s11828_s22 }
0x21a7   :  { %v3668_v52 = vpop.xlane.xlu0 %3667 }
0x21a8   :  { %v3670_v37 = vsub.f32 %v3662_v43, %v3668_v52  ;;  %v3665_v1 = vpop.xlane.xlu1 %3664 }
0x21a9   :  { %v3669_v46 = vsub.f32 %v3661_v44, %v3665_v1 }
0x21aa   :  { %v3673_v53 = vmul.f32 1.442695, %v3670_v37 }
0x21ab   :  { %v3671_v55 = vmul.f32 1.442695, %v3669_v46 }
0x21ac   :  { %v9814_v57 = vpop.permute.xlu1 %9813 }
0x21ad   :  { %10065 = vpow2.f32 %v3671_v55  ;;  %v9816_v59 = vunpack.i.h.bf16 %v9814_v57  ;;  %v9815_v42 = vunpack.i.l.bf16 %v9814_v57  ;;  %v8101_v55 = vld [vmem:[%s11803_s2 + $0x70] sm:$0xff] }
0x21ae   :  { %10067 = vpow2.f32 %v3673_v53 }
0x21af   :  { %v9437_v4 = vpack.c.bf16 %v9816_v59, %v9815_v42  ;;  %v8102_v59 = vld [vmem:[%s11803_s2 + $0x78] sm:$0xff] }
0x21b0   :  { %v3777_v12 = vpop.permute.xlu1 %3776  ;;  %v9453_v42 = vpack.c.bf16 %v8102_v59, %v8101_v55 }
0x21b1   :  { %9438 = vmatprep.subr.bf16.mxu0 %v9437_v4  ;;  %v3797_v35 = vsel %vm203_vm5, %v10962_v60, %v3777_v12 }
0x21b2   :  { %9440 = vmatpush3.bf16.msra.mxu0 %v9437_v4 }
0x21b4   :  { %v3783_v22 = vpop.permute.xlu1 %3782 }
0x21b7   :  { %v10066_v26 = vpop.eup %10065 }
0x21b8   :  { %v3675_v41 = vsel %vm291_vm7, %v10066_v26, 0.0  ;;  %v10068_v6 = vpop.eup %10067  ;;  %v3785_v9 = vpop.permute.xlu1 %3784 }
0x21b9   :  { %3676 = vadd.xlane.f32.xlu0 %v3675_v41  ;;  %v3678_v10 = vsel %vm291_vm7, %v10068_v6, 0.0  ;;  %v3799_v24 = vsel %vm291_vm7, %v3797_v35, %v3785_v9  ;;  %v8050_v35 = vld [vmem:[%s11809_s8 + $0x13] ss:$0 sm:$0xff] }
0x21bd   :  { %3679 = vadd.xlane.f32.xlu0 %v3678_v10 }
0x21d3   :  { %3774 = vrot.lane.b32.xlu0 %v10968_v3, %s11827_s21  ;;  %v8088_v3 = vld [vmem:[%s11805_s4 + $0x48] sm:$0xff] }
0x21d4   :  { %v9441_v16 = vpack.c.bf16 %v8088_v3, %v8087_v14 }
0x21d6   :  { %9442 = vmatprep.subr.bf16.mxu0 %v9441_v16 }
0x2246   :  { %v3677_v39 = vpop.xlane.xlu0 %3676 }
0x2247   :  { %10069 = vrcp.f32 %v3677_v39 }
0x224a   :  { %v3680_v7 = vpop.xlane.xlu0 %3679 }
0x224b   :  { %10071 = vrcp.f32 %v3680_v7 }
0x224e   :  { %v3775_v2 = vpop.permute.xlu0 %3774 }
0x224f   :  { %v3796_v23 = vsel %vm203_vm5, %v10964_v40, %v3775_v2  ;;  %v8049_v2 = vld [vmem:[%s11809_s8 + $0x12] ss:$0 sm:$0xff] }
0x2250   :  { %v3798_v31 = vsel %vm291_vm7, %v3796_v23, %v3783_v22 }
0x2251   :  { %v10070_v51 = vpop.eup %10069 }
0x2252   :  { %v3683_v11 = vmul.f32 %v10070_v51, %v10066_v26 }
0x2254   :  { %8903 = vmatprep.mubr.msk.f32.mxu0 %vm291_vm7, %v3683_v11 }
0x2255   :  { %v10072_v13 = vpop.eup %10071 }
0x2256   :  { %v3684_v63 = vmul.f32 %v10072_v13, %v10068_v6 }
0x2258   :  { %8904 = vmatmul.mubr.msk.f32.vlgmr.msra.gmra.mrb[30].mxu0 %vm291_vm7, %v3684_v63 }
0x2259   :  { %9444 = vmatpush3.bf16.msra.mxu0 %v9441_v16 }
0x225a   :  { %9446 = vmatprep.subr.bf16.mxu0 %v9445_v49 }
0x225d   :  { %9448 = vmatpush3.bf16.msra.mxu0 %v9445_v49 }
0x232b   :  { %v8905_v18 = vpop.f32.mrb[30].mxu0 }
0x232c   :  { %3792 = vrot.lane.b32.xlu1 %v8905_v18, %s11829_s10  ;;  %v3763_v19 = vpop.f32.mrb[31].mxu0 }
0x232d   :  { %3790 = vrot.lane.b32.xlu0 %v3763_v19, %s11829_s10 }
0x234c   :  { %2747 = vadd.xlane.f32.xlu0 %v2746_v21 }
0x2350   :  { %2750 = vadd.xlane.f32.xlu1 %v2749_v5 }
0x239e   :  { %v3793_v36 = vpop.permute.xlu1 %3792 }
0x239f   :  { %v3791_v30 = vpop.permute.xlu0 %3790  ;;  %v3801_v27 = vsel %vm1041_vm8, %v3799_v24, %v3793_v36 }
0x23a0   :  { %v3800_v62 = vsel %vm1041_vm8, %v3798_v31, %v3791_v30 }
0x23a1   :  { %8914 = vmatprep.mubr.msk.f32.mxu0 %vm47_vm0, %v3800_v62 }
0x23a2   :  { %8915 = vmatmul.mubr.msk.f32.vlgmr.msra.gmra.mrb[32].mxu0 %vm47_vm0, %v3801_v27 }
0x23d9   :  { %v2748_v50 = vpop.xlane.xlu0 %2747 }
0x23da   :  { %v2752_v34 = vmul.f32 0.03125, %v2748_v50 }
0x23dc   :  { %v11052_v47 = vsub.f32 %v2740_v20, %v2752_v34 }
0x23dd   :  { %v2751_v28 = vpop.xlane.xlu1 %2750 }
0x23de   :  { %v2753_v61 = vmul.f32 0.03125, %v2751_v28  ;;  %v2756_v46 = vmul.f32 %v11052_v47, %v11052_v47 }
0x23e0   :  { %v11041_v40 = vsub.f32 %v2741_v38, %v2753_v61  ;;  %v2758_v53 = vsel %vm47_vm0, %v2756_v46, 0.0  ;;  %v8097_v46 = vld [vmem:[%s11809_s8 + $0x16] ss:$0 sm:$0xff] }
0x23e2   :  { %v2757_v60 = vmul.f32 %v11041_v40, %v11041_v40 }
0x23e4   :  { %v2761_v29 = vsel %vm47_vm0, %v2757_v60, 0.0 }
0x23e5   :  { %2762 = vadd.xlane.f32.xlu1 %v2761_v29 }
0x2472   :  { %v2763_v4 = vpop.xlane.xlu1 %2762 }
0x2473   :  { %v2765_v26 = vmul.f32 0.032258064, %v2763_v4 }
0x2475   :  { %v8916_v0 = vpop.f32.mrb[32].mxu0  ;;  %10073 = vrsqrt.f32 %v2765_v26  ;;  %vm2775_vm1 = vcmp.eq.f32.partialorder %v2765_v26, inf  ;;  %v2778_v18 = vand.u32 2147483648, %v2765_v26  ;;  %vm2777_vm2 = vcmp.eq.f32.partialorder %v2765_v26, 0.0 }
0x2476   :  { %v3887_v33 = vpop.f32.mrb[33].mxu0  ;;  %v3893_v43 = vadd.f32 %v8916_v0, %v8092_v48 }
0x2477   :  { %v3888_v44 = vadd.f32 %v8092_v48, %v3887_v33 }
0x2478   :  { %v11055_v52 = vadd.f32 %v3893_v43, %v10778_v54  ;;  %v8100_v54 = vld [vmem:[%s11803_s2 + $0x68] sm:$0xff] }
0x2479   :  { %v11050_v45 = vadd.f32 %v3888_v44, %v10769_v32  ;;  %v8099_v32 = vld [vmem:[%s11803_s2 + $0x60] sm:$0xff] }
0x247a   :  { %v3905_v1 = vsel %vm47_vm0, %v11055_v52, 0.0  ;;  %v9449_v57 = vpack.c.bf16 %v8100_v54, %v8099_v32  ;;  %v8098_v32 = vld [vmem:[%s11809_s8 + $0x17] ss:$0 sm:$0xff] }
0x247b   :  { %v3902_v37 = vsel %vm47_vm0, %v11050_v45, 0.0 }
0x247c   :  { %3903 = vadd.xlane.f32.xlu0 %v3902_v37  ;;  %9458 = vmatprep.subr.bf16.mxu0 %v9449_v57 }
0x247d   :  { %9450 = vmatprep.subr.bf16.mxu1 %v9449_v57  ;;  %9460 = vmatpush3.bf16.msra.mxu0 %v9449_v57 }
0x247e   :  { %9452 = vmatpush3.bf16.msra.mxu1 %v9449_v57  ;;  %9462 = vmatprep.subr.bf16.mxu0 %v9453_v42 }
0x247f   :  { %9454 = vmatprep.subr.bf16.mxu1 %v9453_v42  ;;  %v10074_v11 = vpop.eup %10073 }
0x2480   :  { %3906 = vadd.xlane.f32.xlu0 %v3905_v1  ;;  %v2774_v3 = vmul.f32 %v10074_v11, %v2765_v26 }
0x2481   :  { %9464 = vmatpush3.bf16.msra.mxu0 %v9453_v42 }
0x2482   :  { %9456 = vmatpush3.bf16.msra.mxu1 %v9453_v42  ;;  %v2776_v49 = vsel %vm2775_vm1, %v2765_v26, %v2774_v3  ;;  %v8104_v26 = vld [vmem:[%s11804_s3 + $0x3] ss:$0 sm:$0xff] }
0x2483   :  { %v2779_v19 = vsel %vm2777_vm2, %v2778_v18, %v2776_v49 }
0x2484   :  { %2759 = vadd.xlane.f32.xlu0 %v2758_v53  ;;  %v2781_v8 = vadd.f32 1e-06, %v2779_v19 }
0x2509   :  { %v3904_v41 = vpop.xlane.xlu0 %3903 }
0x250a   :  { %v3908_v6 = vmul.f32 0.03125, %v3904_v41 }
0x250c   :  { %v11077_v10 = vsub.f32 %v11050_v45, %v3908_v6 }
0x250d   :  { %v3907_v39 = vpop.xlane.xlu0 %3906 }
0x250e   :  { %v3909_v7 = vmul.f32 0.03125, %v3907_v39  ;;  %v3912_v51 = vmul.f32 %v11077_v10, %v11077_v10 }
0x2510   :  { %v11082_v13 = vsub.f32 %v11055_v52, %v3909_v7  ;;  %v3914_v63 = vsel %vm47_vm0, %v3912_v51, 0.0 }
0x2511   :  { %3915 = vadd.xlane.f32.xlu0 %v3914_v63  ;;  %v2760_v14 = vpop.xlane.xlu0 %2759 }
0x2512   :  { %v2764_v15 = vmul.f32 0.032258064, %v2760_v14  ;;  %v3913_v16 = vmul.f32 %v11082_v13, %v11082_v13 }
0x2514   :  { %10075 = vrsqrt.f32 %v2764_v15  ;;  %v3917_v17 = vsel %vm47_vm0, %v3913_v16, 0.0  ;;  %vm2768_vm3 = vcmp.eq.f32.partialorder %v2764_v15, inf  ;;  %v2771_v20 = vand.u32 2147483648, %v2764_v15 }
0x2515   :  { %3918 = vadd.xlane.f32.xlu1 %v3917_v17  ;;  %10077 = vrcp.f32 %v2781_v8  ;;  %vm2770_vm4 = vcmp.eq.f32.partialorder %v2764_v15, 0.0 }
0x251e   :  { %v10076_v56 = vpop.eup %10075 }
0x251f   :  { %v2767_v25 = vmul.f32 %v10076_v56, %v2764_v15  ;;  %v10078_v12 = vpop.eup %10077 }
0x2520   :  { %v2785_v22 = vmul.f32 %v10078_v12, %v11041_v40 }
0x2521   :  { %v2769_v38 = vsel %vm2768_vm3, %v2764_v15, %v2767_v25  ;;  %v11148_v25 = vld [vmem:[%s11802_s1 + $0x28] sm:$0xff] }
0x2522   :  { %v2772_v21 = vsel %vm2770_vm4, %v2771_v20, %v2769_v38  ;;  %v2793_v36 = vmul.f32 %v8049_v2, %v2785_v22 }
0x2523   :  { %v2780_v5 = vadd.f32 1e-06, %v2772_v21  ;;  %v11153_v21 = vld [vmem:[%s11802_s1 + $0x20] sm:$0xff] }
0x2524   :  { %v11098_v24 = vadd.f32 %v8050_v35, %v2793_v36 }
0x2525   :  { %10079 = vrcp.f32 %v2780_v5 }
0x252f   :  { %v10080_v9 = vpop.eup %10079 }
0x2530   :  { %v2784_v23 = vmul.f32 %v10080_v9, %v11052_v47 }
0x2532   :  { %v2792_v31 = vmul.f32 %v8049_v2, %v2784_v23 }
0x2534   :  { %v11096_v30 = vadd.f32 %v8050_v35, %v2792_v31 }
0x2536   :  { %8936 = vmatprep.mubr.msk.f32.mxu0 %vm47_vm0, %v11096_v30 }
0x2537   :  { %8937 = vmatmul.mubr.msk.f32.vlgmr.msra.gmra.mrb[34].mxu0 %vm47_vm0, %v11098_v24 }
0x259e   :  { %v3916_v62 = vpop.xlane.xlu0 %3915 }
0x259f   :  { %v3920_v27 = vmul.f32 0.032258064, %v3916_v62 }
0x25a1   :  { %10081 = vrsqrt.f32 %v3920_v27  ;;  %vm3924_vm9 = vcmp.eq.f32.partialorder %v3920_v27, inf  ;;  %v3927_v29 = vand.u32 2147483648, %v3920_v27  ;;  %vm3926_vm10 = vcmp.eq.f32.partialorder %v3920_v27, 0.0 }
0x25a2   :  { %v3919_v28 = vpop.xlane.xlu1 %3918 }
0x25a3   :  { %v3921_v61 = vmul.f32 0.032258064, %v3919_v28 }
0x25a5   :  { %10083 = vrsqrt.f32 %v3921_v61  ;;  %vm3931_vm11 = vcmp.eq.f32.partialorder %v3921_v61, inf  ;;  %v3934_v43 = vand.u32 2147483648, %v3921_v61  ;;  %vm3933_vm12 = vcmp.eq.f32.partialorder %v3921_v61, 0.0 }
0x25ab   :  { %v10082_v40 = vpop.eup %10081 }
0x25ac   :  { %v3923_v60 = vmul.f32 %v10082_v40, %v3920_v27 }
0x25ae   :  { %v3925_v50 = vsel %vm3924_vm9, %v3920_v27, %v3923_v60 }
0x25af   :  { %v3928_v48 = vsel %vm3926_vm10, %v3927_v29, %v3925_v50  ;;  %v10084_v0 = vpop.eup %10083 }
0x25b0   :  { %v3936_v33 = vadd.f32 1e-06, %v3928_v48  ;;  %v3930_v34 = vmul.f32 %v10084_v0, %v3921_v61 }
0x25b2   :  { %10085 = vrcp.f32 %v3936_v33  ;;  %v3932_v44 = vsel %vm3931_vm11, %v3921_v61, %v3930_v34 }
0x25b3   :  { %v3935_v47 = vsel %vm3933_vm12, %v3934_v43, %v3932_v44 }
0x25b4   :  { %v3937_v37 = vadd.f32 1e-06, %v3935_v47 }
0x25b6   :  { %10087 = vrcp.f32 %v3937_v37 }
0x25bc   :  { %v10086_v1 = vpop.eup %10085 }
0x25bd   :  { %v3940_v53 = vmul.f32 %v10086_v1, %v11077_v10 }
0x25bf   :  { %v3948_v54 = vmul.f32 %v8097_v46, %v3940_v53 }
0x25c0   :  { %v10088_v55 = vpop.eup %10087 }
0x25c1   :  { %v3956_v57 = vadd.f32 %v8098_v32, %v3948_v54  ;;  %v3941_v59 = vmul.f32 %v10088_v55, %v11082_v13 }
0x25c3   :  { %8925 = vmatprep.mubr.msk.f32.mxu1 %vm47_vm0, %v3956_v57  ;;  %v3949_v42 = vmul.f32 %v8097_v46, %v3941_v59 }
0x25c5   :  { %v3957_v4 = vadd.f32 %v8098_v32, %v3949_v42 }
0x25c7   :  { %8926 = vmatmul.mubr.msk.f32.vlgmr.msra.gmra.mrb[34].mxu1 %vm47_vm0, %v3957_v4 }
0x260a   :  { %v8938_v41 = vpop.f32.mrb[34].mxu0 }
0x260b   :  { %v4130_v6 = vadd.f32 %v8938_v41, %v8104_v26  ;;  %v4124_v10 = vpop.f32.mrb[35].mxu0 }
0x260c   :  { %v4125_v39 = vadd.f32 %v8104_v26, %v4124_v10 }
0x260e   :  { %v11117_v7 = vpack.i.bf16 %v4130_v6, %v4125_v39 }
0x2610   :  { %9823 = vrot.lane.b32.xlu1 %v11117_v7, %s10255_s27  ;;  %9818 = vrot.lane.b32.xlu0 %v11117_v7, %s10256_s28 }
0x2682   :  { %v9824_v51 = vpop.permute.xlu1 %9823  ;;  %v9819_v11 = vpop.permute.xlu0 %9818 }
0x2683   :  { %v9826_v13 = vunpack.i.h.bf16 %v9824_v51  ;;  %v9825_v63 = vunpack.i.l.bf16 %v9824_v51  ;;  %v9821_v14 = vunpack.i.h.bf16 %v9819_v11  ;;  %v9820_v3 = vunpack.i.l.bf16 %v9819_v11 }
0x2685   :  { %v9465_v15 = vpack.c.bf16 %v9821_v14, %v9820_v3  ;;  %v9475_v16 = vpack.c.bf16 %v9826_v13, %v9825_v63 }
0x2687   :  { %9467 = vmatprep.subr.msk.bf16.mxu1 %vm10382_vm6, %v9465_v15 }
0x2688   :  { %9470 = vmatpush3.bf16.xpose.msk.msra.mxu1 %vm10382_vm6, %v9465_v15 }
0x2689   :  { %9477 = vmatprep.subr.msk.bf16.mxu1 %vm10382_vm6, %v9475_v16 }
0x269a   :  { %v8927_v17 = vpop.f32.mrb[34].mxu1 }
0x269b   :  { %v4043_v49 = vpop.f32.mrb[35].mxu1  ;;  %v11131_v19 = vadd.f32 %v8927_v17, %v8104_v26 }
0x269c   :  { %v11129_v18 = vadd.f32 %v8104_v26, %v4043_v49 }
0x269e   :  { %4337 = vrot.lane.b32.xlu1 %v11129_v18, %s10257_s29  ;;  %8943 = vmatprep.mubr.msk.f32.mxu1 %vm203_vm5, %v11129_v18 }
0x269f   :  { %8944 = vmatmul.mubr.msk.f32.vlgmr.msra.gmra.mrb[36].mxu1 %vm203_vm5, %v11131_v19 }
0x26a0   :  { %9480 = vmatpush3.bf16.xpose.msk.msra.mxu1 %vm10382_vm6, %v9475_v16 }
0x26a2   :  { %4339 = vrot.lane.b32.xlu1 %v11131_v19, %s10257_s29 }
0x2710   :  { %v4338_v8 = vpop.permute.xlu1 %4337 }
0x2711   :  { %8957 = vmatprep.mubr.msk.f32.mxu1 %vm203_vm5, %v4338_v8 }
0x2714   :  { %v4340_v56 = vpop.permute.xlu1 %4339 }
0x2715   :  { %8958 = vmatmul.mubr.msk.f32.vlgmr.msra.gmra.mrb[38].mxu1 %vm203_vm5, %v4340_v56 }
0x2772   :  { %v8945_v20 = vpop.f32.mrb[36].mxu1 }
0x2773   :  { %v4225_v38 = vmul.f32 0.35355338, %v8945_v20  ;;  %v4215_v5 = vpop.f32.mrb[37].mxu1 }
0x2774   :  { %v4224_v12 = vmul.f32 0.35355338, %v4215_v5 }
0x2775   :  { %v4227_v22 = vadd.f32 %v11148_v25, %v4225_v38 }
0x2776   :  { %v4226_v2 = vadd.f32 %v11153_v21, %v4224_v12 }
0x2777   :  { %v4231_v9 = vsel %vm291_vm7, %v4227_v22, -inf }
0x2778   :  { %4232 = vmax.xlane.f32.xlu1 %v4231_v9  ;;  %v4228_v23 = vsel %vm291_vm7, %v4226_v2, -inf }
0x2779   :  { %4229 = vmax.xlane.f32.xlu0 %v4228_v23 }
0x27e8   :  { %v8959_v36 = vpop.f32.mrb[38].mxu1 }
0x27e9   :  { %v4419_v35 = vpop.f32.mrb[39].mxu1  ;;  %v4429_v31 = vmul.f32 0.35355338, %v8959_v36 }
0x27ea   :  { %v4428_v62 = vmul.f32 0.35355338, %v4419_v35 }
0x27eb   :  { %v4431_v28 = vadd.f32 %v11148_v25, %v4429_v31 }
0x27ec   :  { %v4430_v27 = vadd.f32 %v11153_v21, %v4428_v62 }
0x27ed   :  { %v4435_v40 = vsel %vm291_vm7, %v4431_v28, -inf }
0x27ee   :  { %v4432_v61 = vsel %vm291_vm7, %v4430_v27, -inf }
0x27ef   :  { %4433 = vmax.xlane.f32.xlu0 %v4432_v61 }
0x27f3   :  { %4436 = vmax.xlane.f32.xlu0 %v4435_v40 }
0x2805   :  { %v4233_v60 = vpop.xlane.xlu1 %4232 }
0x2806   :  { %v4235_v29 = vsub.f32 %v4227_v22, %v4233_v60  ;;  %v4230_v50 = vpop.xlane.xlu0 %4229 }
0x2807   :  { %v4234_v48 = vsub.f32 %v4226_v2, %v4230_v50 }
0x2808   :  { %v4238_v0 = vmul.f32 1.442695, %v4235_v29 }
0x2809   :  { %v4236_v33 = vmul.f32 1.442695, %v4234_v48 }
0x280a   :  { %10089 = vpow2.f32 %v4238_v0 }
0x280b   :  { %10091 = vpow2.f32 %v4236_v33 }
0x2814   :  { %v10090_v34 = vpop.eup %10089 }
0x2815   :  { %v10092_v43 = vpop.eup %10091  ;;  %v4243_v44 = vsel %vm291_vm7, %v10090_v34, 0.0 }
0x2816   :  { %4244 = vadd.xlane.f32.xlu1 %v4243_v44  ;;  %v4240_v47 = vsel %vm291_vm7, %v10092_v43, 0.0 }
0x2817   :  { %4241 = vadd.xlane.f32.xlu0 %v4240_v47 }
0x287c   :  { %v4434_v37 = vpop.xlane.xlu0 %4433 }
0x287d   :  { %v4438_v1 = vsub.f32 %v4430_v27, %v4434_v37 }
0x287f   :  { %v4440_v46 = vmul.f32 1.442695, %v4438_v1 }
0x2880   :  { %v4437_v53 = vpop.xlane.xlu0 %4436 }
0x2881   :  { %10093 = vpow2.f32 %v4440_v46  ;;  %v4439_v32 = vsub.f32 %v4431_v28, %v4437_v53 }
0x2883   :  { %v4442_v54 = vmul.f32 1.442695, %v4439_v32 }
0x2885   :  { %10095 = vpow2.f32 %v4442_v54 }
0x288b   :  { %v10094_v55 = vpop.eup %10093 }
0x288c   :  { %v4444_v57 = vsel %vm291_vm7, %v10094_v55, 0.0 }
0x288d   :  { %4445 = vadd.xlane.f32.xlu0 %v4444_v57 }
0x288f   :  { %v10096_v59 = vpop.eup %10095 }
0x2890   :  { %v4447_v42 = vsel %vm291_vm7, %v10096_v59, 0.0 }
0x2891   :  { %4448 = vadd.xlane.f32.xlu1 %v4447_v42 }
0x28a2   :  { %9833 = vrot.lane.b32.xlu1 %v11117_v7, %s10258_s13 }
0x28a3   :  { %9828 = vrot.lane.b32.xlu0 %v11117_v7, %s10259_s14  ;;  %v4245_v6 = vpop.xlane.xlu1 %4244 }
0x28a4   :  { %v4242_v4 = vpop.xlane.xlu0 %4241 }
0x28a5   :  { %10097 = vrcp.f32 %v4242_v4 }
0x28a6   :  { %9838 = vrot.lane.b32.xlu1 %v11117_v7, %s10260_s15  ;;  %10099 = vrcp.f32 %v4245_v6 }
0x28a7   :  { %4543 = vrot.lane.b32.xlu0 %v11131_v19, %s10261_s16 }
0x28aa   :  { %4541 = vrot.lane.b32.xlu1 %v11129_v18, %s10261_s16 }
0x28af   :  { %v10098_v26 = vpop.eup %10097 }
0x28b0   :  { %v4248_v41 = vmul.f32 %v10098_v26, %v10092_v43  ;;  %v10100_v14 = vpop.eup %10099 }
0x28b1   :  { %v4249_v49 = vmul.f32 %v10100_v14, %v10090_v34 }
0x28b2   :  { %8950 = vmatprep.mubr.msk.f32.mxu0 %vm291_vm7, %v4248_v41 }
0x291a   :  { %v4446_v10 = vpop.xlane.xlu0 %4445 }
0x291b   :  { %10101 = vrcp.f32 %v4446_v10 }
0x291e   :  { %v4449_v39 = vpop.xlane.xlu1 %4448  ;;  %v9829_v51 = vpop.permute.xlu0 %9828 }
0x291f   :  { %10103 = vrcp.f32 %v4449_v39  ;;  %v9831_v11 = vunpack.i.h.bf16 %v9829_v51  ;;  %v9830_v13 = vunpack.i.l.bf16 %v9829_v51 }
0x2921   :  { %v9471_v63 = vpack.c.bf16 %v9831_v11, %v9830_v13 }
0x2922   :  { %v9834_v3 = vpop.permute.xlu1 %9833  ;;  %v4544_v23 = vpop.permute.xlu0 %4543 }
0x2923   :  { %v9836_v15 = vunpack.i.h.bf16 %v9834_v3  ;;  %v9835_v16 = vunpack.i.l.bf16 %v9834_v3  ;;  %9472 = vmatprep.subr.bf16.mxu0 %v9471_v63 }
0x2924   :  { %9474 = vmatpush3.bf16.msra.mxu0 %v9471_v63 }
0x2925   :  { %v10102_v17 = vpop.eup %10101  ;;  %v9481_v8 = vpack.c.bf16 %v9836_v15, %v9835_v16 }
0x2926   :  { %v9839_v56 = vpop.permute.xlu1 %9838  ;;  %v4452_v20 = vmul.f32 %v10102_v17, %v10094_v55 }
0x2927   :  { %v9841_v38 = vunpack.i.h.bf16 %v9839_v56  ;;  %v9840_v5 = vunpack.i.l.bf16 %v9839_v56  ;;  %8951 = vmatmul.mubr.msk.f32.vlgmr.msra.gmra.mrb[36].mxu0 %vm291_vm7, %v4249_v49  ;;  %9482 = vmatprep.subr.bf16.mxu0 %v9481_v8 }
0x2928   :  { %9484 = vmatpush3.bf16.msra.mxu0 %v9481_v8  ;;  %8964 = vmatprep.mubr.msk.f32.mxu0 %vm291_vm7, %v4452_v20 }
0x2929   :  { %v10104_v12 = vpop.eup %10103  ;;  %v9485_v22 = vpack.c.bf16 %v9841_v38, %v9840_v5 }
0x292a   :  { %v4453_v2 = vmul.f32 %v10104_v12, %v10096_v59  ;;  %v4542_v9 = vpop.permute.xlu1 %4541 }
0x292b   :  { %9487 = vmatprep.subr.msk.bf16.mxu0 %vm10382_vm6, %v9485_v22 }
0x292c   :  { %8965 = vmatmul.mubr.msk.f32.vlgmr.msra.gmra.mrb[38].mxu0 %vm291_vm7, %v4453_v2 }
0x292d   :  { %8971 = vmatprep.mubr.msk.f32.mxu0 %vm203_vm5, %v4542_v9 }
0x2931   :  { %9490 = vmatpush3.bf16.xpose.msk.msra.mxu0 %vm10382_vm6, %v9485_v22 }
0x2938   :  { %8972 = vmatmul.mubr.msk.f32.vlgmr.msra.gmra.mrb[40].mxu0 %vm203_vm5, %v4544_v23 }
0x29fa   :  { %v11187_v36 = vpop.f32.mrb[36].mxu0 }
0x29fb   :  { %v11189_v35 = vpop.f32.mrb[37].mxu0 }
0x29ff   :  { %v11191_v31 = vpop.f32.mrb[38].mxu0 }
0x2a00   :  { %v11193_v62 = vpop.f32.mrb[39].mxu0 }
0x2a0b   :  { %v8973_v27 = vpop.f32.mrb[40].mxu0 }
0x2a0c   :  { %v4633_v28 = vmul.f32 0.35355338, %v8973_v27  ;;  %v4623_v61 = vpop.f32.mrb[41].mxu0 }
0x2a0d   :  { %v4632_v40 = vmul.f32 0.35355338, %v4623_v61 }
0x2a0e   :  { %v4635_v60 = vadd.f32 %v11148_v25, %v4633_v28 }
0x2a0f   :  { %v4634_v29 = vadd.f32 %v11153_v21, %v4632_v40 }
0x2a10   :  { %v4639_v50 = vsel %vm291_vm7, %v4635_v60, -inf }
0x2a11   :  { %4640 = vmax.xlane.f32.xlu0 %v4639_v50  ;;  %v4636_v48 = vsel %vm291_vm7, %v4634_v29, -inf }
0x2a12   :  { %4637 = vmax.xlane.f32.xlu1 %v4636_v48 }
0x2a23   :  { %9843 = vrot.lane.b32.xlu1 %v11117_v7, %s11823_s17  ;;  %s11832_s17 = smov 48  }
0x2a27   :  { %4745 = vrot.lane.b32.xlu1 %v11129_v18, %s11821_s18 }
0x2a2b   :  { %4747 = vrot.lane.b32.xlu1 %v11131_v19, %s11821_s18  ;;  %s11833_s18 = smov 104  }
0x2a9e   :  { %v4641_v0 = vpop.xlane.xlu0 %4640 }
0x2a9f   :  { %v4643_v33 = vsub.f32 %v4635_v60, %v4641_v0  ;;  %v4638_v34 = vpop.xlane.xlu1 %4637  ;;  %v8133_v0 = vld [vmem:[%s11805_s4 + $0x60] sm:$0xff] }
0x2aa0   :  { %v4642_v43 = vsub.f32 %v4634_v29, %v4638_v34 }
0x2aa1   :  { %v4646_v44 = vmul.f32 1.442695, %v4643_v33  ;;  %v8135_v33 = vld [vmem:[%s11805_s4 + $0x70] sm:$0xff] }
0x2aa2   :  { %v4644_v47 = vmul.f32 1.442695, %v4642_v43  ;;  %v8136_v43 = vld [vmem:[%s11805_s4 + $0x78] sm:$0xff] }
0x2aa3   :  { %10105 = vpow2.f32 %v4646_v44  ;;  %v9844_v37 = vpop.permute.xlu1 %9843  ;;  %v9509_v44 = vpack.c.bf16 %v8136_v43, %v8135_v33 }
0x2aa4   :  { %v9846_v1 = vunpack.i.h.bf16 %v9844_v37  ;;  %v9845_v46 = vunpack.i.l.bf16 %v9844_v37  ;;  %10107 = vpow2.f32 %v4644_v47 }
0x2aa6   :  { %v9491_v53 = vpack.c.bf16 %v9846_v1, %v9845_v46 }
0x2aa7   :  { %v4746_v51 = vpop.permute.xlu1 %4745 }
0x2aa8   :  { %9492 = vmatprep.subr.bf16.mxu1 %v9491_v53 }
0x2aa9   :  { %9494 = vmatpush3.bf16.msra.mxu1 %v9491_v53 }
0x2aab   :  { %v4748_v11 = vpop.permute.xlu1 %4747 }
0x2aad   :  { %v10106_v32 = vpop.eup %10105 }
0x2aae   :  { %v4651_v18 = vsel %vm291_vm7, %v10106_v32, 0.0  ;;  %v10108_v54 = vpop.eup %10107 }
0x2aaf   :  { %4652 = vadd.xlane.f32.xlu0 %v4651_v18  ;;  %v4648_v19 = vsel %vm291_vm7, %v10108_v54, 0.0 }
0x2ab3   :  { %4649 = vadd.xlane.f32.xlu0 %v4648_v19 }
0x2ac9   :  { %9848 = vrot.lane.b32.xlu0 %v11117_v7, %s11830_s0 }
0x2b3c   :  { %v4653_v55 = vpop.xlane.xlu0 %4652 }
0x2b3d   :  { %10109 = vrcp.f32 %v4653_v55 }
0x2b40   :  { %v4650_v57 = vpop.xlane.xlu0 %4649 }
0x2b41   :  { %10111 = vrcp.f32 %v4650_v57 }
0x2b44   :  { %v9849_v59 = vpop.permute.xlu0 %9848 }
0x2b45   :  { %v9851_v42 = vunpack.i.h.bf16 %v9849_v59  ;;  %v9850_v4 = vunpack.i.l.bf16 %v9849_v59 }
0x2b47   :  { %v9495_v26 = vpack.c.bf16 %v9851_v42, %v9850_v4  ;;  %v10110_v41 = vpop.eup %10109 }
0x2b48   :  { %v4657_v39 = vmul.f32 %v10110_v41, %v10106_v32 }
0x2b49   :  { %9497 = vmatprep.subr.msk.bf16.mxu1 %vm10382_vm6, %v9495_v26 }
0x2b4b   :  { %v10112_v6 = vpop.eup %10111 }
0x2b4c   :  { %v4656_v10 = vmul.f32 %v10112_v6, %v10108_v54 }
0x2b4e   :  { %8978 = vmatprep.mubr.msk.f32.mxu1 %vm291_vm7, %v4656_v10 }
0x2b4f   :  { %8979 = vmatmul.mubr.msk.f32.vlgmr.msra.gmra.mrb[40].mxu1 %vm291_vm7, %v4657_v39 }
0x2b50   :  { %9500 = vmatpush3.bf16.xpose.msk.msra.mxu1 %vm10382_vm6, %v9495_v26  ;;  %8985 = vmatprep.mubr.msk.f32.mxu1 %vm203_vm5, %v4746_v51 }
0x2b57   :  { %8986 = vmatmul.mubr.msk.f32.vlgmr.msra.gmra.mrb[42].mxu1 %vm203_vm5, %v4748_v11 }
0x2c22   :  { %v8980_v13 = vpop.f32.mrb[40].mxu1 }
0x2c23   :  { %v4736_v63 = vpop.f32.mrb[41].mxu1 }
0x2c2a   :  { %v8987_v14 = vpop.f32.mrb[42].mxu1 }
0x2c2b   :  { %v4837_v3 = vmul.f32 0.35355338, %v8987_v14  ;;  %v4827_v15 = vpop.f32.mrb[43].mxu1 }
0x2c2c   :  { %v4836_v16 = vmul.f32 0.35355338, %v4827_v15 }
0x2c2d   :  { %v4839_v17 = vadd.f32 %v11148_v25, %v4837_v3 }
0x2c2e   :  { %v4838_v49 = vadd.f32 %v11153_v21, %v4836_v16 }
0x2c2f   :  { %v4843_v8 = vsel %vm291_vm7, %v4839_v17, -inf }
0x2c30   :  { %4844 = vmax.xlane.f32.xlu0 %v4843_v8  ;;  %v4840_v56 = vsel %vm291_vm7, %v4838_v49, -inf  ;;  %v8145_v8 = vld [vmem:[%s11806_s5 + $0x40] sm:$0xff] }
0x2c31   :  { %4841 = vmax.xlane.f32.xlu1 %v4840_v56  ;;  %v8146_v56 = vld [vmem:[%s11806_s5 + $0x48] sm:$0xff] }
0x2c42   :  { %9853 = vrot.lane.b32.xlu1 %v11117_v7, %s11831_s30 }
0x2c46   :  { %4953 = vrot.lane.b32.xlu1 %v11191_v31, %s11827_s21 }
0x2c4a   :  { %4959 = vrot.lane.b32.xlu1 %v4736_v63, %s11828_s22 }
0x2c4e   :  { %4961 = vrot.lane.b32.xlu1 %v8980_v13, %s11828_s22 }
0x2cbd   :  { %v4845_v20 = vpop.xlane.xlu0 %4844 }
0x2cbe   :  { %v4847_v25 = vsub.f32 %v4839_v17, %v4845_v20  ;;  %v4842_v38 = vpop.xlane.xlu1 %4841  ;;  %v8147_v20 = vld [vmem:[%s11806_s5 + $0x50] sm:$0xff] }
0x2cbf   :  { %v4846_v21 = vsub.f32 %v4838_v49, %v4842_v38  ;;  %v8148_v38 = vld [vmem:[%s11806_s5 + $0x58] sm:$0xff] }
0x2cc0   :  { %v4850_v5 = vmul.f32 1.442695, %v4847_v25  ;;  %v9513_v25 = vpack.c.bf16 %v8146_v56, %v8145_v8 }
0x2cc1   :  { %v4848_v12 = vmul.f32 1.442695, %v4846_v21  ;;  %v9517_v21 = vpack.c.bf16 %v8148_v38, %v8147_v20 }
0x2cc2   :  { %v9854_v22 = vpop.permute.xlu1 %9853  ;;  %9514 = vmatprep.subr.bf16.mxu1 %v9513_v25 }
0x2cc3   :  { %10113 = vpow2.f32 %v4848_v12  ;;  %v9856_v2 = vunpack.i.h.bf16 %v9854_v22  ;;  %v9855_v9 = vunpack.i.l.bf16 %v9854_v22  ;;  %9516 = vmatpush3.bf16.msra.mxu1 %v9513_v25  ;;  %v8154_v12 = vld [vmem:[%s11807_s6 + $0x88] sm:$0xff]  ;;  %v8155_v22 = vld [vmem:[%s11807_s6 + $0x90] sm:$0xff] }
0x2cc4   :  { %10115 = vpow2.f32 %v4850_v5  ;;  %9518 = vmatprep.subr.bf16.mxu1 %v9517_v21  ;;  %v8153_v5 = vld [vmem:[%s11807_s6 + $0x80] sm:$0xff] }
0x2cc5   :  { %v9501_v23 = vpack.c.bf16 %v9856_v2, %v9855_v9  ;;  %v9521_v2 = vpack.c.bf16 %v8154_v12, %v8153_v5  ;;  %v8156_v9 = vld [vmem:[%s11807_s6 + $0x98] sm:$0xff] }
0x2cc6   :  { %v4954_v1 = vpop.permute.xlu1 %4953 }
0x2cc7   :  { %9502 = vmatprep.subr.bf16.mxu0 %v9501_v23  ;;  %v4974_v19 = vsel %vm203_vm5, %v11187_v36, %v4954_v1  ;;  %9520 = vmatpush3.bf16.msra.mxu1 %v9517_v21 }
0x2cc8   :  { %9504 = vmatpush3.bf16.msra.mxu0 %v9501_v23  ;;  %v9525_v23 = vpack.c.bf16 %v8156_v9, %v8155_v22  ;;  %v8170_v9 = vld [vmem:[%s11803_s2 + $0x88] sm:$0xff] }
0x2cca   :  { %v4960_v46 = vpop.permute.xlu1 %4959 }
0x2ccd   :  { %v10114_v7 = vpop.eup %10113 }
0x2cce   :  { %v4852_v31 = vsel %vm291_vm7, %v10114_v7, 0.0  ;;  %v10116_v27 = vpop.eup %10115  ;;  %v4962_v32 = vpop.permute.xlu1 %4961 }
0x2ccf   :  { %4853 = vadd.xlane.f32.xlu0 %v4852_v31  ;;  %v4855_v28 = vsel %vm291_vm7, %v10116_v27, 0.0  ;;  %v4976_v59 = vsel %vm291_vm7, %v4974_v19, %v4962_v32  ;;  %v8158_v31 = vld [vmem:[%s11807_s6 + $0xa8] sm:$0xff] }
0x2cd3   :  { %4856 = vadd.xlane.f32.xlu0 %v4855_v28 }
0x2ce9   :  { %4951 = vrot.lane.b32.xlu0 %v11193_v62, %s11827_s21  ;;  %v8134_v62 = vld [vmem:[%s11805_s4 + $0x68] sm:$0xff] }
0x2cea   :  { %v9505_v34 = vpack.c.bf16 %v8134_v62, %v8133_v0 }
0x2cec   :  { %9506 = vmatprep.subr.bf16.mxu0 %v9505_v34 }
0x2d5c   :  { %v4854_v61 = vpop.xlane.xlu0 %4853 }
0x2d5d   :  { %10117 = vrcp.f32 %v4854_v61 }
0x2d60   :  { %v4857_v40 = vpop.xlane.xlu0 %4856 }
0x2d61   :  { %10119 = vrcp.f32 %v4857_v40 }
0x2d64   :  { %v4952_v53 = vpop.permute.xlu0 %4951 }
0x2d65   :  { %v4973_v18 = vsel %vm203_vm5, %v11189_v35, %v4952_v53  ;;  %v8138_v35 = vld [vmem:[%s11809_s8 + $0x3] ss:$0 sm:$0xff]  ;;  %v8143_v53 = vld [vmem:[%s11809_s8 + $0x18] ss:$0 sm:$0xff] }
0x2d66   :  { %v4975_v55 = vsel %vm291_vm7, %v4973_v18, %v4960_v46  ;;  %v8144_v18 = vld [vmem:[%s11809_s8 + $0x19] ss:$0 sm:$0xff] }
0x2d67   :  { %v10118_v60 = vpop.eup %10117 }
0x2d68   :  { %v4860_v29 = vmul.f32 %v10118_v60, %v10114_v7  ;;  %v8157_v7 = vld [vmem:[%s11807_s6 + $0xa0] sm:$0xff] }
0x2d6a   :  { %8992 = vmatprep.mubr.msk.f32.mxu0 %vm291_vm7, %v4860_v29 }
0x2d6b   :  { %v10120_v50 = vpop.eup %10119 }
0x2d6c   :  { %v4861_v48 = vmul.f32 %v10120_v50, %v10116_v27  ;;  %v9529_v27 = vpack.c.bf16 %v8158_v31, %v8157_v7  ;;  %v8172_v31 = vld [vmem:[%s11803_s2 + $0x98] sm:$0xff] }
0x2d6e   :  { %8993 = vmatmul.mubr.msk.f32.vlgmr.msra.gmra.mrb[42].mxu0 %vm291_vm7, %v4861_v48 }
0x2d6f   :  { %9508 = vmatpush3.bf16.msra.mxu0 %v9505_v34 }
0x2d70   :  { %9510 = vmatprep.subr.bf16.mxu0 %v9509_v44 }
0x2d73   :  { %9512 = vmatpush3.bf16.msra.mxu0 %v9509_v44 }
0x2d74   :  { %9522 = vmatprep.subr.bf16.mxu0 %v9521_v2 }
0x2e41   :  { %v8994_v47 = vpop.f32.mrb[42].mxu0 }
0x2e42   :  { %4969 = vrot.lane.b32.xlu1 %v8994_v47, %s11829_s10  ;;  %v4940_v37 = vpop.f32.mrb[43].mxu0 }
0x2e43   :  { %4967 = vrot.lane.b32.xlu0 %v4940_v37, %s11829_s10 }
0x2eb4   :  { %v4970_v54 = vpop.permute.xlu1 %4969 }
0x2eb5   :  { %v4968_v57 = vpop.permute.xlu0 %4967  ;;  %v4978_v4 = vsel %vm1041_vm8, %v4976_v59, %v4970_v54 }
0x2eb6   :  { %v4977_v42 = vsel %vm1041_vm8, %v4975_v55, %v4968_v57 }
0x2eb7   :  { %9003 = vmatprep.mubr.msk.f32.mxu0 %vm47_vm0, %v4977_v42 }
0x2eb8   :  { %9004 = vmatmul.mubr.msk.f32.vlgmr.msra.gmra.mrb[44].mxu0 %vm47_vm0, %v4978_v4  ;;  %v8159_v4 = vld [vmem:[%s11807_s6 + $0xb0] sm:$0xff] }
0x2eb9   :  { %9524 = vmatpush3.bf16.msra.mxu0 %v9521_v2  ;;  %v8169_v2 = vld [vmem:[%s11803_s2 + $0x80] sm:$0xff] }
0x2eba   :  { %9526 = vmatprep.subr.bf16.mxu0 %v9525_v23  ;;  %v9537_v7 = vpack.c.bf16 %v8170_v9, %v8169_v2 }
0x2ebc   :  { %9538 = vmatprep.subr.bf16.mxu1 %v9537_v7 }
0x2ebd   :  { %9528 = vmatpush3.bf16.msra.mxu0 %v9525_v23  ;;  %v8171_v23 = vld [vmem:[%s11803_s2 + $0x90] sm:$0xff] }
0x2ebe   :  { %9530 = vmatprep.subr.bf16.mxu0 %v9529_v27 }
0x2ec1   :  { %9532 = vmatpush3.bf16.msra.mxu0 %v9529_v27  ;;  %v9541_v27 = vpack.c.bf16 %v8172_v31, %v8171_v23 }
0x2f8b   :  { %v9005_v26 = vpop.f32.mrb[44].mxu0 }
0x2f8c   :  { %v5070_v41 = vadd.f32 %v9005_v26, %v8138_v35  ;;  %v5064_v36 = vpop.f32.mrb[45].mxu0 }
0x2f8d   :  { %v5065_v6 = vadd.f32 %v8138_v35, %v5064_v36  ;;  %v8160_v35 = vld [vmem:[%s11807_s6 + $0xb8] sm:$0xff] }
0x2f8e   :  { %v11261_v10 = vadd.f32 %v5070_v41, %v11055_v52  ;;  %v9533_v26 = vpack.c.bf16 %v8160_v35, %v8159_v4  ;;  %v8150_v41 = vld [vmem:[%s11808_s7 + $0x2] ss:$0 sm:$0xff]  ;;  %v8174_v4 = vld [vmem:[%s11804_s3 + $0x4] ss:$0 sm:$0xff] }
0x2f8f   :  { %v11264_v39 = vadd.f32 %v5065_v6, %v11050_v45 }
0x2f90   :  { %v5082_v51 = vsel %vm47_vm0, %v11261_v10, 0.0  ;;  %9534 = vmatprep.subr.bf16.mxu0 %v9533_v26 }
0x2f91   :  { %5083 = vadd.xlane.f32.xlu1 %v5082_v51  ;;  %v5079_v11 = vsel %vm47_vm0, %v11264_v39, 0.0  ;;  %9536 = vmatpush3.bf16.msra.mxu0 %v9533_v26 }
0x2f92   :  { %5080 = vadd.xlane.f32.xlu0 %v5079_v11 }
0x301e   :  { %v5084_v13 = vpop.xlane.xlu1 %5083 }
0x301f   :  { %v5086_v63 = vmul.f32 0.03125, %v5084_v13  ;;  %v5081_v14 = vpop.xlane.xlu0 %5080 }
0x3020   :  { %v5085_v3 = vmul.f32 0.03125, %v5081_v14  ;;  %v8162_v14 = vld [vmem:[%s11809_s8 + $0x8] ss:$0 sm:$0xff] }
0x3021   :  { %v11271_v15 = vsub.f32 %v11261_v10, %v5086_v63 }
0x3022   :  { %v5087_v52 = vsub.f32 %v11264_v39, %v5085_v3 }
0x3023   :  { %v5090_v17 = vmul.f32 %v11271_v15, %v11271_v15 }
0x3024   :  { %v5089_v16 = vmul.f32 %v5087_v52, %v5087_v52 }
0x3025   :  { %v5094_v49 = vsel %vm47_vm0, %v5090_v17, 0.0 }
0x3026   :  { %v5091_v45 = vsel %vm47_vm0, %v5089_v16, 0.0 }
0x3027   :  { %5092 = vadd.xlane.f32.xlu0 %v5091_v45 }
0x302b   :  { %5095 = vadd.xlane.f32.xlu0 %v5094_v49 }
0x30b4   :  { %v5093_v28 = vpop.xlane.xlu0 %5092 }
0x30b5   :  { %v5097_v61 = vmul.f32 0.032258064, %v5093_v28 }
0x30b7   :  { %10121 = vrsqrt.f32 %v5097_v61  ;;  %vm5101_vm14 = vcmp.eq.f32.partialorder %v5097_v61, inf  ;;  %v5104_v48 = vand.u32 2147483648, %v5097_v61  ;;  %vm5103_vm15 = vcmp.eq.f32.partialorder %v5097_v61, 0.0 }
0x30b8   :  { %v5096_v40 = vpop.xlane.xlu0 %5095 }
0x30b9   :  { %v5098_v60 = vmul.f32 0.032258064, %v5096_v40 }
0x30bb   :  { %10123 = vrsqrt.f32 %v5098_v60  ;;  %vm5108_vm1 = vcmp.eq.f32.partialorder %v5098_v60, inf  ;;  %v5111_v44 = vand.u32 2147483648, %v5098_v60  ;;  %vm5110_vm2 = vcmp.eq.f32.partialorder %v5098_v60, 0.0 }
0x30c1   :  { %v10122_v29 = vpop.eup %10121 }
0x30c2   :  { %v5100_v50 = vmul.f32 %v10122_v29, %v5097_v61 }
0x30c4   :  { %v5102_v0 = vsel %vm5101_vm14, %v5097_v61, %v5100_v50 }
0x30c5   :  { %v10124_v62 = vpop.eup %10123  ;;  %v5105_v33 = vsel %vm5103_vm15, %v5104_v48, %v5102_v0 }
0x30c6   :  { %v5113_v34 = vadd.f32 1e-06, %v5105_v33  ;;  %v5107_v43 = vmul.f32 %v10124_v62, %v5098_v60 }
0x30c8   :  { %10125 = vrcp.f32 %v5113_v34  ;;  %v5109_v47 = vsel %vm5108_vm1, %v5098_v60, %v5107_v43 }
0x30c9   :  { %v5112_v37 = vsel %vm5110_vm2, %v5111_v44, %v5109_v47 }
0x30ca   :  { %v5114_v1 = vadd.f32 1e-06, %v5112_v37 }
0x30cc   :  { %10127 = vrcp.f32 %v5114_v1 }
0x30d2   :  { %v10126_v46 = vpop.eup %10125 }
0x30d3   :  { %v5117_v32 = vmul.f32 %v10126_v46, %v5087_v52 }
0x30d5   :  { %v5125_v54 = vmul.f32 %v8143_v53, %v5117_v32 }
0x30d6   :  { %v10128_v19 = vpop.eup %10127 }
0x30d7   :  { %v5118_v55 = vmul.f32 %v10128_v19, %v11271_v15  ;;  %v5133_v57 = vadd.f32 %v8144_v18, %v5125_v54  ;;  %v8168_v19 = vld [vmem:[%s11809_s8 + $0x1b] ss:$0 sm:$0xff] }
0x30d9   :  { %v5126_v59 = vmul.f32 %v8143_v53, %v5118_v55  ;;  %9014 = vmatprep.mubr.msk.f32.mxu1 %vm47_vm0, %v5133_v57  ;;  %v8167_v53 = vld [vmem:[%s11809_s8 + $0x1a] ss:$0 sm:$0xff] }
0x30db   :  { %v5134_v42 = vadd.f32 %v8144_v18, %v5126_v59 }
0x30dd   :  { %9015 = vmatmul.mubr.msk.f32.vlgmr.msra.gmra.mrb[44].mxu1 %vm47_vm0, %v5134_v42 }
0x30de   :  { %9540 = vmatpush3.bf16.msra.mxu1 %v9537_v7 }
0x30df   :  { %9542 = vmatprep.subr.bf16.mxu1 %v9541_v27 }
0x30e2   :  { %9544 = vmatpush3.bf16.msra.mxu1 %v9541_v27 }
0x31b0   :  { %v9016_v36 = vpop.f32.mrb[44].mxu1 }
0x31b1   :  { %v5226_v6 = vadd.f32 %v9016_v36, %v8150_v41  ;;  %v5220_v51 = vpop.f32.mrb[45].mxu1 }
0x31b2   :  { %v5221_v11 = vadd.f32 %v8150_v41, %v5220_v51 }
0x31b3   :  { %v5230_v63 = vmax.f32 %v5226_v6, 0.0 }
0x31b4   :  { %v5229_v13 = vmax.f32 %v5221_v11, 0.0 }
0x31b6   :  { %9033 = vmatprep.mubr.msk.f32.mxu0 %vm1308_vm13, %v5229_v13 }
0x31b7   :  { %9034 = vmatmul.mubr.msk.f32.vlgmr.msra.gmra.mrb[46].mxu0 %vm1308_vm13, %v5230_v63 }
0x328a   :  { %v9035_v3 = vpop.f32.mrb[46].mxu0 }
0x328b   :  { %v5326_v15 = vadd.f32 %v9035_v3, %v8162_v14  ;;  %v5320_v52 = vpop.f32.mrb[47].mxu0 }
0x328c   :  { %v5321_v16 = vadd.f32 %v8162_v14, %v5320_v52 }
0x328d   :  { %v11332_v45 = vadd.f32 %v5326_v15, %v11261_v10 }
0x328e   :  { %v11335_v17 = vadd.f32 %v5321_v16, %v11264_v39 }
0x328f   :  { %v5338_v49 = vsel %vm47_vm0, %v11332_v45, 0.0 }
0x3290   :  { %5339 = vadd.xlane.f32.xlu1 %v5338_v49  ;;  %v5335_v8 = vsel %vm47_vm0, %v11335_v17, 0.0 }
0x3291   :  { %5336 = vadd.xlane.f32.xlu0 %v5335_v8 }
0x331d   :  { %v5340_v56 = vpop.xlane.xlu1 %5339 }
0x331e   :  { %v5342_v20 = vmul.f32 0.03125, %v5340_v56  ;;  %v5337_v25 = vpop.xlane.xlu0 %5336 }
0x331f   :  { %v5341_v38 = vmul.f32 0.03125, %v5337_v25 }
0x3320   :  { %v5344_v21 = vsub.f32 %v11332_v45, %v5342_v20 }
0x3321   :  { %v5343_v10 = vsub.f32 %v11335_v17, %v5341_v38  ;;  %v11401_v38 = vld [vmem:[%s11802_s1 + $0x18] sm:$0xff] }
0x3322   :  { %v5346_v5 = vmul.f32 %v5344_v21, %v5344_v21 }
0x3323   :  { %v5345_v12 = vmul.f32 %v5343_v10, %v5343_v10 }
0x3324   :  { %v5350_v39 = vsel %vm47_vm0, %v5346_v5, 0.0 }
0x3325   :  { %5351 = vadd.xlane.f32.xlu1 %v5350_v39  ;;  %v5347_v22 = vsel %vm47_vm0, %v5345_v12, 0.0 }
0x3326   :  { %5348 = vadd.xlane.f32.xlu0 %v5347_v22 }
0x33b2   :  { %v5352_v28 = vpop.xlane.xlu1 %5351 }
0x33b3   :  { %v5354_v61 = vmul.f32 0.032258064, %v5352_v28  ;;  %v5349_v40 = vpop.xlane.xlu0 %5348 }
0x33b4   :  { %v5353_v60 = vmul.f32 0.032258064, %v5349_v40 }
0x33b5   :  { %10129 = vrsqrt.f32 %v5354_v61  ;;  %vm5364_vm3 = vcmp.eq.f32.partialorder %v5354_v61, inf  ;;  %v5367_v0 = vand.u32 2147483648, %v5354_v61  ;;  %vm5366_vm4 = vcmp.eq.f32.partialorder %v5354_v61, 0.0 }
0x33b6   :  { %10131 = vrsqrt.f32 %v5353_v60  ;;  %vm5357_vm9 = vcmp.eq.f32.partialorder %v5353_v60, inf  ;;  %v5360_v34 = vand.u32 2147483648, %v5353_v60  ;;  %vm5359_vm10 = vcmp.eq.f32.partialorder %v5353_v60, 0.0 }
0x33bf   :  { %v10130_v29 = vpop.eup %10129 }
0x33c0   :  { %v10132_v50 = vpop.eup %10131  ;;  %v5363_v48 = vmul.f32 %v10130_v29, %v5354_v61 }
0x33c1   :  { %v5356_v62 = vmul.f32 %v10132_v50, %v5353_v60 }
0x33c2   :  { %v5365_v33 = vsel %vm5364_vm3, %v5354_v61, %v5363_v48 }
0x33c3   :  { %v5368_v43 = vsel %vm5366_vm4, %v5367_v0, %v5365_v33  ;;  %v5358_v44 = vsel %vm5357_vm9, %v5353_v60, %v5356_v62 }
0x33c4   :  { %v5370_v47 = vadd.f32 1e-06, %v5368_v43  ;;  %v5361_v37 = vsel %vm5359_vm10, %v5360_v34, %v5358_v44 }
0x33c5   :  { %v5369_v1 = vadd.f32 1e-06, %v5361_v37 }
0x33c6   :  { %10133 = vrcp.f32 %v5370_v47 }
0x33c7   :  { %10135 = vrcp.f32 %v5369_v1 }
0x33d0   :  { %v10134_v46 = vpop.eup %10133 }
0x33d1   :  { %v10136_v32 = vpop.eup %10135  ;;  %v5374_v18 = vmul.f32 %v10134_v46, %v5344_v21 }
0x33d2   :  { %v5373_v54 = vmul.f32 %v10136_v32, %v5343_v10  ;;  %v11407_v10 = vld [vmem:[%s11802_s1 + $0x10] sm:$0xff] }
0x33d3   :  { %v5382_v55 = vmul.f32 %v8167_v53, %v5374_v18 }
0x33d4   :  { %v5381_v57 = vmul.f32 %v8167_v53, %v5373_v54 }
0x33d5   :  { %v5390_v42 = vadd.f32 %v8168_v19, %v5382_v55 }
0x33d6   :  { %v5389_v59 = vadd.f32 %v8168_v19, %v5381_v57 }
0x33d8   :  { %9044 = vmatprep.mubr.msk.f32.mxu1 %vm47_vm0, %v5389_v59 }
0x33d9   :  { %9045 = vmatmul.mubr.msk.f32.vlgmr.msra.gmra.mrb[46].mxu1 %vm47_vm0, %v5390_v42 }
0x34ac   :  { %v9046_v35 = vpop.f32.mrb[46].mxu1 }
0x34ad   :  { %v11368_v26 = vadd.f32 %v9046_v35, %v8174_v4  ;;  %v5476_v41 = vpop.f32.mrb[47].mxu1 }
0x34ae   :  { %v11370_v36 = vadd.f32 %v8174_v4, %v5476_v41 }
0x34b0   :  { %9051 = vmatprep.mubr.msk.f32.mxu1 %vm203_vm5, %v11370_v36  ;;  %v11376_v6 = vpack.i.bf16 %v11368_v26, %v11370_v36 }
0x34b2   :  { %9863 = vrot.lane.b32.xlu1 %v11376_v6, %s10255_s27  ;;  %9858 = vrot.lane.b32.xlu0 %v11376_v6, %s10256_s28 }
0x34b6   :  { %5687 = vrot.lane.b32.xlu1 %v11370_v36, %s10257_s29 }
0x34ba   :  { %5689 = vrot.lane.b32.xlu1 %v11368_v26, %s10257_s29 }
0x3524   :  { %v9864_v51 = vpop.permute.xlu1 %9863  ;;  %v9859_v11 = vpop.permute.xlu0 %9858 }
0x3525   :  { %v9866_v13 = vunpack.i.h.bf16 %v9864_v51  ;;  %v9865_v63 = vunpack.i.l.bf16 %v9864_v51  ;;  %v9861_v14 = vunpack.i.h.bf16 %v9859_v11  ;;  %v9860_v3 = vunpack.i.l.bf16 %v9859_v11 }
0x3527   :  { %v9545_v15 = vpack.c.bf16 %v9861_v14, %v9860_v3  ;;  %v9555_v52 = vpack.c.bf16 %v9866_v13, %v9865_v63 }
0x3528   :  { %v5688_v16 = vpop.permute.xlu1 %5687 }
0x3529   :  { %9547 = vmatprep.subr.msk.bf16.mxu1 %vm10382_vm6, %v9545_v15 }
0x352a   :  { %9550 = vmatpush3.bf16.xpose.msk.msra.mxu1 %vm10382_vm6, %v9545_v15 }
0x352b   :  { %9557 = vmatprep.subr.msk.bf16.mxu1 %vm10382_vm6, %v9555_v52 }
0x352c   :  { %v5690_v49 = vpop.permute.xlu1 %5689 }
0x3531   :  { %9052 = vmatmul.mubr.msk.f32.vlgmr.msra.gmra.mrb[48].mxu1 %vm203_vm5, %v11368_v26 }
0x3532   :  { %9560 = vmatpush3.bf16.xpose.msk.msra.mxu1 %vm10382_vm6, %v9555_v52  ;;  %9065 = vmatprep.mubr.msk.f32.mxu1 %vm203_vm5, %v5688_v16 }
0x3539   :  { %9066 = vmatmul.mubr.msk.f32.vlgmr.msra.gmra.mrb[50].mxu1 %vm203_vm5, %v5690_v49 }
0x3604   :  { %v9053_v8 = vpop.f32.mrb[48].mxu1 }
0x3605   :  { %v5575_v56 = vmul.f32 0.35355338, %v9053_v8  ;;  %v5565_v20 = vpop.f32.mrb[49].mxu1 }
0x3606   :  { %v5574_v25 = vmul.f32 0.35355338, %v5565_v20 }
0x3607   :  { %v5577_v21 = vadd.f32 %v11401_v38, %v5575_v56 }
0x3608   :  { %v5576_v5 = vadd.f32 %v11407_v10, %v5574_v25 }
0x3609   :  { %v5581_v12 = vsel %vm291_vm7, %v5577_v21, -inf }
0x360a   :  { %5582 = vmax.xlane.f32.xlu1 %v5581_v12  ;;  %v5578_v39 = vsel %vm291_vm7, %v5576_v5, -inf }
0x360b   :  { %5579 = vmax.xlane.f32.xlu0 %v5578_v39 }
0x360c   :  { %v9067_v22 = vpop.f32.mrb[50].mxu1 }
0x360d   :  { %v5769_v2 = vpop.f32.mrb[51].mxu1  ;;  %v5779_v9 = vmul.f32 0.35355338, %v9067_v22 }
0x360e   :  { %v5778_v23 = vmul.f32 0.35355338, %v5769_v2 }
0x360f   :  { %v5781_v31 = vadd.f32 %v11401_v38, %v5779_v9 }
0x3610   :  { %v5780_v7 = vadd.f32 %v11407_v10, %v5778_v23 }
0x3611   :  { %v5785_v28 = vsel %vm291_vm7, %v5781_v31, -inf }
0x3612   :  { %v5782_v27 = vsel %vm291_vm7, %v5780_v7, -inf }
0x3613   :  { %5783 = vmax.xlane.f32.xlu0 %v5782_v27 }
0x3617   :  { %5786 = vmax.xlane.f32.xlu0 %v5785_v28 }
0x3697   :  { %v5583_v61 = vpop.xlane.xlu1 %5582 }
0x3698   :  { %v5585_v40 = vsub.f32 %v5577_v21, %v5583_v61  ;;  %v5580_v60 = vpop.xlane.xlu0 %5579 }
0x3699   :  { %v5584_v29 = vsub.f32 %v5576_v5, %v5580_v60 }
0x369a   :  { %v5588_v50 = vmul.f32 1.442695, %v5585_v40 }
0x369b   :  { %v5586_v48 = vmul.f32 1.442695, %v5584_v29 }
0x369c   :  { %10137 = vpow2.f32 %v5588_v50 }
0x369d   :  { %10139 = vpow2.f32 %v5586_v48 }
0x36a0   :  { %v5784_v0 = vpop.xlane.xlu0 %5783 }
0x36a1   :  { %v5788_v62 = vsub.f32 %v5780_v7, %v5784_v0 }
0x36a3   :  { %v5790_v33 = vmul.f32 1.442695, %v5788_v62 }
0x36a4   :  { %v5787_v34 = vpop.xlane.xlu0 %5786 }
0x36a5   :  { %10141 = vpow2.f32 %v5790_v33  ;;  %v5789_v43 = vsub.f32 %v5781_v31, %v5787_v34 }
0x36a6   :  { %v10138_v44 = vpop.eup %10137 }
0x36a7   :  { %v10140_v47 = vpop.eup %10139  ;;  %v5792_v37 = vmul.f32 1.442695, %v5789_v43  ;;  %v5593_v1 = vsel %vm291_vm7, %v10138_v44, 0.0 }
0x36a8   :  { %5594 = vadd.xlane.f32.xlu1 %v5593_v1  ;;  %v5590_v46 = vsel %vm291_vm7, %v10140_v47, 0.0 }
0x36a9   :  { %10143 = vpow2.f32 %v5792_v37  ;;  %5591 = vadd.xlane.f32.xlu0 %v5590_v46 }
0x36af   :  { %v10142_v53 = vpop.eup %10141 }
0x36b0   :  { %v5794_v32 = vsel %vm291_vm7, %v10142_v53, 0.0 }
0x36b1   :  { %5795 = vadd.xlane.f32.xlu0 %v5794_v32 }
0x36b3   :  { %v10144_v18 = vpop.eup %10143 }
0x36b4   :  { %v5797_v54 = vsel %vm291_vm7, %v10144_v18, 0.0 }
0x36b5   :  { %5798 = vadd.xlane.f32.xlu1 %v5797_v54 }
0x36c6   :  { %9873 = vrot.lane.b32.xlu1 %v11376_v6, %s10258_s13 }
0x36c7   :  { %9868 = vrot.lane.b32.xlu0 %v11376_v6, %s10259_s14 }
0x36ca   :  { %9878 = vrot.lane.b32.xlu1 %v11376_v6, %s10260_s15 }
0x36cb   :  { %5893 = vrot.lane.b32.xlu0 %v11368_v26, %s10261_s16 }
0x36ce   :  { %5891 = vrot.lane.b32.xlu1 %v11370_v36, %s10261_s16 }
0x3735   :  { %v5595_v55 = vpop.xlane.xlu1 %5594 }
0x3736   :  { %v5592_v19 = vpop.xlane.xlu0 %5591 }
0x3737   :  { %10145 = vrcp.f32 %v5592_v19 }
0x3738   :  { %10147 = vrcp.f32 %v5595_v55 }
0x373e   :  { %v5796_v57 = vpop.xlane.xlu0 %5795 }
0x373f   :  { %10149 = vrcp.f32 %v5796_v57 }
0x3741   :  { %v10146_v59 = vpop.eup %10145 }
0x3742   :  { %v5799_v42 = vpop.xlane.xlu1 %5798  ;;  %v9869_v4 = vpop.permute.xlu0 %9868  ;;  %v5598_v35 = vmul.f32 %v10146_v59, %v10140_v47 }
0x3743   :  { %10151 = vrcp.f32 %v5799_v42  ;;  %v9871_v41 = vunpack.i.h.bf16 %v9869_v4  ;;  %v9870_v51 = vunpack.i.l.bf16 %v9869_v4  ;;  %v10148_v13 = vpop.eup %10147 }
0x3744   :  { %9058 = vmatprep.mubr.msk.f32.mxu0 %vm291_vm7, %v5598_v35  ;;  %v5599_v52 = vmul.f32 %v10148_v13, %v10138_v44 }
0x3745   :  { %v9551_v11 = vpack.c.bf16 %v9871_v41, %v9870_v51 }
0x3746   :  { %v9874_v63 = vpop.permute.xlu1 %9873  ;;  %v5894_v39 = vpop.permute.xlu0 %5893 }
0x3747   :  { %v9876_v14 = vunpack.i.h.bf16 %v9874_v63  ;;  %v9875_v3 = vunpack.i.l.bf16 %v9874_v63  ;;  %9552 = vmatprep.subr.bf16.mxu0 %v9551_v11 }
0x3748   :  { %9554 = vmatpush3.bf16.msra.mxu0 %v9551_v11 }
0x3749   :  { %v10150_v15 = vpop.eup %10149  ;;  %v9561_v16 = vpack.c.bf16 %v9876_v14, %v9875_v3 }
0x374a   :  { %v9879_v49 = vpop.permute.xlu1 %9878  ;;  %v5802_v8 = vmul.f32 %v10150_v15, %v10142_v53 }
0x374b   :  { %v9881_v56 = vunpack.i.h.bf16 %v9879_v49  ;;  %v9880_v20 = vunpack.i.l.bf16 %v9879_v49  ;;  %9059 = vmatmul.mubr.msk.f32.vlgmr.msra.gmra.mrb[48].mxu0 %vm291_vm7, %v5599_v52  ;;  %9562 = vmatprep.subr.bf16.mxu0 %v9561_v16 }
0x374c   :  { %9564 = vmatpush3.bf16.msra.mxu0 %v9561_v16  ;;  %9072 = vmatprep.mubr.msk.f32.mxu0 %vm291_vm7, %v5802_v8 }
0x374d   :  { %v10152_v25 = vpop.eup %10151  ;;  %v9565_v21 = vpack.c.bf16 %v9881_v56, %v9880_v20 }
0x374e   :  { %v5803_v5 = vmul.f32 %v10152_v25, %v10144_v18  ;;  %v5892_v12 = vpop.permute.xlu1 %5891 }
0x374f   :  { %9567 = vmatprep.subr.msk.bf16.mxu0 %vm10382_vm6, %v9565_v21 }
0x3750   :  { %9073 = vmatmul.mubr.msk.f32.vlgmr.msra.gmra.mrb[50].mxu0 %vm291_vm7, %v5803_v5 }
0x3751   :  { %9079 = vmatprep.mubr.msk.f32.mxu0 %vm203_vm5, %v5892_v12 }
0x3755   :  { %9570 = vmatpush3.bf16.xpose.msk.msra.mxu0 %vm10382_vm6, %v9565_v21 }
0x375c   :  { %9080 = vmatmul.mubr.msk.f32.vlgmr.msra.gmra.mrb[52].mxu0 %vm203_vm5, %v5894_v39 }
0x381e   :  { %v11440_v22 = vpop.f32.mrb[48].mxu0 }
0x381f   :  { %v11442_v2 = vpop.f32.mrb[49].mxu0 }
0x3823   :  { %v11444_v9 = vpop.f32.mrb[50].mxu0 }
0x3824   :  { %v11446_v23 = vpop.f32.mrb[51].mxu0 }
0x382f   :  { %v9081_v7 = vpop.f32.mrb[52].mxu0 }
0x3830   :  { %v5983_v31 = vmul.f32 0.35355338, %v9081_v7  ;;  %v5973_v27 = vpop.f32.mrb[53].mxu0 }
0x3831   :  { %v5982_v28 = vmul.f32 0.35355338, %v5973_v27 }
0x3832   :  { %v5985_v61 = vadd.f32 %v11401_v38, %v5983_v31 }
0x3833   :  { %v5984_v40 = vadd.f32 %v11407_v10, %v5982_v28 }
0x3834   :  { %v5989_v60 = vsel %vm291_vm7, %v5985_v61, -inf }
0x3835   :  { %5990 = vmax.xlane.f32.xlu0 %v5989_v60  ;;  %v5986_v29 = vsel %vm291_vm7, %v5984_v40, -inf }
0x3836   :  { %5987 = vmax.xlane.f32.xlu1 %v5986_v29 }
0x3847   :  { %9883 = vrot.lane.b32.xlu1 %v11376_v6, %s11832_s17 }
0x384b   :  { %6095 = vrot.lane.b32.xlu1 %v11370_v36, %s11833_s18 }
0x384f   :  { %6097 = vrot.lane.b32.xlu1 %v11368_v26, %s11833_s18 }
0x38c2   :  { %v5991_v50 = vpop.xlane.xlu0 %5990 }
0x38c3   :  { %v5993_v48 = vsub.f32 %v5985_v61, %v5991_v50  ;;  %v5988_v0 = vpop.xlane.xlu1 %5987  ;;  %v8201_v50 = vld [vmem:[%s11805_s4 + $0x80] sm:$0xff] }
0x38c4   :  { %v5992_v62 = vsub.f32 %v5984_v40, %v5988_v0 }
0x38c5   :  { %v5996_v33 = vmul.f32 1.442695, %v5993_v48  ;;  %v8203_v48 = vld [vmem:[%s11805_s4 + $0x90] sm:$0xff] }
0x38c6   :  { %v5994_v34 = vmul.f32 1.442695, %v5992_v62  ;;  %v8204_v62 = vld [vmem:[%s11805_s4 + $0x98] sm:$0xff] }
0x38c7   :  { %10153 = vpow2.f32 %v5996_v33  ;;  %v9884_v43 = vpop.permute.xlu1 %9883  ;;  %v9589_v33 = vpack.c.bf16 %v8204_v62, %v8203_v48 }
0x38c8   :  { %v9886_v44 = vunpack.i.h.bf16 %v9884_v43  ;;  %v9885_v47 = vunpack.i.l.bf16 %v9884_v43  ;;  %10155 = vpow2.f32 %v5994_v34  ;;  %v8213_v34 = vld [vmem:[%s11803_s2 + $0xa0] sm:$0xff]  ;;  %v8214_v43 = vld [vmem:[%s11803_s2 + $0xa8] sm:$0xff] }
0x38ca   :  { %v9571_v37 = vpack.c.bf16 %v9886_v44, %v9885_v47  ;;  %v9593_v44 = vpack.c.bf16 %v8214_v43, %v8213_v34  ;;  %v8215_v47 = vld [vmem:[%s11803_s2 + $0xb0] sm:$0xff] }
0x38cb   :  { %v6096_v35 = vpop.permute.xlu1 %6095 }
0x38cc   :  { %9572 = vmatprep.subr.bf16.mxu1 %v9571_v37 }
0x38cd   :  { %9574 = vmatpush3.bf16.msra.mxu1 %v9571_v37  ;;  %v8216_v37 = vld [vmem:[%s11803_s2 + $0xb8] sm:$0xff] }
0x38cf   :  { %v6098_v41 = vpop.permute.xlu1 %6097 }
0x38d1   :  { %v10154_v1 = vpop.eup %10153 }
0x38d2   :  { %v6001_v36 = vsel %vm291_vm7, %v10154_v1, 0.0  ;;  %v10156_v46 = vpop.eup %10155 }
0x38d3   :  { %6002 = vadd.xlane.f32.xlu0 %v6001_v36  ;;  %v5998_v26 = vsel %vm291_vm7, %v10156_v46, 0.0 }
0x38d7   :  { %5999 = vadd.xlane.f32.xlu0 %v5998_v26 }
0x38ed   :  { %9888 = vrot.lane.b32.xlu0 %v11376_v6, %s11830_s0 }
0x3960   :  { %v6003_v53 = vpop.xlane.xlu0 %6002 }
0x3961   :  { %10157 = vrcp.f32 %v6003_v53 }
0x3964   :  { %v6000_v32 = vpop.xlane.xlu0 %5999 }
0x3965   :  { %10159 = vrcp.f32 %v6000_v32 }
0x3968   :  { %v9889_v18 = vpop.permute.xlu0 %9888 }
0x3969   :  { %v9891_v54 = vunpack.i.h.bf16 %v9889_v18  ;;  %v9890_v19 = vunpack.i.l.bf16 %v9889_v18 }
0x396b   :  { %v9575_v55 = vpack.c.bf16 %v9891_v54, %v9890_v19  ;;  %v10158_v57 = vpop.eup %10157 }
0x396c   :  { %v6007_v4 = vmul.f32 %v10158_v57, %v10154_v1  ;;  %v9597_v1 = vpack.c.bf16 %v8216_v37, %v8215_v47  ;;  %v8211_v47 = vld [vmem:[%s11809_s8 + $0x1c] ss:$0 sm:$0xff] }
0x396d   :  { %9577 = vmatprep.subr.msk.bf16.mxu1 %vm10382_vm6, %v9575_v55 }
0x396f   :  { %v10160_v59 = vpop.eup %10159 }
0x3970   :  { %v6006_v42 = vmul.f32 %v10160_v59, %v10156_v46 }
0x3972   :  { %9086 = vmatprep.mubr.msk.f32.mxu1 %vm291_vm7, %v6006_v42 }
0x3973   :  { %9087 = vmatmul.mubr.msk.f32.vlgmr.msra.gmra.mrb[52].mxu1 %vm291_vm7, %v6007_v4 }
0x3974   :  { %9580 = vmatpush3.bf16.xpose.msk.msra.mxu1 %vm10382_vm6, %v9575_v55  ;;  %9093 = vmatprep.mubr.msk.f32.mxu1 %vm203_vm5, %v6096_v35 }
0x3975   :  { %9594 = vmatprep.subr.bf16.mxu1 %v9593_v44 }
0x397b   :  { %9094 = vmatmul.mubr.msk.f32.vlgmr.msra.gmra.mrb[54].mxu1 %vm203_vm5, %v6098_v41 }
0x397c   :  { %9596 = vmatpush3.bf16.msra.mxu1 %v9593_v44 }
0x397d   :  { %9598 = vmatprep.subr.bf16.mxu1 %v9597_v1 }
0x3980   :  { %9600 = vmatpush3.bf16.msra.mxu1 %v9597_v1 }
0x3a46   :  { %v9088_v51 = vpop.f32.mrb[52].mxu1 }
0x3a47   :  { %v6086_v11 = vpop.f32.mrb[53].mxu1 }
0x3a4e   :  { %v9095_v13 = vpop.f32.mrb[54].mxu1 }
0x3a4f   :  { %v6187_v63 = vmul.f32 0.35355338, %v9095_v13  ;;  %v6177_v14 = vpop.f32.mrb[55].mxu1 }
0x3a50   :  { %v6186_v3 = vmul.f32 0.35355338, %v6177_v14 }
0x3a51   :  { %v6189_v15 = vadd.f32 %v11401_v38, %v6187_v63 }
0x3a52   :  { %v6188_v52 = vadd.f32 %v11407_v10, %v6186_v3 }
0x3a53   :  { %v6193_v16 = vsel %vm291_vm7, %v6189_v15, -inf }
0x3a54   :  { %6194 = vmax.xlane.f32.xlu0 %v6193_v16  ;;  %v6190_v49 = vsel %vm291_vm7, %v6188_v52, -inf }
0x3a55   :  { %6191 = vmax.xlane.f32.xlu1 %v6190_v49 }
0x3a66   :  { %9893 = vrot.lane.b32.xlu1 %v11376_v6, %s11831_s30 }
0x3a6a   :  { %6303 = vrot.lane.b32.xlu1 %v11444_v9, %s11827_s21 }
0x3a6e   :  { %6309 = vrot.lane.b32.xlu1 %v6086_v11, %s11828_s22 }
0x3a72   :  { %6311 = vrot.lane.b32.xlu1 %v9088_v51, %s11828_s22 }
0x3ae1   :  { %v6195_v8 = vpop.xlane.xlu0 %6194 }
0x3ae2   :  { %v6197_v38 = vsub.f32 %v6189_v15, %v6195_v8  ;;  %v6192_v56 = vpop.xlane.xlu1 %6191 }
0x3ae3   :  { %v6196_v10 = vsub.f32 %v6188_v52, %v6192_v56 }
0x3ae4   :  { %v6200_v20 = vmul.f32 1.442695, %v6197_v38 }
0x3ae5   :  { %v6198_v25 = vmul.f32 1.442695, %v6196_v10 }
0x3ae6   :  { %v9894_v21 = vpop.permute.xlu1 %9893 }
0x3ae7   :  { %10161 = vpow2.f32 %v6198_v25  ;;  %v9896_v5 = vunpack.i.h.bf16 %v9894_v21  ;;  %v9895_v12 = vunpack.i.l.bf16 %v9894_v21 }
0x3ae8   :  { %10163 = vpow2.f32 %v6200_v20 }
0x3ae9   :  { %v9581_v39 = vpack.c.bf16 %v9896_v5, %v9895_v12 }
0x3aea   :  { %v6304_v26 = vpop.permute.xlu1 %6303 }
0x3aeb   :  { %9582 = vmatprep.subr.bf16.mxu0 %v9581_v39  ;;  %v6324_v55 = vsel %vm203_vm5, %v11440_v22, %v6304_v26  ;;  %v8206_v22 = vld [vmem:[%s11809_s8 + $0x4] ss:$0 sm:$0xff] }
0x3aec   :  { %9584 = vmatpush3.bf16.msra.mxu0 %v9581_v39 }
0x3aee   :  { %v6310_v53 = vpop.permute.xlu1 %6309 }
0x3af1   :  { %v10162_v6 = vpop.eup %10161 }
0x3af2   :  { %v6202_v9 = vsel %vm291_vm7, %v10162_v6, 0.0  ;;  %v10164_v7 = vpop.eup %10163  ;;  %v6312_v18 = vpop.permute.xlu1 %6311 }
0x3af3   :  { %6203 = vadd.xlane.f32.xlu0 %v6202_v9  ;;  %v6205_v31 = vsel %vm291_vm7, %v10164_v7, 0.0  ;;  %v6326_v42 = vsel %vm291_vm7, %v6324_v55, %v6312_v18 }
0x3af7   :  { %6206 = vadd.xlane.f32.xlu0 %v6205_v31 }
0x3b0d   :  { %6301 = vrot.lane.b32.xlu0 %v11446_v23, %s11827_s21  ;;  %v8202_v23 = vld [vmem:[%s11805_s4 + $0x88] sm:$0xff] }
0x3b0e   :  { %v9585_v0 = vpack.c.bf16 %v8202_v23, %v8201_v50 }
0x3b10   :  { %9586 = vmatprep.subr.bf16.mxu0 %v9585_v0 }
0x3b80   :  { %v6204_v27 = vpop.xlane.xlu0 %6203 }
0x3b81   :  { %10165 = vrcp.f32 %v6204_v27 }
0x3b84   :  { %v6207_v28 = vpop.xlane.xlu0 %6206 }
0x3b85   :  { %10167 = vrcp.f32 %v6207_v28 }
0x3b88   :  { %v6302_v32 = vpop.permute.xlu0 %6301 }
0x3b89   :  { %v6323_v54 = vsel %vm203_vm5, %v11442_v2, %v6302_v32 }
0x3b8a   :  { %v6325_v57 = vsel %vm291_vm7, %v6323_v54, %v6310_v53 }
0x3b8b   :  { %v10166_v61 = vpop.eup %10165 }
0x3b8c   :  { %v6210_v40 = vmul.f32 %v10166_v61, %v10162_v6 }
0x3b8e   :  { %9100 = vmatprep.mubr.msk.f32.mxu0 %vm291_vm7, %v6210_v40 }
0x3b8f   :  { %v10168_v60 = vpop.eup %10167 }
0x3b90   :  { %v6211_v29 = vmul.f32 %v10168_v60, %v10164_v7 }
0x3b92   :  { %9101 = vmatmul.mubr.msk.f32.vlgmr.msra.gmra.mrb[54].mxu0 %vm291_vm7, %v6211_v29 }
0x3b93   :  { %9588 = vmatpush3.bf16.msra.mxu0 %v9585_v0 }
0x3b94   :  { %9590 = vmatprep.subr.bf16.mxu0 %v9589_v33 }
0x3b97   :  { %9592 = vmatpush3.bf16.msra.mxu0 %v9589_v33 }
0x3b98   :  { %9602 = vmatprep.subr.bf16.mxu0 %v9593_v44 }
0x3c65   :  { %v9102_v36 = vpop.f32.mrb[54].mxu0 }
0x3c66   :  { %6319 = vrot.lane.b32.xlu1 %v9102_v36, %s11829_s10  ;;  %v6290_v46 = vpop.f32.mrb[55].mxu0 }
0x3c67   :  { %6317 = vrot.lane.b32.xlu0 %v6290_v46, %s11829_s10 }
0x3cd8   :  { %v6320_v19 = vpop.permute.xlu1 %6319 }
0x3cd9   :  { %v6318_v59 = vpop.permute.xlu0 %6317  ;;  %v6328_v35 = vsel %vm1041_vm8, %v6326_v42, %v6320_v19 }
0x3cda   :  { %v6327_v4 = vsel %vm1041_vm8, %v6325_v57, %v6318_v59 }
0x3cdb   :  { %9111 = vmatprep.mubr.msk.f32.mxu0 %vm47_vm0, %v6327_v4 }
0x3cdc   :  { %9112 = vmatmul.mubr.msk.f32.vlgmr.msra.gmra.mrb[56].mxu0 %vm47_vm0, %v6328_v35 }
0x3cdd   :  { %9604 = vmatpush3.bf16.msra.mxu0 %v9593_v44  ;;  %9133 = vmatprep.mubr.msk.f32.mxu0 %vm47_vm0, %v11096_v30 }
0x3cde   :  { %9606 = vmatprep.subr.bf16.mxu0 %v9597_v1 }
0x3ce1   :  { %9608 = vmatpush3.bf16.msra.mxu0 %v9597_v1  ;;  %v8212_v1 = vld [vmem:[%s11809_s8 + $0x1d] ss:$0 sm:$0xff] }
0x3ce4   :  { %9134 = vmatmul.mubr.msk.f32.vlgmr.msra.gmra.mrb[58].mxu0 %vm47_vm0, %v11098_v24  ;;  %v11540_v24 = vld [vmem:[%s11804_s3 + $0x5] ss:$0 sm:$0xff] }
0x3daf   :  { %v9113_v2 = vpop.f32.mrb[56].mxu0 }
0x3db0   :  { %v6420_v41 = vadd.f32 %v9113_v2, %v8206_v22  ;;  %v6414_v51 = vpop.f32.mrb[57].mxu0 }
0x3db1   :  { %v6415_v11 = vadd.f32 %v8206_v22, %v6414_v51 }
0x3db2   :  { %v11530_v13 = vadd.f32 %v6420_v41, %v11332_v45 }
0x3db3   :  { %v11533_v63 = vadd.f32 %v6415_v11, %v11335_v17 }
0x3db4   :  { %v6432_v30 = vsel %vm47_vm0, %v11530_v13, 0.0 }
0x3db5   :  { %6433 = vadd.xlane.f32.xlu1 %v6432_v30  ;;  %v6429_v14 = vsel %vm47_vm0, %v11533_v63, 0.0 }
0x3db6   :  { %6430 = vadd.xlane.f32.xlu0 %v6429_v14 }
0x3db7   :  { %v9135_v3 = vpop.f32.mrb[58].mxu0 }
0x3db8   :  { %v6651_v45 = vadd.f32 %v9135_v3, %v11540_v24  ;;  %v6645_v15 = vpop.f32.mrb[59].mxu0  ;;  %v11597_v3 = vld [vmem:[%s11802_s1 + $0x20] sm:$0xff] }
0x3db9   :  { %v6646_v17 = vadd.f32 %v11540_v24, %v6645_v15 }
0x3dbb   :  { %v11546_v52 = vpack.i.bf16 %v6651_v45, %v6646_v17 }
0x3dc6   :  { %9903 = vrot.lane.b32.xlu1 %v11546_v52, %s10255_s27  ;;  %s10269_s27 = smov [#allocation2]  }
0x3e42   :  { %v6434_v16 = vpop.xlane.xlu1 %6433 }
0x3e43   :  { %v6436_v49 = vmul.f32 0.03125, %v6434_v16  ;;  %v6431_v8 = vpop.xlane.xlu0 %6430 }
0x3e44   :  { %v6435_v38 = vmul.f32 0.03125, %v6431_v8 }
0x3e45   :  { %v6438_v56 = vsub.f32 %v11530_v13, %v6436_v49 }
0x3e46   :  { %v6437_v10 = vsub.f32 %v11533_v63, %v6435_v38  ;;  %v9904_v26 = vpop.permute.xlu1 %9903 }
0x3e47   :  { %v6440_v21 = vmul.f32 %v6438_v56, %v6438_v56  ;;  %v9906_v18 = vunpack.i.h.bf16 %v9904_v26  ;;  %v9905_v54 = vunpack.i.l.bf16 %v9904_v26 }
0x3e48   :  { %v6439_v20 = vmul.f32 %v6437_v10, %v6437_v10 }
0x3e49   :  { %v6444_v5 = vsel %vm47_vm0, %v6440_v21, 0.0  ;;  %v9619_v57 = vpack.c.bf16 %v9906_v18, %v9905_v54 }
0x3e4a   :  { %v6441_v25 = vsel %vm47_vm0, %v6439_v20, 0.0 }
0x3e4b   :  { %6442 = vadd.xlane.f32.xlu0 %v6441_v25 }
0x3e4f   :  { %6445 = vadd.xlane.f32.xlu0 %v6444_v5 }
0x3e65   :  { %9898 = vrot.lane.b32.xlu0 %v11546_v52, %s10256_s28  ;;  %s7919_s28 = sshll.u32 %s10269_s27, 4  ;;  %s7920_s28 = int_to_ptr.vmem [resolvable:$true] %s7919_s28 }
0x3e66   :  { %s10231_s12 = scalar_lea.vmem %s7920_s28, 256  ;;  %p10236_p1 = scmp.lt.s32.totalorder %s7920_s28, %s7920_s28 }
0x3e67   :  { %p10232_p0 = scmp.ne.s32.totalorder %s7920_s28, %s10231_s12  ;;  %p10237_p2 = scmp.lt.s32.totalorder %s10231_s12, %s10231_s12 }
0x3e69   :  { %p10238_p3 = por %p10237_p2, %p10236_p1 }
0x3e6b   :  { %p10239_p4 = pnand %p10238_p3, %p10232_p0 }
0x3ed8   :  { %v6443_v12 = vpop.xlane.xlu0 %6442 }
0x3ed9   :  { %v6447_v39 = vmul.f32 0.032258064, %v6443_v12 }
0x3edb   :  { %10169 = vrsqrt.f32 %v6447_v39  ;;  %vm6451_vm11 = vcmp.eq.f32.partialorder %v6447_v39, inf  ;;  %v6454_v60 = vand.u32 2147483648, %v6447_v39  ;;  %vm6453_vm12 = vcmp.eq.f32.partialorder %v6447_v39, 0.0 }
0x3edc   :  { %v6446_v6 = vpop.xlane.xlu0 %6445 }
0x3edd   :  { %v6448_v9 = vmul.f32 0.032258064, %v6446_v6 }
0x3edf   :  { %10171 = vrsqrt.f32 %v6448_v9  ;;  %vm6458_vm14 = vcmp.eq.f32.partialorder %v6448_v9, inf  ;;  %v6461_v62 = vand.u32 2147483648, %v6448_v9  ;;  %vm6460_vm15 = vcmp.eq.f32.partialorder %v6448_v9, 0.0 }
0x3ee0   :  { %v9899_v7 = vpop.permute.xlu0 %9898 }
0x3ee1   :  { %v9901_v31 = vunpack.i.h.bf16 %v9899_v7  ;;  %v9900_v27 = vunpack.i.l.bf16 %v9899_v7 }
0x3ee3   :  { %v9609_v28 = vpack.c.bf16 %v9901_v31, %v9900_v27 }
0x3ee5   :  { %v10170_v61 = vpop.eup %10169  ;;  %9611 = vmatprep.subr.msk.bf16.mxu1 %vm10382_vm6, %v9609_v28 }
0x3ee6   :  { %v6450_v40 = vmul.f32 %v10170_v61, %v6447_v39 }
0x3ee8   :  { %v6452_v29 = vsel %vm6451_vm11, %v6447_v39, %v6450_v40 }
0x3ee9   :  { %v10172_v50 = vpop.eup %10171  ;;  %v6455_v23 = vsel %vm6453_vm12, %v6454_v60, %v6452_v29 }
0x3eea   :  { %v6463_v48 = vadd.f32 1e-06, %v6455_v23  ;;  %v6457_v0 = vmul.f32 %v10172_v50, %v6448_v9 }
0x3eec   :  { %10173 = vrcp.f32 %v6463_v48  ;;  %v6459_v33 = vsel %vm6458_vm14, %v6448_v9, %v6457_v0 }
0x3eed   :  { %v6462_v34 = vsel %vm6460_vm15, %v6461_v62, %v6459_v33 }
0x3eee   :  { %v6464_v43 = vadd.f32 1e-06, %v6462_v34 }
0x3ef0   :  { %10175 = vrcp.f32 %v6464_v43 }
0x3ef6   :  { %v10174_v44 = vpop.eup %10173 }
0x3ef7   :  { %v6467_v37 = vmul.f32 %v10174_v44, %v6437_v10 }
0x3ef9   :  { %v6475_v36 = vmul.f32 %v8211_v47, %v6467_v37 }
0x3efa   :  { %v10176_v46 = vpop.eup %10175 }
0x3efb   :  { %v6468_v53 = vmul.f32 %v10176_v46, %v6438_v56  ;;  %v6483_v32 = vadd.f32 %v8212_v1, %v6475_v36 }
0x3efd   :  { %v6476_v19 = vmul.f32 %v8211_v47, %v6468_v53  ;;  %9122 = vmatprep.mubr.msk.f32.mxu1 %vm47_vm0, %v6483_v32 }
0x3eff   :  { %v6484_v55 = vadd.f32 %v8212_v1, %v6476_v19 }
0x3f01   :  { %9123 = vmatmul.mubr.msk.f32.vlgmr.msra.gmra.mrb[56].mxu1 %vm47_vm0, %v6484_v55 }
0x3f02   :  { %9614 = vmatpush3.bf16.xpose.msk.msra.mxu1 %vm10382_vm6, %v9609_v28 }
0x3f03   :  { %9621 = vmatprep.subr.msk.bf16.mxu1 %vm10382_vm6, %v9619_v57 }
0x3fd4   :  { %v9124_v59 = vpop.f32.mrb[56].mxu1 }
0x3fd5   :  { %v6570_v42 = vpop.f32.mrb[57].mxu1  ;;  %v11574_v35 = vadd.f32 %v9124_v59, %v11540_v24 }
0x3fd6   :  { %v11571_v4 = vadd.f32 %v11540_v24, %v6570_v42  ;;  %v11591_v24 = vld [vmem:[%s11802_s1 + $0x28] sm:$0xff] }
0x3fd8   :  { %6858 = vrot.lane.b32.xlu1 %v11571_v4, %s10257_s29  ;;  %9140 = vmatprep.mubr.msk.f32.mxu1 %vm203_vm5, %v11571_v4 }
0x3fd9   :  { %9141 = vmatmul.mubr.msk.f32.vlgmr.msra.gmra.mrb[58].mxu1 %vm203_vm5, %v11574_v35 }
0x3fda   :  { %9624 = vmatpush3.bf16.xpose.msk.msra.mxu1 %vm10382_vm6, %v9619_v57 }
0x3fdc   :  { %6860 = vrot.lane.b32.xlu1 %v11574_v35, %s10257_s29 }
0x404a   :  { %v6859_v22 = vpop.permute.xlu1 %6858 }
0x404b   :  { %9154 = vmatprep.mubr.msk.f32.mxu1 %vm203_vm5, %v6859_v22 }
0x404e   :  { %v6861_v2 = vpop.permute.xlu1 %6860 }
0x404f   :  { %9155 = vmatmul.mubr.msk.f32.vlgmr.msra.gmra.mrb[60].mxu1 %vm203_vm5, %v6861_v2 }
0x40ac   :  { %v9142_v41 = vpop.f32.mrb[58].mxu1 }
0x40ad   :  { %v6746_v51 = vmul.f32 0.35355338, %v9142_v41  ;;  %v6736_v11 = vpop.f32.mrb[59].mxu1 }
0x40ae   :  { %v6745_v30 = vmul.f32 0.35355338, %v6736_v11 }
0x40af   :  { %v6748_v14 = vadd.f32 %v11591_v24, %v6746_v51 }
0x40b0   :  { %v6747_v45 = vadd.f32 %v11597_v3, %v6745_v30 }
0x40b1   :  { %v6752_v15 = vsel %vm291_vm7, %v6748_v14, -inf }
0x40b2   :  { %6753 = vmax.xlane.f32.xlu1 %v6752_v15  ;;  %v6749_v17 = vsel %vm291_vm7, %v6747_v45, -inf }
0x40b3   :  { %6750 = vmax.xlane.f32.xlu0 %v6749_v17 }
0x4122   :  { %v9156_v16 = vpop.f32.mrb[60].mxu1 }
0x4123   :  { %v6940_v49 = vpop.f32.mrb[61].mxu1  ;;  %v6950_v8 = vmul.f32 0.35355338, %v9156_v16 }
0x4124   :  { %v6949_v38 = vmul.f32 0.35355338, %v6940_v49 }
0x4125   :  { %v6952_v10 = vadd.f32 %v11591_v24, %v6950_v8 }
0x4126   :  { %v6951_v56 = vadd.f32 %v11597_v3, %v6949_v38 }
0x4127   :  { %v6956_v25 = vsel %vm291_vm7, %v6952_v10, -inf }
0x4128   :  { %v6953_v20 = vsel %vm291_vm7, %v6951_v56, -inf }
0x4129   :  { %6954 = vmax.xlane.f32.xlu0 %v6953_v20 }
0x412d   :  { %6957 = vmax.xlane.f32.xlu0 %v6956_v25 }
0x413f   :  { %v6754_v21 = vpop.xlane.xlu1 %6753 }
0x4140   :  { %v6756_v5 = vsub.f32 %v6748_v14, %v6754_v21  ;;  %v6751_v12 = vpop.xlane.xlu0 %6750 }
0x4141   :  { %v6755_v39 = vsub.f32 %v6747_v45, %v6751_v12 }
0x4142   :  { %v6759_v6 = vmul.f32 1.442695, %v6756_v5 }
0x4143   :  { %v6757_v9 = vmul.f32 1.442695, %v6755_v39 }
0x4144   :  { %10177 = vpow2.f32 %v6759_v6 }
0x4145   :  { %10179 = vpow2.f32 %v6757_v9 }
0x414e   :  { %v10178_v7 = vpop.eup %10177 }
0x414f   :  { %v10180_v31 = vpop.eup %10179  ;;  %v6764_v27 = vsel %vm291_vm7, %v10178_v7, 0.0 }
0x4150   :  { %6765 = vadd.xlane.f32.xlu1 %v6764_v27  ;;  %v6761_v28 = vsel %vm291_vm7, %v10180_v31, 0.0 }
0x4151   :  { %6762 = vadd.xlane.f32.xlu0 %v6761_v28 }
0x41b6   :  { %v6955_v61 = vpop.xlane.xlu0 %6954 }
0x41b7   :  { %v6959_v40 = vsub.f32 %v6951_v56, %v6955_v61 }
0x41b9   :  { %v6961_v60 = vmul.f32 1.442695, %v6959_v40 }
0x41ba   :  { %v6958_v29 = vpop.xlane.xlu0 %6957 }
0x41bb   :  { %10181 = vpow2.f32 %v6961_v60  ;;  %v6960_v50 = vsub.f32 %v6952_v10, %v6958_v29 }
0x41bd   :  { %v6963_v23 = vmul.f32 1.442695, %v6960_v50 }
0x41bf   :  { %10183 = vpow2.f32 %v6963_v23 }
0x41c5   :  { %v10182_v48 = vpop.eup %10181 }
0x41c6   :  { %v6965_v0 = vsel %vm291_vm7, %v10182_v48, 0.0 }
0x41c7   :  { %6966 = vadd.xlane.f32.xlu0 %v6965_v0 }
0x41c9   :  { %v10184_v62 = vpop.eup %10183 }
0x41ca   :  { %v6968_v33 = vsel %vm291_vm7, %v10184_v62, 0.0 }
0x41cb   :  { %6969 = vadd.xlane.f32.xlu1 %v6968_v33 }
0x41dc   :  { %9913 = vrot.lane.b32.xlu1 %v11546_v52, %s10258_s13 }
0x41dd   :  { %9908 = vrot.lane.b32.xlu0 %v11546_v52, %s10259_s14  ;;  %v6766_v47 = vpop.xlane.xlu1 %6765 }
0x41de   :  { %v6763_v34 = vpop.xlane.xlu0 %6762 }
0x41df   :  { %10185 = vrcp.f32 %v6763_v34 }
0x41e0   :  { %9918 = vrot.lane.b32.xlu1 %v11546_v52, %s10260_s15  ;;  %10187 = vrcp.f32 %v6766_v47 }
0x41e1   :  { %7064 = vrot.lane.b32.xlu0 %v11574_v35, %s10261_s16 }
0x41e4   :  { %7062 = vrot.lane.b32.xlu1 %v11571_v4, %s10261_s16 }
0x41e9   :  { %v10186_v43 = vpop.eup %10185 }
0x41ea   :  { %v6769_v44 = vmul.f32 %v10186_v43, %v10180_v31  ;;  %v10188_v32 = vpop.eup %10187 }
0x41eb   :  { %v6770_v57 = vmul.f32 %v10188_v32, %v10178_v7 }
0x41ec   :  { %9147 = vmatprep.mubr.msk.f32.mxu0 %vm291_vm7, %v6769_v44 }
0x4254   :  { %v6967_v37 = vpop.xlane.xlu0 %6966 }
0x4255   :  { %10189 = vrcp.f32 %v6967_v37 }
0x4258   :  { %v6970_v1 = vpop.xlane.xlu1 %6969  ;;  %v9909_v36 = vpop.permute.xlu0 %9908 }
0x4259   :  { %10191 = vrcp.f32 %v6970_v1  ;;  %v9911_v46 = vunpack.i.h.bf16 %v9909_v36  ;;  %v9910_v26 = vunpack.i.l.bf16 %v9909_v36 }
0x425b   :  { %v9615_v53 = vpack.c.bf16 %v9911_v46, %v9910_v26 }
0x425c   :  { %v9914_v18 = vpop.permute.xlu1 %9913  ;;  %v7065_v45 = vpop.permute.xlu0 %7064 }
0x425d   :  { %v9916_v54 = vunpack.i.h.bf16 %v9914_v18  ;;  %v9915_v19 = vunpack.i.l.bf16 %v9914_v18  ;;  %9616 = vmatprep.subr.bf16.mxu0 %v9615_v53 }
0x425e   :  { %9618 = vmatpush3.bf16.msra.mxu0 %v9615_v53 }
0x425f   :  { %v10190_v55 = vpop.eup %10189  ;;  %v9625_v59 = vpack.c.bf16 %v9916_v54, %v9915_v19 }
0x4260   :  { %v9919_v42 = vpop.permute.xlu1 %9918  ;;  %v6973_v22 = vmul.f32 %v10190_v55, %v10182_v48 }
0x4261   :  { %v9921_v2 = vunpack.i.h.bf16 %v9919_v42  ;;  %v9920_v41 = vunpack.i.l.bf16 %v9919_v42  ;;  %9148 = vmatmul.mubr.msk.f32.vlgmr.msra.gmra.mrb[60].mxu0 %vm291_vm7, %v6770_v57  ;;  %9626 = vmatprep.subr.bf16.mxu0 %v9625_v59 }
0x4262   :  { %9628 = vmatpush3.bf16.msra.mxu0 %v9625_v59  ;;  %9161 = vmatprep.mubr.msk.f32.mxu0 %vm291_vm7, %v6973_v22 }
0x4263   :  { %v10192_v51 = vpop.eup %10191  ;;  %v9629_v11 = vpack.c.bf16 %v9921_v2, %v9920_v41 }
0x4264   :  { %v6974_v30 = vmul.f32 %v10192_v51, %v10184_v62  ;;  %v7063_v14 = vpop.permute.xlu1 %7062 }
0x4265   :  { %9631 = vmatprep.subr.msk.bf16.mxu0 %vm10382_vm6, %v9629_v11 }
0x4266   :  { %9162 = vmatmul.mubr.msk.f32.vlgmr.msra.gmra.mrb[62].mxu0 %vm291_vm7, %v6974_v30 }
0x4267   :  { %9168 = vmatprep.mubr.msk.f32.mxu0 %vm203_vm5, %v7063_v14 }
0x426b   :  { %9634 = vmatpush3.bf16.xpose.msk.msra.mxu0 %vm10382_vm6, %v9629_v11 }
0x4272   :  { %9169 = vmatmul.mubr.msk.f32.vlgmr.msra.gmra.mrb[64].mxu0 %vm203_vm5, %v7065_v45 }
0x4334   :  { %v11630_v15 = vpop.f32.mrb[60].mxu0 }
0x4335   :  { %v11632_v17 = vpop.f32.mrb[61].mxu0 }
0x4339   :  { %v11634_v16 = vpop.f32.mrb[62].mxu0 }
0x433a   :  { %v11636_v49 = vpop.f32.mrb[63].mxu0 }
0x4345   :  { %v9170_v8 = vpop.f32.mrb[64].mxu0 }
0x4346   :  { %v7154_v38 = vmul.f32 0.35355338, %v9170_v8  ;;  %v7144_v56 = vpop.f32.mrb[65].mxu0 }
0x4347   :  { %v7153_v10 = vmul.f32 0.35355338, %v7144_v56 }
0x4348   :  { %v7156_v20 = vadd.f32 %v11591_v24, %v7154_v38 }
0x4349   :  { %v7155_v25 = vadd.f32 %v11597_v3, %v7153_v10 }
0x434a   :  { %v7160_v21 = vsel %vm291_vm7, %v7156_v20, -inf }
0x434b   :  { %7161 = vmax.xlane.f32.xlu0 %v7160_v21  ;;  %v7157_v5 = vsel %vm291_vm7, %v7155_v25, -inf  ;;  %v8249_v21 = vld [vmem:[%s11805_s4 + $0xb0] sm:$0xff] }
0x434c   :  { %7158 = vmax.xlane.f32.xlu1 %v7157_v5 }
0x435d   :  { %9923 = vrot.lane.b32.xlu1 %v11546_v52, %s11832_s17 }
0x4361   :  { %7266 = vrot.lane.b32.xlu1 %v11571_v4, %s11833_s18 }
0x4365   :  { %7268 = vrot.lane.b32.xlu1 %v11574_v35, %s11833_s18 }
0x43d8   :  { %v7162_v12 = vpop.xlane.xlu0 %7161 }
0x43d9   :  { %v7164_v39 = vsub.f32 %v7156_v20, %v7162_v12  ;;  %v7159_v6 = vpop.xlane.xlu1 %7158  ;;  %v8250_v12 = vld [vmem:[%s11805_s4 + $0xb8] sm:$0xff] }
0x43da   :  { %v7163_v9 = vsub.f32 %v7155_v25, %v7159_v6  ;;  %v8247_v25 = vld [vmem:[%s11805_s4 + $0xa0] sm:$0xff] }
0x43db   :  { %v7167_v7 = vmul.f32 1.442695, %v7164_v39  ;;  %v9653_v39 = vpack.c.bf16 %v8250_v12, %v8249_v21 }
0x43dc   :  { %v7165_v31 = vmul.f32 1.442695, %v7163_v9 }
0x43dd   :  { %10193 = vpow2.f32 %v7167_v7  ;;  %v9924_v27 = vpop.permute.xlu1 %9923 }
0x43de   :  { %v9926_v28 = vunpack.i.h.bf16 %v9924_v27  ;;  %v9925_v61 = vunpack.i.l.bf16 %v9924_v27  ;;  %10195 = vpow2.f32 %v7165_v31 }
0x43e0   :  { %v9635_v40 = vpack.c.bf16 %v9926_v28, %v9925_v61 }
0x43e1   :  { %v7267_v37 = vpop.permute.xlu1 %7266 }
0x43e2   :  { %9636 = vmatprep.subr.bf16.mxu1 %v9635_v40 }
0x43e3   :  { %9638 = vmatpush3.bf16.msra.mxu1 %v9635_v40 }
0x43e5   :  { %v7269_v1 = vpop.permute.xlu1 %7268 }
0x43e7   :  { %v10194_v60 = vpop.eup %10193 }
0x43e8   :  { %v7172_v4 = vsel %vm291_vm7, %v10194_v60, 0.0  ;;  %v10196_v29 = vpop.eup %10195 }
0x43e9   :  { %7173 = vadd.xlane.f32.xlu0 %v7172_v4  ;;  %v7169_v35 = vsel %vm291_vm7, %v10196_v29, 0.0 }
0x43ed   :  { %7170 = vadd.xlane.f32.xlu0 %v7169_v35 }
0x4403   :  { %9928 = vrot.lane.b32.xlu0 %v11546_v52, %s11830_s0 }
0x4476   :  { %v7174_v50 = vpop.xlane.xlu0 %7173 }
0x4477   :  { %10197 = vrcp.f32 %v7174_v50 }
0x447a   :  { %v7171_v23 = vpop.xlane.xlu0 %7170 }
0x447b   :  { %10199 = vrcp.f32 %v7171_v23 }
0x447e   :  { %v9929_v48 = vpop.permute.xlu0 %9928 }
0x447f   :  { %v9931_v0 = vunpack.i.h.bf16 %v9929_v48  ;;  %v9930_v62 = vunpack.i.l.bf16 %v9929_v48 }
0x4481   :  { %v9639_v33 = vpack.c.bf16 %v9931_v0, %v9930_v62  ;;  %v10198_v34 = vpop.eup %10197 }
0x4482   :  { %v7178_v47 = vmul.f32 %v10198_v34, %v10194_v60 }
0x4483   :  { %9641 = vmatprep.subr.msk.bf16.mxu1 %vm10382_vm6, %v9639_v33 }
0x4485   :  { %v10200_v43 = vpop.eup %10199 }
0x4486   :  { %v7177_v44 = vmul.f32 %v10200_v43, %v10196_v29 }
0x4488   :  { %9175 = vmatprep.mubr.msk.f32.mxu1 %vm291_vm7, %v7177_v44 }
0x4489   :  { %9176 = vmatmul.mubr.msk.f32.vlgmr.msra.gmra.mrb[62].mxu1 %vm291_vm7, %v7178_v47 }
0x448a   :  { %9644 = vmatpush3.bf16.xpose.msk.msra.mxu1 %vm10382_vm6, %v9639_v33  ;;  %9182 = vmatprep.mubr.msk.f32.mxu1 %vm203_vm5, %v7267_v37 }
0x4491   :  { %9183 = vmatmul.mubr.msk.f32.vlgmr.msra.gmra.mrb[64].mxu1 %vm203_vm5, %v7269_v1 }
0x455c   :  { %v9177_v36 = vpop.f32.mrb[62].mxu1 }
0x455d   :  { %v7257_v46 = vpop.f32.mrb[63].mxu1 }
0x4564   :  { %v9184_v26 = vpop.f32.mrb[64].mxu1 }
0x4565   :  { %v7358_v53 = vmul.f32 0.35355338, %v9184_v26  ;;  %v7348_v32 = vpop.f32.mrb[65].mxu1 }
0x4566   :  { %v7357_v18 = vmul.f32 0.35355338, %v7348_v32 }
0x4567   :  { %v7360_v54 = vadd.f32 %v11591_v24, %v7358_v53 }
0x4568   :  { %v7359_v19 = vadd.f32 %v11597_v3, %v7357_v18  ;;  %v8259_v18 = vld [vmem:[%s11806_s5 + $0x60] sm:$0xff] }
0x4569   :  { %v7364_v55 = vsel %vm291_vm7, %v7360_v54, -inf }
0x456a   :  { %7365 = vmax.xlane.f32.xlu0 %v7364_v55  ;;  %v7361_v58 = vsel %vm291_vm7, %v7359_v19, -inf }
0x456b   :  { %7362 = vmax.xlane.f32.xlu1 %v7361_v58  ;;  %v8262_v58 = vld [vmem:[%s11806_s5 + $0x78] sm:$0xff] }
0x457c   :  { %9933 = vrot.lane.b32.xlu1 %v11546_v52, %s11831_s30 }
0x4580   :  { %7474 = vrot.lane.b32.xlu1 %v11634_v16, %s11827_s21 }
0x4584   :  { %7480 = vrot.lane.b32.xlu1 %v7257_v46, %s11828_s22 }
0x4588   :  { %7482 = vrot.lane.b32.xlu1 %v9177_v36, %s11828_s22 }
0x45f7   :  { %v7366_v57 = vpop.xlane.xlu0 %7365 }
0x45f8   :  { %v7368_v24 = vsub.f32 %v7360_v54, %v7366_v57  ;;  %v7363_v59 = vpop.xlane.xlu1 %7362  ;;  %v8260_v54 = vld [vmem:[%s11806_s5 + $0x68] sm:$0xff] }
0x45f9   :  { %v7367_v3 = vsub.f32 %v7359_v19, %v7363_v59  ;;  %v8261_v19 = vld [vmem:[%s11806_s5 + $0x70] sm:$0xff]  ;;  %v9657_v55 = vpack.c.bf16 %v8260_v54, %v8259_v18  ;;  %v8268_v59 = vld [vmem:[%s11807_s6 + $0xc8] sm:$0xff] }
0x45fa   :  { %v7371_v42 = vmul.f32 1.442695, %v7368_v24  ;;  %v9661_v57 = vpack.c.bf16 %v8262_v58, %v8261_v19  ;;  %v8267_v24 = vld [vmem:[%s11807_s6 + $0xc0] sm:$0xff] }
0x45fb   :  { %v7369_v22 = vmul.f32 1.442695, %v7367_v3  ;;  %9658 = vmatprep.subr.bf16.mxu1 %v9657_v55  ;;  %v8269_v3 = vld [vmem:[%s11807_s6 + $0xd0] sm:$0xff] }
0x45fc   :  { %v9934_v2 = vpop.permute.xlu1 %9933  ;;  %9660 = vmatpush3.bf16.msra.mxu1 %v9657_v55 }
0x45fd   :  { %10201 = vpow2.f32 %v7369_v22  ;;  %v9936_v41 = vunpack.i.h.bf16 %v9934_v2  ;;  %v9935_v51 = vunpack.i.l.bf16 %v9934_v2  ;;  %9662 = vmatprep.subr.bf16.mxu1 %v9661_v57  ;;  %v8270_v22 = vld [vmem:[%s11807_s6 + $0xd8] sm:$0xff] }
0x45fe   :  { %10203 = vpow2.f32 %v7371_v42  ;;  %v9665_v42 = vpack.c.bf16 %v8268_v59, %v8267_v24  ;;  %v9669_v2 = vpack.c.bf16 %v8270_v22, %v8269_v3 }
0x45ff   :  { %v9645_v11 = vpack.c.bf16 %v9936_v41, %v9935_v51  ;;  %v8271_v41 = vld [vmem:[%s11807_s6 + $0xe0] sm:$0xff]  ;;  %v8272_v51 = vld [vmem:[%s11807_s6 + $0xe8] sm:$0xff] }
0x4600   :  { %v7475_v7 = vpop.permute.xlu1 %7474  ;;  %9664 = vmatpush3.bf16.msra.mxu1 %v9661_v57 }
0x4601   :  { %9646 = vmatprep.subr.bf16.mxu0 %v9645_v11  ;;  %v7495_v60 = vsel %vm203_vm5, %v11630_v15, %v7475_v7 }
0x4602   :  { %9648 = vmatpush3.bf16.msra.mxu0 %v9645_v11  ;;  %v9673_v11 = vpack.c.bf16 %v8272_v51, %v8271_v41 }
0x4604   :  { %v7481_v31 = vpop.permute.xlu1 %7480 }
0x4607   :  { %v10202_v52 = vpop.eup %10201 }
0x4608   :  { %v7373_v30 = vsel %vm291_vm7, %v10202_v52, 0.0  ;;  %v10204_v14 = vpop.eup %10203  ;;  %v7483_v28 = vpop.permute.xlu1 %7482 }
0x4609   :  { %7374 = vadd.xlane.f32.xlu0 %v7373_v30  ;;  %v7376_v45 = vsel %vm291_vm7, %v10204_v14, 0.0  ;;  %v7497_v35 = vsel %vm291_vm7, %v7495_v60, %v7483_v28 }
0x460d   :  { %7377 = vadd.xlane.f32.xlu0 %v7376_v45 }
0x4623   :  { %7472 = vrot.lane.b32.xlu0 %v11636_v49, %s11827_s21  ;;  %v8248_v49 = vld [vmem:[%s11805_s4 + $0xa8] sm:$0xff] }
0x4624   :  { %v9649_v5 = vpack.c.bf16 %v8248_v49, %v8247_v25 }
0x4626   :  { %9650 = vmatprep.subr.bf16.mxu0 %v9649_v5 }
0x4696   :  { %v7375_v16 = vpop.xlane.xlu0 %7374 }
0x4697   :  { %10205 = vrcp.f32 %v7375_v16 }
0x469a   :  { %v7378_v8 = vpop.xlane.xlu0 %7377 }
0x469b   :  { %10207 = vrcp.f32 %v7378_v8 }
0x469e   :  { %v7473_v27 = vpop.permute.xlu0 %7472 }
0x469f   :  { %v7494_v61 = vsel %vm203_vm5, %v11632_v17, %v7473_v27  ;;  %v8252_v17 = vld [vmem:[%s11809_s8 + $0x5] ss:$0 sm:$0xff] }
0x46a0   :  { %v7496_v4 = vsel %vm291_vm7, %v7494_v61, %v7481_v31  ;;  %v8258_v31 = vld [vmem:[%s11809_s8 + $0x1f] ss:$0 sm:$0xff] }
0x46a1   :  { %v10206_v38 = vpop.eup %10205 }
0x46a2   :  { %v7381_v56 = vmul.f32 %v10206_v38, %v10202_v52 }
0x46a4   :  { %9189 = vmatprep.mubr.msk.f32.mxu0 %vm291_vm7, %v7381_v56 }
0x46a5   :  { %v10208_v10 = vpop.eup %10207 }
0x46a6   :  { %v7382_v20 = vmul.f32 %v10208_v10, %v10204_v14 }
0x46a8   :  { %9190 = vmatmul.mubr.msk.f32.vlgmr.msra.gmra.mrb[66].mxu0 %vm291_vm7, %v7382_v20 }
0x46a9   :  { %9652 = vmatpush3.bf16.msra.mxu0 %v9649_v5 }
0x46aa   :  { %9654 = vmatprep.subr.bf16.mxu0 %v9653_v39 }
0x46ad   :  { %9656 = vmatpush3.bf16.msra.mxu0 %v9653_v39 }
0x46ae   :  { %9666 = vmatprep.subr.bf16.mxu0 %v9665_v42 }
0x477b   :  { %v9191_v6 = vpop.f32.mrb[66].mxu0 }
0x477c   :  { %7490 = vrot.lane.b32.xlu1 %v9191_v6, %s11829_s10  ;;  %v7461_v9 = vpop.f32.mrb[67].mxu0 }
0x477d   :  { %7488 = vrot.lane.b32.xlu0 %v7461_v9, %s11829_s10  ;;  %v8257_v9 = vld [vmem:[%s11809_s8 + $0x1e] ss:$0 sm:$0xff] }
0x47ee   :  { %v7491_v40 = vpop.permute.xlu1 %7490 }
0x47ef   :  { %v7489_v29 = vpop.permute.xlu0 %7488  ;;  %v7499_v23 = vsel %vm1041_vm8, %v7497_v35, %v7491_v40  ;;  %v8274_v35 = vld [vmem:[%s11807_s6 + $0xf8] sm:$0xff] }
0x47f0   :  { %v7498_v50 = vsel %vm1041_vm8, %v7496_v4, %v7489_v29  ;;  %v8273_v29 = vld [vmem:[%s11807_s6 + $0xf0] sm:$0xff] }
0x47f1   :  { %9200 = vmatprep.mubr.msk.f32.mxu0 %vm47_vm0, %v7498_v50  ;;  %v9677_v50 = vpack.c.bf16 %v8274_v35, %v8273_v29 }
0x47f2   :  { %9201 = vmatmul.mubr.msk.f32.vlgmr.msra.gmra.mrb[68].mxu0 %vm47_vm0, %v7499_v23  ;;  %v8264_v23 = vld [vmem:[%s11808_s7 + $0x3] ss:$0 sm:$0xff] }
0x47f3   :  { %9668 = vmatpush3.bf16.msra.mxu0 %v9665_v42 }
0x47f4   :  { %9670 = vmatprep.subr.bf16.mxu0 %v9669_v2 }
0x47f7   :  { %9672 = vmatpush3.bf16.msra.mxu0 %v9669_v2 }
0x47f8   :  { %9674 = vmatprep.subr.bf16.mxu0 %v9673_v11 }
0x47fb   :  { %9676 = vmatpush3.bf16.msra.mxu0 %v9673_v11 }
0x47fc   :  { %9678 = vmatprep.subr.bf16.mxu0 %v9677_v50 }
0x47ff   :  { %9680 = vmatpush3.bf16.msra.mxu0 %v9677_v50 }
0x48c5   :  { %v9202_v48 = vpop.f32.mrb[68].mxu0 }
0x48c6   :  { %v7591_v0 = vadd.f32 %v9202_v48, %v8252_v17  ;;  %v7585_v15 = vpop.f32.mrb[69].mxu0 }
0x48c7   :  { %v7586_v62 = vadd.f32 %v8252_v17, %v7585_v15 }
0x48c8   :  { %v11704_v33 = vadd.f32 %v7591_v0, %v11530_v13 }
0x48c9   :  { %v11707_v34 = vadd.f32 %v7586_v62, %v11533_v63 }
0x48ca   :  { %v7603_v43 = vsel %vm47_vm0, %v11704_v33, 0.0 }
0x48cb   :  { %7604 = vadd.xlane.f32.xlu1 %v7603_v43  ;;  %v7600_v44 = vsel %vm47_vm0, %v11707_v34, 0.0 }
0x48cc   :  { %7601 = vadd.xlane.f32.xlu0 %v7600_v44  ;;  %v8276_v44 = vld [vmem:[%s11809_s8 + $0x9] ss:$0 sm:$0xff] }
0x4958   :  { %v7605_v47 = vpop.xlane.xlu1 %7604 }
0x4959   :  { %v7607_v37 = vmul.f32 0.03125, %v7605_v47  ;;  %v7602_v1 = vpop.xlane.xlu0 %7601 }
0x495a   :  { %v7606_v36 = vmul.f32 0.03125, %v7602_v1 }
0x495b   :  { %v11714_v46 = vsub.f32 %v11704_v33, %v7607_v37 }
0x495c   :  { %v7608_v13 = vsub.f32 %v11707_v34, %v7606_v36 }
0x495d   :  { %v7611_v53 = vmul.f32 %v11714_v46, %v11714_v46 }
0x495e   :  { %v7610_v26 = vmul.f32 %v7608_v13, %v7608_v13 }
0x495f   :  { %v7615_v32 = vsel %vm47_vm0, %v7611_v53, 0.0 }
0x4960   :  { %v7612_v63 = vsel %vm47_vm0, %v7610_v26, 0.0 }
0x4961   :  { %7613 = vadd.xlane.f32.xlu0 %v7612_v63 }
0x4965   :  { %7616 = vadd.xlane.f32.xlu0 %v7615_v32 }
0x49ee   :  { %v7614_v52 = vpop.xlane.xlu0 %7613 }
0x49ef   :  { %v7618_v30 = vmul.f32 0.032258064, %v7614_v52 }
0x49f1   :  { %10209 = vrsqrt.f32 %v7618_v30  ;;  %vm7622_vm5 = vcmp.eq.f32.partialorder %v7618_v30, inf  ;;  %v7625_v38 = vand.u32 2147483648, %v7618_v30  ;;  %vm7624_vm6 = vcmp.eq.f32.partialorder %v7618_v30, 0.0 }
0x49f2   :  { %v7617_v14 = vpop.xlane.xlu0 %7616 }
0x49f3   :  { %v7619_v45 = vmul.f32 0.032258064, %v7617_v14 }
0x49f5   :  { %10211 = vrsqrt.f32 %v7619_v45  ;;  %vm7629_vm7 = vcmp.eq.f32.partialorder %v7619_v45, inf  ;;  %v7632_v21 = vand.u32 2147483648, %v7619_v45  ;;  %vm7631_vm8 = vcmp.eq.f32.partialorder %v7619_v45, 0.0 }
0x49fb   :  { %v10210_v16 = vpop.eup %10209 }
0x49fc   :  { %v7621_v8 = vmul.f32 %v10210_v16, %v7618_v30 }
0x49fe   :  { %v7623_v56 = vsel %vm7622_vm5, %v7618_v30, %v7621_v8 }
0x49ff   :  { %v10212_v10 = vpop.eup %10211  ;;  %v7626_v20 = vsel %vm7624_vm6, %v7625_v38, %v7623_v56 }
0x4a00   :  { %v7634_v25 = vadd.f32 1e-06, %v7626_v20  ;;  %v7628_v49 = vmul.f32 %v10212_v10, %v7619_v45  ;;  %v8281_v10 = vld [vmem:[%s11809_s8 + $0x20] ss:$0 sm:$0xff] }
0x4a02   :  { %10213 = vrcp.f32 %v7634_v25  ;;  %v7630_v5 = vsel %vm7629_vm7, %v7619_v45, %v7628_v49  ;;  %v8282_v49 = vld [vmem:[%s11809_s8 + $0x21] ss:$0 sm:$0xff] }
0x4a03   :  { %v7633_v12 = vsel %vm7631_vm8, %v7632_v21, %v7630_v5 }
0x4a04   :  { %v7635_v39 = vadd.f32 1e-06, %v7633_v12 }
0x4a06   :  { %10215 = vrcp.f32 %v7635_v39 }
0x4a0c   :  { %v10214_v6 = vpop.eup %10213 }
0x4a0d   :  { %v7638_v7 = vmul.f32 %v10214_v6, %v7608_v13 }
0x4a0f   :  { %v7646_v27 = vmul.f32 %v8257_v9, %v7638_v7 }
0x4a10   :  { %v10216_v28 = vpop.eup %10215 }
0x4a11   :  { %v7639_v61 = vmul.f32 %v10216_v28, %v11714_v46  ;;  %v7654_v40 = vadd.f32 %v8258_v31, %v7646_v27 }
0x4a13   :  { %v7647_v60 = vmul.f32 %v8257_v9, %v7639_v61  ;;  %9211 = vmatprep.mubr.msk.f32.mxu1 %vm47_vm0, %v7654_v40 }
0x4a15   :  { %v7655_v4 = vadd.f32 %v8258_v31, %v7647_v60 }
0x4a17   :  { %9212 = vmatmul.mubr.msk.f32.vlgmr.msra.gmra.mrb[66].mxu1 %vm47_vm0, %v7655_v4 }
0x4aea   :  { %v9213_v17 = vpop.f32.mrb[66].mxu1 }
0x4aeb   :  { %v7747_v48 = vadd.f32 %v9213_v17, %v8264_v23  ;;  %v7741_v0 = vpop.f32.mrb[67].mxu1 }
0x4aec   :  { %v7742_v15 = vadd.f32 %v8264_v23, %v7741_v0 }
0x4aed   :  { %v7751_v43 = vmax.f32 %v7747_v48, 0.0 }
0x4aee   :  { %v7750_v62 = vmax.f32 %v7742_v15, 0.0 }
0x4af0   :  { %9230 = vmatprep.mubr.msk.f32.mxu0 %vm1308_vm13, %v7750_v62 }
0x4af1   :  { %9231 = vmatmul.mubr.msk.f32.vlgmr.msra.gmra.mrb[70].mxu0 %vm1308_vm13, %v7751_v43 }
0x4bc4   :  { %v9232_v47 = vpop.f32.mrb[70].mxu0 }
0x4bc5   :  { %v7847_v37 = vadd.f32 %v9232_v47, %v8276_v44  ;;  %v7841_v1 = vpop.f32.mrb[71].mxu0 }
0x4bc6   :  { %v7842_v36 = vadd.f32 %v8276_v44, %v7841_v1 }
0x4bc7   :  { %v7851_v46 = vadd.f32 %v7847_v37, %v11704_v33 }
0x4bc8   :  { %v7850_v13 = vadd.f32 %v7842_v36, %v11707_v34 }
0x4bc9   :  { %v7859_v26 = vsel %vm47_vm0, %v7851_v46, 0.0 }
0x4bca   :  { %7860 = vadd.xlane.f32.xlu1 %v7859_v26  ;;  %v7856_v63 = vsel %vm47_vm0, %v7850_v13, 0.0 }
0x4bcb   :  { %7857 = vadd.xlane.f32.xlu0 %v7856_v63 }
0x4c57   :  { %v7861_v53 = vpop.xlane.xlu1 %7860 }
0x4c58   :  { %v7863_v32 = vmul.f32 0.03125, %v7861_v53  ;;  %v7858_v18 = vpop.xlane.xlu0 %7857 }
0x4c59   :  { %v7862_v54 = vmul.f32 0.03125, %v7858_v18 }
0x4c5a   :  { %v7865_v19 = vsub.f32 %v7851_v46, %v7863_v32 }
0x4c5b   :  { %v7864_v55 = vsub.f32 %v7850_v13, %v7862_v54 }
0x4c5c   :  { %v7867_v58 = vmul.f32 %v7865_v19, %v7865_v19 }
0x4c5d   :  { %v7866_v57 = vmul.f32 %v7864_v55, %v7864_v55 }
0x4c5e   :  { %v7871_v24 = vsel %vm47_vm0, %v7867_v58, 0.0 }
0x4c5f   :  { %7872 = vadd.xlane.f32.xlu1 %v7871_v24  ;;  %v7868_v33 = vsel %vm47_vm0, %v7866_v57, 0.0 }
0x4c60   :  { %7869 = vadd.xlane.f32.xlu0 %v7868_v33 }
0x4cec   :  { %v7873_v34 = vpop.xlane.xlu1 %7872 }
0x4ced   :  { %v7875_v59 = vmul.f32 0.032258064, %v7873_v34  ;;  %v7870_v3 = vpop.xlane.xlu0 %7869 }
0x4cee   :  { %v7874_v42 = vmul.f32 0.032258064, %v7870_v3 }
0x4cef   :  { %10217 = vrsqrt.f32 %v7875_v59  ;;  %vm7885_vm13 = vcmp.eq.f32.partialorder %v7875_v59, inf  ;;  %v7888_v51 = vand.u32 2147483648, %v7875_v59  ;;  %vm7887_vm1 = vcmp.eq.f32.partialorder %v7875_v59, 0.0 }
0x4cf0   :  { %10219 = vrsqrt.f32 %v7874_v42  ;;  %vm7878_vm2 = vcmp.eq.f32.partialorder %v7874_v42, inf  ;;  %v7881_v30 = vand.u32 2147483648, %v7874_v42  ;;  %vm7880_vm3 = vcmp.eq.f32.partialorder %v7874_v42, 0.0 }
0x4cf9   :  { %v10218_v22 = vpop.eup %10217 }
0x4cfa   :  { %v10220_v2 = vpop.eup %10219  ;;  %v7884_v41 = vmul.f32 %v10218_v22, %v7875_v59 }
0x4cfb   :  { %v7877_v11 = vmul.f32 %v10220_v2, %v7874_v42 }
0x4cfc   :  { %v7886_v52 = vsel %vm7885_vm13, %v7875_v59, %v7884_v41 }
0x4cfd   :  { %v7889_v14 = vsel %vm7887_vm1, %v7888_v51, %v7886_v52  ;;  %v7879_v45 = vsel %vm7878_vm2, %v7874_v42, %v7877_v11 }
0x4cfe   :  { %v7891_v16 = vadd.f32 1e-06, %v7889_v14  ;;  %v7882_v8 = vsel %vm7880_vm3, %v7881_v30, %v7879_v45 }
0x4cff   :  { %v7890_v38 = vadd.f32 1e-06, %v7882_v8 }
0x4d00   :  { %10221 = vrcp.f32 %v7891_v16 }
0x4d01   :  { %10223 = vrcp.f32 %v7890_v38 }
0x4d0a   :  { %v10222_v56 = vpop.eup %10221 }
0x4d0b   :  { %v10224_v20 = vpop.eup %10223  ;;  %v7895_v25 = vmul.f32 %v10222_v56, %v7865_v19 }
0x4d0c   :  { %v7894_v21 = vmul.f32 %v10224_v20, %v7864_v55 }
0x4d0d   :  { %v7903_v5 = vmul.f32 %v8281_v10, %v7895_v25 }
0x4d0e   :  { %v7902_v12 = vmul.f32 %v8281_v10, %v7894_v21 }
0x4d0f   :  { %v7911_v39 = vadd.f32 %v8282_v49, %v7903_v5 }
0x4d10   :  { %v7910_v6 = vadd.f32 %v8282_v49, %v7902_v12 }
0x4d11   :  { %7913 = vst.msk [vmem:[#allocation2 + $0x8] sm:$0xff] %vm47_vm0, %v7911_v39 }
0x4d12   :  { %7912 = vst.msk [vmem:[#allocation2] sm:$0xff] %vm47_vm0, %v7910_v6 }
0x4d13   :  { %10242 = shalt.err (!%p10239_p4)
}
0x4d14   :  { %s10243_s23 = scalar_lea.hbm %s11810_s9, 256 }
0x4d15   :  { %p10244_p5 = scmp.ne.s32.totalorder %s11810_s9, %s10243_s23  ;;  %p10247_p6 = scmp.lt.u32.totalorder %s10243_s23, %s11810_s9 }
0x4d17   :  { %p10249_p7 = pnand %p10247_p6, %p10244_p5 }
0x4d19   :  { %10252 = shalt.err (!%p10249_p7)
}
0x4d1a   :  { %s10270_s29 = smov 128  }
0x4d1b   :  { %7925 = dma.vmem_to_hbm [thread:$0]  %s7920_s28, 256, %s11810_s9, [#allocation3], %s10270_s29, %s10270_s29, %s11827_s21  }
0x4d1c   :  { %10253 = dma.done.wait [#allocation3], 256  }
0x4d1d   :  { %10254 = vsyncadd [#allocation3], 4294967040 }
0x4d1e   :  { %7929 = vsyncpa [#allocation3], 1 }

</bundles_post_ra>
